<compile_context>
chip_gen: v7x
topology: tpu7x:2x2x1
jax: 0.10.0
libtpu: 0.0.40
codegen_flags: <defaults>
</compile_context>

<pallas_src>
import functools

import jax
import jax.numpy as jnp
from jax.experimental import pallas as pl
from jax.experimental.pallas import tpu as pltpu

# ----------------------------- configuration -------------------------------
HIDDEN = 32          # opt['hidden_size']
NUM_HEADS = 4
HEAD_DIM = HIDDEN // NUM_HEADS
FF_SIZE = 4 * HIDDEN
OUTPUT = 3           # opt['output_size']
CLS_PAD = 128        # lane-dense classifier output width (sliced to OUTPUT)
LAYERS = 1           # encoder/decoder depth
LN_EPS = 1e-6        # MCAN/TRAR LayerNorm eps
SCALE = 1.0 / (HEAD_DIM ** 0.5)

_VMEM = pl.BlockSpec(memory_space=pltpu.MemorySpace.VMEM)


# --------------------- in-kernel building blocks (traced) --------------------
def _layernorm(x, g, b):
    mu = jnp.mean(x, axis=-1, keepdims=True)
    var = jnp.mean((x - mu) ** 2, axis=-1, keepdims=True)
    return (x - mu) * jax.lax.rsqrt(var + LN_EPS) * g + b


def _linear2d(x2d, w, b):
    return jnp.dot(x2d, w, preferred_element_type=jnp.float32) + b


def _ffn(x, p):
    bsz, seq, h = x.shape
    x2d = x.reshape(bsz * seq, h)
    mid = jnp.maximum(_linear2d(x2d, p["w1"], p["b1"]), 0.0)  # ReLU
    return _linear2d(mid, p["w2"], p["b2"]).reshape(bsz, seq, h)


def _attend_head(qh, kh, vh, bias):
    # qh (B, Lq, dh), kh/vh (B, Lk, dh), bias (B, 1, Lk) additive (-1e9 on pad)
    s = jnp.einsum("bqd,bkd->bqk", qh, kh,
                   preferred_element_type=jnp.float32) * SCALE
    if bias is not None:
        s = s + bias
    s = s - jnp.max(s, axis=-1, keepdims=True)
    p = jnp.exp(s)
    p = p * pl.reciprocal(jnp.sum(p, axis=-1, keepdims=True), approx=True)
    return jnp.einsum("bqk,bkd->bqd", p, vh,
                      preferred_element_type=jnp.float32)


def _mha_core(q, k, v, bias, wo, bo):
    # q (B, Lq, H), k/v (B, Lk, H). Head split = static lane slices; head merge
    # is folded into the output projection (sum of per-head partial matmuls),
    # so no concatenate / transpose relayout is needed.
    bsz, lq, h = q.shape
    out2d = None
    for hi in range(NUM_HEADS):
        sl = slice(hi * HEAD_DIM, (hi + 1) * HEAD_DIM)
        oh = _attend_head(q[:, :, sl], k[:, :, sl], v[:, :, sl], bias)
        contrib = jnp.dot(oh.reshape(bsz * lq, HEAD_DIM), wo[sl, :],
                          preferred_element_type=jnp.float32)
        out2d = contrib if out2d is None else out2d + contrib
    return (out2d + bo).reshape(bsz, lq, h)


def _mha_self(x, bias, wqkv, bqkv, wo, bo):
    bsz, seq, h = x.shape
    qkv = _linear2d(x.reshape(bsz * seq, h), wqkv, bqkv).reshape(bsz, seq, 3 * h)
    q, k, v = qkv[:, :, :h], qkv[:, :, h:2 * h], qkv[:, :, 2 * h:]
    return _mha_core(q, k, v, bias, wo, bo)


def _mha_cross(xq, xkv, bias, wq, bq, wkv, bkv, wo, bo):
    bsz, lq, h = xq.shape
    lk = xkv.shape[1]
    q = _linear2d(xq.reshape(bsz * lq, h), wq, bq).reshape(bsz, lq, h)
    kv = _linear2d(xkv.reshape(bsz * lk, h), wkv, bkv).reshape(bsz, lk, 2 * h)
    k, v = kv[:, :, :h], kv[:, :, h:]
    return _mha_core(q, k, v, bias, wo, bo)


def _encoder_layer(p, y, y_bias):
    y = _layernorm(y + _mha_self(y, y_bias, p["wqkv"], p["bqkv"],
                                 p["wo"], p["bo"]),
                   p["ln1_g"], p["ln1_b"])
    y = _layernorm(y + _ffn(y, p["ffn"]), p["ln2_g"], p["ln2_b"])
    return y


def _decoder_layer(p, x, y, y_bias):
    # img_feat_mask is all-False in the reference module -> no bias on self-attn
    x = _layernorm(x + _mha_self(x, None, p["sa_wqkv"], p["sa_bqkv"],
                                 p["sa_wo"], p["sa_bo"]),
                   p["ln1_g"], p["ln1_b"])
    x = _layernorm(x + _mha_cross(x, y, y_bias, p["ga_wq"], p["ga_bq"],
                                  p["ga_wkv"], p["ga_bkv"],
                                  p["ga_wo"], p["ga_bo"]),
                   p["ln2_g"], p["ln2_b"])
    x = _layernorm(x + _ffn(x, p["ffn"]), p["ln3_g"], p["ln3_b"])
    return x


# --------------------------- the fused Pallas kernel -------------------------
def _make_fed_kernel(treedef, n_leaves):
    n_in = 3 + n_leaves

    def kernel(*refs):
        lang_ref, img_ref, lbias_ref = refs[0], refs[1], refs[2]
        leaves = [r[...] for r in refs[3:n_in]]          # weights: VMEM-resident
        proj_ref, lm_ref, im_ref = refs[n_in], refs[n_in + 1], refs[n_in + 2]
        params = jax.tree_util.tree_unflatten(treedef, leaves)

        y = lang_ref[...].astype(jnp.float32)            # (B, L_lang, H)
        x = img_ref[...].astype(jnp.float32)             # (B, L_img, H)
        y_bias = lbias_ref[...]                          # (B, 1, L_lang), -1e9 on pad

        for lp in params["enc"]:
            y = _encoder_layer(lp, y, y_bias)
        for lp in params["dec"]:
            x = _decoder_layer(lp, x, y, y_bias)

        lmean = jnp.mean(y, axis=1)                      # torch.mean(lang, dim=1)
        imean = jnp.mean(x, axis=1)                      # torch.mean(img, dim=1)
        proj = _linear2d(lmean + imean, params["cls_w"], params["cls_b"])

        proj_ref[...] = proj.astype(proj_ref.dtype)      # lane-dense (B, 128) store
        lm_ref[...] = lmean.astype(lm_ref.dtype)
        im_ref[...] = imean.astype(im_ref.dtype)

    return kernel


def fed_forward(params, img_feat, lang_feat, lang_feat_mask):
    bsz, l_img, h = img_feat.shape
    l_lang = lang_feat.shape[1]

    # Additive mask bias precomputed once (True = padding -> -1e9).
    lang_bias = (lang_feat_mask.reshape(bsz, 1, l_lang).astype(jnp.float32)
                 * jnp.float32(-1e9))

    leaves, treedef = jax.tree_util.tree_flatten(params)
    kernel = _make_fed_kernel(treedef, len(leaves))

    proj_pad, lang_mean, img_mean = pl.pallas_call(
        kernel,
        out_shape=(
            jax.ShapeDtypeStruct((bsz, CLS_PAD), jnp.float32),
            jax.ShapeDtypeStruct((bsz, h), jnp.float32),
            jax.ShapeDtypeStruct((bsz, h), jnp.float32),
        ),
        in_specs=[_VMEM] * (3 + len(leaves)),
        out_specs=(_VMEM, _VMEM, _VMEM),
    )(lang_feat, img_feat, lang_bias, *leaves)

    return proj_pad[:, :OUTPUT], lang_mean, img_mean


# --------------------------- parameter initialization ------------------------
def _init_linear(key, din, dout):
    w = jax.random.normal(key, (din, dout), jnp.float32) * (1.0 / jnp.sqrt(din))
    b = jnp.zeros((1, dout), jnp.float32)
    return w, b


def _ln_params():
    return jnp.ones((1, HIDDEN), jnp.float32), jnp.zeros((1, HIDDEN), jnp.float32)


def _init_enc_layer(key):
    k1, k2, k3, k4 = jax.random.split(key, 4)
    wqkv, bqkv = _init_linear(k1, HIDDEN, 3 * HIDDEN)   # fused Q/K/V
    wo, bo = _init_linear(k2, HIDDEN, HIDDEN)
    w1, b1 = _init_linear(k3, HIDDEN, FF_SIZE)
    w2, b2 = _init_linear(k4, FF_SIZE, HIDDEN)
    g1, be1 = _ln_params()
    g2, be2 = _ln_params()
    return {"wqkv": wqkv, "bqkv": bqkv, "wo": wo, "bo": bo,
            "ffn": {"w1": w1, "b1": b1, "w2": w2, "b2": b2},
            "ln1_g": g1, "ln1_b": be1, "ln2_g": g2, "ln2_b": be2}


def _init_dec_layer(key):
    ks = jax.random.split(key, 7)
    sa_wqkv, sa_bqkv = _init_linear(ks[0], HIDDEN, 3 * HIDDEN)   # fused self Q/K/V
    sa_wo, sa_bo = _init_linear(ks[1], HIDDEN, HIDDEN)
    ga_wq, ga_bq = _init_linear(ks[2], HIDDEN, HIDDEN)
    ga_wkv, ga_bkv = _init_linear(ks[3], HIDDEN, 2 * HIDDEN)     # fused cross K/V
    ga_wo, ga_bo = _init_linear(ks[4], HIDDEN, HIDDEN)
    w1, b1 = _init_linear(ks[5], HIDDEN, FF_SIZE)
    w2, b2 = _init_linear(ks[6], FF_SIZE, HIDDEN)
    g1, be1 = _ln_params()
    g2, be2 = _ln_params()
    g3, be3 = _ln_params()
    return {"sa_wqkv": sa_wqkv, "sa_bqkv": sa_bqkv, "sa_wo": sa_wo, "sa_bo": sa_bo,
            "ga_wq": ga_wq, "ga_bq": ga_bq, "ga_wkv": ga_wkv, "ga_bkv": ga_bkv,
            "ga_wo": ga_wo, "ga_bo": ga_bo,
            "ffn": {"w1": w1, "b1": b1, "w2": w2, "b2": b2},
            "ln1_g": g1, "ln1_b": be1, "ln2_g": g2, "ln2_b": be2,
            "ln3_g": g3, "ln3_b": be3}


def _init_cls(key):
    # Logical classifier is Linear(HIDDEN, OUTPUT); zero-pad to 128 output lanes
    # so the in-kernel matmul/store is lane-dense. Padded columns are zero.
    w = jax.random.normal(key, (HIDDEN, OUTPUT), jnp.float32) * (1.0 / jnp.sqrt(HIDDEN))
    w_pad = jnp.zeros((HIDDEN, CLS_PAD), jnp.float32).at[:, :OUTPUT].set(w)
    b_pad = jnp.zeros((1, CLS_PAD), jnp.float32)
    return w_pad, b_pad


def init_params(key):
    params = {"enc": [], "dec": []}
    for _ in range(LAYERS):
        key, k = jax.random.split(key)
        params["enc"].append(_init_enc_layer(k))
    for _ in range(LAYERS):
        key, k = jax.random.split(key)
        params["dec"].append(_init_dec_layer(k))
    key, kc = jax.random.split(key)
    params["cls_w"], params["cls_b"] = _init_cls(kc)
    return params


# ---------------------------------- main -------------------------------------
if __name__ == "__main__":
    key = jax.random.PRNGKey(0)
    k_img, k_lang, k_par = jax.random.split(key, 3)

    B, L_IMG, L_LANG = 2, 16, 8
    img_feat = jax.random.normal(k_img, (B, L_IMG, HIDDEN), jnp.float32)
    lang_feat = jax.random.normal(k_lang, (B, L_LANG, HIDDEN), jnp.float32)
    # True = padding token (masked out), matching (tokens == 0) masks in TRAR.
    lang_feat_mask = jnp.zeros((B, 1, 1, L_LANG), dtype=jnp.bool_)
    lang_feat_mask = lang_feat_mask.at[1, 0, 0, 6:].set(True)

    params = init_params(k_par)

    fwd = jax.jit(functools.partial(fed_forward, params))
    proj_feat, lang_mean, img_mean = fwd(img_feat, lang_feat, lang_feat_mask)
    jax.block_until_ready((proj_feat, lang_mean, img_mean))

    assert proj_feat.shape == (B, OUTPUT)
    assert lang_mean.shape == (B, HIDDEN)
    assert img_mean.shape == (B, HIDDEN)
    print("KERNEL_OK")
</pallas_src>

<mosaic_0001>
module attributes {stable_mosaic.version = 11 : i64} {
  func.func @kernel(%arg0: memref<2x8x32xf32, #tpu.memory_space<vmem>>, %arg1: memref<2x16x32xf32, #tpu.memory_space<vmem>>, %arg2: memref<2x1x8xf32, #tpu.memory_space<vmem>>, %arg3: memref<1x128xf32, #tpu.memory_space<vmem>>, %arg4: memref<32x128xf32, #tpu.memory_space<vmem>>, %arg5: memref<1x128xf32, #tpu.memory_space<vmem>>, %arg6: memref<1x32xf32, #tpu.memory_space<vmem>>, %arg7: memref<32x128xf32, #tpu.memory_space<vmem>>, %arg8: memref<128x32xf32, #tpu.memory_space<vmem>>, %arg9: memref<1x64xf32, #tpu.memory_space<vmem>>, %arg10: memref<1x32xf32, #tpu.memory_space<vmem>>, %arg11: memref<1x32xf32, #tpu.memory_space<vmem>>, %arg12: memref<32x64xf32, #tpu.memory_space<vmem>>, %arg13: memref<32x32xf32, #tpu.memory_space<vmem>>, %arg14: memref<32x32xf32, #tpu.memory_space<vmem>>, %arg15: memref<1x32xf32, #tpu.memory_space<vmem>>, %arg16: memref<1x32xf32, #tpu.memory_space<vmem>>, %arg17: memref<1x32xf32, #tpu.memory_space<vmem>>, %arg18: memref<1x32xf32, #tpu.memory_space<vmem>>, %arg19: memref<1x32xf32, #tpu.memory_space<vmem>>, %arg20: memref<1x32xf32, #tpu.memory_space<vmem>>, %arg21: memref<1x32xf32, #tpu.memory_space<vmem>>, %arg22: memref<1x96xf32, #tpu.memory_space<vmem>>, %arg23: memref<32x32xf32, #tpu.memory_space<vmem>>, %arg24: memref<32x96xf32, #tpu.memory_space<vmem>>, %arg25: memref<1x32xf32, #tpu.memory_space<vmem>>, %arg26: memref<1x96xf32, #tpu.memory_space<vmem>>, %arg27: memref<1x128xf32, #tpu.memory_space<vmem>>, %arg28: memref<1x32xf32, #tpu.memory_space<vmem>>, %arg29: memref<32x128xf32, #tpu.memory_space<vmem>>, %arg30: memref<128x32xf32, #tpu.memory_space<vmem>>, %arg31: memref<1x32xf32, #tpu.memory_space<vmem>>, %arg32: memref<1x32xf32, #tpu.memory_space<vmem>>, %arg33: memref<1x32xf32, #tpu.memory_space<vmem>>, %arg34: memref<1x32xf32, #tpu.memory_space<vmem>>, %arg35: memref<32x32xf32, #tpu.memory_space<vmem>>, %arg36: memref<32x96xf32, #tpu.memory_space<vmem>>, %arg37: memref<2x128xf32, #tpu.memory_space<vmem>>, %arg38: memref<2x32xf32, #tpu.memory_space<vmem>>, %arg39: memref<2x32xf32, #tpu.memory_space<vmem>>) attributes {dimension_semantics = [], scalar_prefetch = 0 : i64, scratch_operands = 0 : i64, tpu.core_type = #tpu.core_type<tc>} {
    %c0 = arith.constant 0 : index
    %c0_0 = arith.constant 0 : index
    %0 = vector.load %arg3[%c0, %c0_0] : memref<1x128xf32, #tpu.memory_space<vmem>>, vector<1x128xf32>
    %c0_1 = arith.constant 0 : index
    %c0_2 = arith.constant 0 : index
    %1 = vector.load %arg4[%c0_1, %c0_2] : memref<32x128xf32, #tpu.memory_space<vmem>>, vector<32x128xf32>
    %c0_3 = arith.constant 0 : index
    %c0_4 = arith.constant 0 : index
    %2 = vector.load %arg5[%c0_3, %c0_4] : memref<1x128xf32, #tpu.memory_space<vmem>>, vector<1x128xf32>
    %c0_5 = arith.constant 0 : index
    %c0_6 = arith.constant 0 : index
    %3 = vector.load %arg6[%c0_5, %c0_6] : memref<1x32xf32, #tpu.memory_space<vmem>>, vector<1x32xf32>
    %c0_7 = arith.constant 0 : index
    %c0_8 = arith.constant 0 : index
    %4 = vector.load %arg7[%c0_7, %c0_8] : memref<32x128xf32, #tpu.memory_space<vmem>>, vector<32x128xf32>
    %c0_9 = arith.constant 0 : index
    %c0_10 = arith.constant 0 : index
    %5 = vector.load %arg8[%c0_9, %c0_10] : memref<128x32xf32, #tpu.memory_space<vmem>>, vector<128x32xf32>
    %c0_11 = arith.constant 0 : index
    %c0_12 = arith.constant 0 : index
    %6 = vector.load %arg9[%c0_11, %c0_12] : memref<1x64xf32, #tpu.memory_space<vmem>>, vector<1x64xf32>
    %c0_13 = arith.constant 0 : index
    %c0_14 = arith.constant 0 : index
    %7 = vector.load %arg10[%c0_13, %c0_14] : memref<1x32xf32, #tpu.memory_space<vmem>>, vector<1x32xf32>
    %c0_15 = arith.constant 0 : index
    %c0_16 = arith.constant 0 : index
    %8 = vector.load %arg11[%c0_15, %c0_16] : memref<1x32xf32, #tpu.memory_space<vmem>>, vector<1x32xf32>
    %c0_17 = arith.constant 0 : index
    %c0_18 = arith.constant 0 : index
    %9 = vector.load %arg12[%c0_17, %c0_18] : memref<32x64xf32, #tpu.memory_space<vmem>>, vector<32x64xf32>
    %c0_19 = arith.constant 0 : index
    %c0_20 = arith.constant 0 : index
    %10 = vector.load %arg13[%c0_19, %c0_20] : memref<32x32xf32, #tpu.memory_space<vmem>>, vector<32x32xf32>
    %c0_21 = arith.constant 0 : index
    %c0_22 = arith.constant 0 : index
    %11 = vector.load %arg14[%c0_21, %c0_22] : memref<32x32xf32, #tpu.memory_space<vmem>>, vector<32x32xf32>
    %c0_23 = arith.constant 0 : index
    %c0_24 = arith.constant 0 : index
    %12 = vector.load %arg15[%c0_23, %c0_24] : memref<1x32xf32, #tpu.memory_space<vmem>>, vector<1x32xf32>
    %c0_25 = arith.constant 0 : index
    %c0_26 = arith.constant 0 : index
    %13 = vector.load %arg16[%c0_25, %c0_26] : memref<1x32xf32, #tpu.memory_space<vmem>>, vector<1x32xf32>
    %c0_27 = arith.constant 0 : index
    %c0_28 = arith.constant 0 : index
    %14 = vector.load %arg17[%c0_27, %c0_28] : memref<1x32xf32, #tpu.memory_space<vmem>>, vector<1x32xf32>
    %c0_29 = arith.constant 0 : index
    %c0_30 = arith.constant 0 : index
    %15 = vector.load %arg18[%c0_29, %c0_30] : memref<1x32xf32, #tpu.memory_space<vmem>>, vector<1x32xf32>
    %c0_31 = arith.constant 0 : index
    %c0_32 = arith.constant 0 : index
    %16 = vector.load %arg19[%c0_31, %c0_32] : memref<1x32xf32, #tpu.memory_space<vmem>>, vector<1x32xf32>
    %c0_33 = arith.constant 0 : index
    %c0_34 = arith.constant 0 : index
    %17 = vector.load %arg20[%c0_33, %c0_34] : memref<1x32xf32, #tpu.memory_space<vmem>>, vector<1x32xf32>
    %c0_35 = arith.constant 0 : index
    %c0_36 = arith.constant 0 : index
    %18 = vector.load %arg21[%c0_35, %c0_36] : memref<1x32xf32, #tpu.memory_space<vmem>>, vector<1x32xf32>
    %c0_37 = arith.constant 0 : index
    %c0_38 = arith.constant 0 : index
    %19 = vector.load %arg22[%c0_37, %c0_38] : memref<1x96xf32, #tpu.memory_space<vmem>>, vector<1x96xf32>
    %c0_39 = arith.constant 0 : index
    %c0_40 = arith.constant 0 : index
    %20 = vector.load %arg23[%c0_39, %c0_40] : memref<32x32xf32, #tpu.memory_space<vmem>>, vector<32x32xf32>
    %c0_41 = arith.constant 0 : index
    %c0_42 = arith.constant 0 : index
    %21 = vector.load %arg24[%c0_41, %c0_42] : memref<32x96xf32, #tpu.memory_space<vmem>>, vector<32x96xf32>
    %c0_43 = arith.constant 0 : index
    %c0_44 = arith.constant 0 : index
    %22 = vector.load %arg25[%c0_43, %c0_44] : memref<1x32xf32, #tpu.memory_space<vmem>>, vector<1x32xf32>
    %c0_45 = arith.constant 0 : index
    %c0_46 = arith.constant 0 : index
    %23 = vector.load %arg26[%c0_45, %c0_46] : memref<1x96xf32, #tpu.memory_space<vmem>>, vector<1x96xf32>
    %c0_47 = arith.constant 0 : index
    %c0_48 = arith.constant 0 : index
    %24 = vector.load %arg27[%c0_47, %c0_48] : memref<1x128xf32, #tpu.memory_space<vmem>>, vector<1x128xf32>
    %c0_49 = arith.constant 0 : index
    %c0_50 = arith.constant 0 : index
    %25 = vector.load %arg28[%c0_49, %c0_50] : memref<1x32xf32, #tpu.memory_space<vmem>>, vector<1x32xf32>
    %c0_51 = arith.constant 0 : index
    %c0_52 = arith.constant 0 : index
    %26 = vector.load %arg29[%c0_51, %c0_52] : memref<32x128xf32, #tpu.memory_space<vmem>>, vector<32x128xf32>
    %c0_53 = arith.constant 0 : index
    %c0_54 = arith.constant 0 : index
    %27 = vector.load %arg30[%c0_53, %c0_54] : memref<128x32xf32, #tpu.memory_space<vmem>>, vector<128x32xf32>
    %c0_55 = arith.constant 0 : index
    %c0_56 = arith.constant 0 : index
    %28 = vector.load %arg31[%c0_55, %c0_56] : memref<1x32xf32, #tpu.memory_space<vmem>>, vector<1x32xf32>
    %c0_57 = arith.constant 0 : index
    %c0_58 = arith.constant 0 : index
    %29 = vector.load %arg32[%c0_57, %c0_58] : memref<1x32xf32, #tpu.memory_space<vmem>>, vector<1x32xf32>
    %c0_59 = arith.constant 0 : index
    %c0_60 = arith.constant 0 : index
    %30 = vector.load %arg33[%c0_59, %c0_60] : memref<1x32xf32, #tpu.memory_space<vmem>>, vector<1x32xf32>
    %c0_61 = arith.constant 0 : index
    %c0_62 = arith.constant 0 : index
    %31 = vector.load %arg34[%c0_61, %c0_62] : memref<1x32xf32, #tpu.memory_space<vmem>>, vector<1x32xf32>
    %c0_63 = arith.constant 0 : index
    %c0_64 = arith.constant 0 : index
    %32 = vector.load %arg35[%c0_63, %c0_64] : memref<32x32xf32, #tpu.memory_space<vmem>>, vector<32x32xf32>
    %c0_65 = arith.constant 0 : index
    %c0_66 = arith.constant 0 : index
    %33 = vector.load %arg36[%c0_65, %c0_66] : memref<32x96xf32, #tpu.memory_space<vmem>>, vector<32x96xf32>
    %c0_67 = arith.constant 0 : index
    %c0_68 = arith.constant 0 : index
    %c0_69 = arith.constant 0 : index
    %34 = vector.load %arg0[%c0_67, %c0_68, %c0_69] : memref<2x8x32xf32, #tpu.memory_space<vmem>>, vector<2x8x32xf32>
    %c0_70 = arith.constant 0 : index
    %c0_71 = arith.constant 0 : index
    %c0_72 = arith.constant 0 : index
    %35 = vector.load %arg1[%c0_70, %c0_71, %c0_72] : memref<2x16x32xf32, #tpu.memory_space<vmem>>, vector<2x16x32xf32>
    %c0_73 = arith.constant 0 : index
    %c0_74 = arith.constant 0 : index
    %c0_75 = arith.constant 0 : index
    %36 = vector.load %arg2[%c0_73, %c0_74, %c0_75] : memref<2x1x8xf32, #tpu.memory_space<vmem>>, vector<2x1x8xf32>
    %37 = vector.shape_cast %34 : vector<2x8x32xf32> to vector<16x32xf32>
    %cst = arith.constant dense<0.000000e+00> : vector<16x96xf32>
    %38 = tpu.matmul %37, %33, %cst {dimension_numbers = #tpu.dot_dimension_numbers<[1], [0], [0], [1], [0, 0, 1, 1], [], []>} : vector<16x32xf32>, vector<32x96xf32>, vector<16x96xf32> -> vector<16x96xf32>
    %39 = vector.broadcast %23 : vector<1x96xf32> to vector<16x96xf32>
    %40 = arith.addf %38, %39 : vector<16x96xf32>
    %41 = vector.shape_cast %40 : vector<16x96xf32> to vector<2x8x96xf32>
    %42 = vector.extract_strided_slice %41 {offsets = [0, 0, 0], sizes = [2, 8, 32], strides = [1, 1, 1]} : vector<2x8x96xf32> to vector<2x8x32xf32>
    %43 = vector.extract_strided_slice %41 {offsets = [0, 0, 32], sizes = [2, 8, 32], strides = [1, 1, 1]} : vector<2x8x96xf32> to vector<2x8x32xf32>
    %44 = vector.extract_strided_slice %41 {offsets = [0, 0, 64], sizes = [2, 8, 32], strides = [1, 1, 1]} : vector<2x8x96xf32> to vector<2x8x32xf32>
    %45 = vector.extract_strided_slice %42 {offsets = [0, 0, 0], sizes = [2, 8, 8], strides = [1, 1, 1]} : vector<2x8x32xf32> to vector<2x8x8xf32>
    %46 = vector.extract_strided_slice %43 {offsets = [0, 0, 0], sizes = [2, 8, 8], strides = [1, 1, 1]} : vector<2x8x32xf32> to vector<2x8x8xf32>
    %47 = vector.extract_strided_slice %44 {offsets = [0, 0, 0], sizes = [2, 8, 8], strides = [1, 1, 1]} : vector<2x8x32xf32> to vector<2x8x8xf32>
    "tpu.trace_start"() <{level = 10 : i32, message = "bqd,bkd->bqk"}> : () -> ()
    %cst_76 = arith.constant dense<0.000000e+00> : vector<2x8x8xf32>
    %48 = tpu.matmul %45, %46, %cst_76 {dimension_numbers = #tpu.dot_dimension_numbers<[2], [2], [1], [1], [0, 0, 0, 1, 1, 1], [0], [0]>} : vector<2x8x8xf32>, vector<2x8x8xf32>, vector<2x8x8xf32> -> vector<2x8x8xf32>
    "tpu.trace_stop"() : () -> ()
    %cst_77 = arith.constant 0.353553385 : f32
    %49 = vector.broadcast %cst_77 : f32 to vector<2x8x8xf32>
    %50 = arith.mulf %48, %49 : vector<2x8x8xf32>
    %51 = vector.broadcast %36 : vector<2x1x8xf32> to vector<2x8x8xf32>
    %52 = arith.addf %50, %51 : vector<2x8x8xf32>
    %cst_78 = arith.constant dense<0xFF800000> : vector<2x8xf32>
    %53 = vector.multi_reduction <maximumf>, %52, %cst_78 [2] : vector<2x8x8xf32> to vector<2x8xf32>
    %54 = vector.shape_cast %53 : vector<2x8xf32> to vector<2x8x1xf32>
    %55 = vector.broadcast %54 : vector<2x8x1xf32> to vector<2x8x8xf32>
    %56 = arith.subf %52, %55 : vector<2x8x8xf32>
    %57 = math.exp %56 : vector<2x8x8xf32>
    %cst_79 = arith.constant dense<0.000000e+00> : vector<2x8xf32>
    %58 = vector.multi_reduction <add>, %57, %cst_79 [2] : vector<2x8x8xf32> to vector<2x8xf32>
    %59 = vector.shape_cast %58 : vector<2x8xf32> to vector<2x8x1xf32>
    %60 = tpu.reciprocal %59 {approx = true} : vector<2x8x1xf32> -> vector<2x8x1xf32>
    %61 = vector.broadcast %60 : vector<2x8x1xf32> to vector<2x8x8xf32>
    %62 = arith.mulf %57, %61 : vector<2x8x8xf32>
    "tpu.trace_start"() <{level = 10 : i32, message = "bqk,bkd->bqd"}> : () -> ()
    %cst_80 = arith.constant dense<0.000000e+00> : vector<2x8x8xf32>
    %63 = tpu.matmul %62, %47, %cst_80 {dimension_numbers = #tpu.dot_dimension_numbers<[2], [1], [1], [2], [0, 0, 0, 1, 1, 2], [0], [0]>} : vector<2x8x8xf32>, vector<2x8x8xf32>, vector<2x8x8xf32> -> vector<2x8x8xf32>
    "tpu.trace_stop"() : () -> ()
    %64 = vector.shape_cast %63 : vector<2x8x8xf32> to vector<16x8xf32>
    %65 = vector.extract_strided_slice %32 {offsets = [0, 0], sizes = [8, 32], strides = [1, 1]} : vector<32x32xf32> to vector<8x32xf32>
    %cst_81 = arith.constant dense<0.000000e+00> : vector<16x32xf32>
    %66 = tpu.matmul %64, %65, %cst_81 {dimension_numbers = #tpu.dot_dimension_numbers<[1], [0], [0], [1], [0, 0, 1, 1], [], []>} : vector<16x8xf32>, vector<8x32xf32>, vector<16x32xf32> -> vector<16x32xf32>
    %67 = vector.extract_strided_slice %42 {offsets = [0, 0, 8], sizes = [2, 8, 8], strides = [1, 1, 1]} : vector<2x8x32xf32> to vector<2x8x8xf32>
    %68 = vector.extract_strided_slice %43 {offsets = [0, 0, 8], sizes = [2, 8, 8], strides = [1, 1, 1]} : vector<2x8x32xf32> to vector<2x8x8xf32>
    %69 = vector.extract_strided_slice %44 {offsets = [0, 0, 8], sizes = [2, 8, 8], strides = [1, 1, 1]} : vector<2x8x32xf32> to vector<2x8x8xf32>
    "tpu.trace_start"() <{level = 10 : i32, message = "bqd,bkd->bqk"}> : () -> ()
    %cst_82 = arith.constant dense<0.000000e+00> : vector<2x8x8xf32>
    %70 = tpu.matmul %67, %68, %cst_82 {dimension_numbers = #tpu.dot_dimension_numbers<[2], [2], [1], [1], [0, 0, 0, 1, 1, 1], [0], [0]>} : vector<2x8x8xf32>, vector<2x8x8xf32>, vector<2x8x8xf32> -> vector<2x8x8xf32>
    "tpu.trace_stop"() : () -> ()
    %cst_83 = arith.constant 0.353553385 : f32
    %71 = vector.broadcast %cst_83 : f32 to vector<2x8x8xf32>
    %72 = arith.mulf %70, %71 : vector<2x8x8xf32>
    %73 = vector.broadcast %36 : vector<2x1x8xf32> to vector<2x8x8xf32>
    %74 = arith.addf %72, %73 : vector<2x8x8xf32>
    %cst_84 = arith.constant dense<0xFF800000> : vector<2x8xf32>
    %75 = vector.multi_reduction <maximumf>, %74, %cst_84 [2] : vector<2x8x8xf32> to vector<2x8xf32>
    %76 = vector.shape_cast %75 : vector<2x8xf32> to vector<2x8x1xf32>
    %77 = vector.broadcast %76 : vector<2x8x1xf32> to vector<2x8x8xf32>
    %78 = arith.subf %74, %77 : vector<2x8x8xf32>
    %79 = math.exp %78 : vector<2x8x8xf32>
    %cst_85 = arith.constant dense<0.000000e+00> : vector<2x8xf32>
    %80 = vector.multi_reduction <add>, %79, %cst_85 [2] : vector<2x8x8xf32> to vector<2x8xf32>
    %81 = vector.shape_cast %80 : vector<2x8xf32> to vector<2x8x1xf32>
    %82 = tpu.reciprocal %81 {approx = true} : vector<2x8x1xf32> -> vector<2x8x1xf32>
    %83 = vector.broadcast %82 : vector<2x8x1xf32> to vector<2x8x8xf32>
    %84 = arith.mulf %79, %83 : vector<2x8x8xf32>
    "tpu.trace_start"() <{level = 10 : i32, message = "bqk,bkd->bqd"}> : () -> ()
    %cst_86 = arith.constant dense<0.000000e+00> : vector<2x8x8xf32>
    %85 = tpu.matmul %84, %69, %cst_86 {dimension_numbers = #tpu.dot_dimension_numbers<[2], [1], [1], [2], [0, 0, 0, 1, 1, 2], [0], [0]>} : vector<2x8x8xf32>, vector<2x8x8xf32>, vector<2x8x8xf32> -> vector<2x8x8xf32>
    "tpu.trace_stop"() : () -> ()
    %86 = vector.shape_cast %85 : vector<2x8x8xf32> to vector<16x8xf32>
    %87 = vector.extract_strided_slice %32 {offsets = [8, 0], sizes = [8, 32], strides = [1, 1]} : vector<32x32xf32> to vector<8x32xf32>
    %cst_87 = arith.constant dense<0.000000e+00> : vector<16x32xf32>
    %88 = tpu.matmul %86, %87, %cst_87 {dimension_numbers = #tpu.dot_dimension_numbers<[1], [0], [0], [1], [0, 0, 1, 1], [], []>} : vector<16x8xf32>, vector<8x32xf32>, vector<16x32xf32> -> vector<16x32xf32>
    %89 = arith.addf %66, %88 : vector<16x32xf32>
    %90 = vector.extract_strided_slice %42 {offsets = [0, 0, 16], sizes = [2, 8, 8], strides = [1, 1, 1]} : vector<2x8x32xf32> to vector<2x8x8xf32>
    %91 = vector.extract_strided_slice %43 {offsets = [0, 0, 16], sizes = [2, 8, 8], strides = [1, 1, 1]} : vector<2x8x32xf32> to vector<2x8x8xf32>
    %92 = vector.extract_strided_slice %44 {offsets = [0, 0, 16], sizes = [2, 8, 8], strides = [1, 1, 1]} : vector<2x8x32xf32> to vector<2x8x8xf32>
    "tpu.trace_start"() <{level = 10 : i32, message = "bqd,bkd->bqk"}> : () -> ()
    %cst_88 = arith.constant dense<0.000000e+00> : vector<2x8x8xf32>
    %93 = tpu.matmul %90, %91, %cst_88 {dimension_numbers = #tpu.dot_dimension_numbers<[2], [2], [1], [1], [0, 0, 0, 1, 1, 1], [0], [0]>} : vector<2x8x8xf32>, vector<2x8x8xf32>, vector<2x8x8xf32> -> vector<2x8x8xf32>
    "tpu.trace_stop"() : () -> ()
    %cst_89 = arith.constant 0.353553385 : f32
    %94 = vector.broadcast %cst_89 : f32 to vector<2x8x8xf32>
    %95 = arith.mulf %93, %94 : vector<2x8x8xf32>
    %96 = vector.broadcast %36 : vector<2x1x8xf32> to vector<2x8x8xf32>
    %97 = arith.addf %95, %96 : vector<2x8x8xf32>
    %cst_90 = arith.constant dense<0xFF800000> : vector<2x8xf32>
    %98 = vector.multi_reduction <maximumf>, %97, %cst_90 [2] : vector<2x8x8xf32> to vector<2x8xf32>
    %99 = vector.shape_cast %98 : vector<2x8xf32> to vector<2x8x1xf32>
    %100 = vector.broadcast %99 : vector<2x8x1xf32> to vector<2x8x8xf32>
    %101 = arith.subf %97, %100 : vector<2x8x8xf32>
    %102 = math.exp %101 : vector<2x8x8xf32>
    %cst_91 = arith.constant dense<0.000000e+00> : vector<2x8xf32>
    %103 = vector.multi_reduction <add>, %102, %cst_91 [2] : vector<2x8x8xf32> to vector<2x8xf32>
    %104 = vector.shape_cast %103 : vector<2x8xf32> to vector<2x8x1xf32>
    %105 = tpu.reciprocal %104 {approx = true} : vector<2x8x1xf32> -> vector<2x8x1xf32>
    %106 = vector.broadcast %105 : vector<2x8x1xf32> to vector<2x8x8xf32>
    %107 = arith.mulf %102, %106 : vector<2x8x8xf32>
    "tpu.trace_start"() <{level = 10 : i32, message = "bqk,bkd->bqd"}> : () -> ()
    %cst_92 = arith.constant dense<0.000000e+00> : vector<2x8x8xf32>
    %108 = tpu.matmul %107, %92, %cst_92 {dimension_numbers = #tpu.dot_dimension_numbers<[2], [1], [1], [2], [0, 0, 0, 1, 1, 2], [0], [0]>} : vector<2x8x8xf32>, vector<2x8x8xf32>, vector<2x8x8xf32> -> vector<2x8x8xf32>
    "tpu.trace_stop"() : () -> ()
    %109 = vector.shape_cast %108 : vector<2x8x8xf32> to vector<16x8xf32>
    %110 = vector.extract_strided_slice %32 {offsets = [16, 0], sizes = [8, 32], strides = [1, 1]} : vector<32x32xf32> to vector<8x32xf32>
    %cst_93 = arith.constant dense<0.000000e+00> : vector<16x32xf32>
    %111 = tpu.matmul %109, %110, %cst_93 {dimension_numbers = #tpu.dot_dimension_numbers<[1], [0], [0], [1], [0, 0, 1, 1], [], []>} : vector<16x8xf32>, vector<8x32xf32>, vector<16x32xf32> -> vector<16x32xf32>
    %112 = arith.addf %89, %111 : vector<16x32xf32>
    %113 = vector.extract_strided_slice %42 {offsets = [0, 0, 24], sizes = [2, 8, 8], strides = [1, 1, 1]} : vector<2x8x32xf32> to vector<2x8x8xf32>
    %114 = vector.extract_strided_slice %43 {offsets = [0, 0, 24], sizes = [2, 8, 8], strides = [1, 1, 1]} : vector<2x8x32xf32> to vector<2x8x8xf32>
    %115 = vector.extract_strided_slice %44 {offsets = [0, 0, 24], sizes = [2, 8, 8], strides = [1, 1, 1]} : vector<2x8x32xf32> to vector<2x8x8xf32>
    "tpu.trace_start"() <{level = 10 : i32, message = "bqd,bkd->bqk"}> : () -> ()
    %cst_94 = arith.constant dense<0.000000e+00> : vector<2x8x8xf32>
    %116 = tpu.matmul %113, %114, %cst_94 {dimension_numbers = #tpu.dot_dimension_numbers<[2], [2], [1], [1], [0, 0, 0, 1, 1, 1], [0], [0]>} : vector<2x8x8xf32>, vector<2x8x8xf32>, vector<2x8x8xf32> -> vector<2x8x8xf32>
    "tpu.trace_stop"() : () -> ()
    %cst_95 = arith.constant 0.353553385 : f32
    %117 = vector.broadcast %cst_95 : f32 to vector<2x8x8xf32>
    %118 = arith.mulf %116, %117 : vector<2x8x8xf32>
    %119 = vector.broadcast %36 : vector<2x1x8xf32> to vector<2x8x8xf32>
    %120 = arith.addf %118, %119 : vector<2x8x8xf32>
    %cst_96 = arith.constant dense<0xFF800000> : vector<2x8xf32>
    %121 = vector.multi_reduction <maximumf>, %120, %cst_96 [2] : vector<2x8x8xf32> to vector<2x8xf32>
    %122 = vector.shape_cast %121 : vector<2x8xf32> to vector<2x8x1xf32>
    %123 = vector.broadcast %122 : vector<2x8x1xf32> to vector<2x8x8xf32>
    %124 = arith.subf %120, %123 : vector<2x8x8xf32>
    %125 = math.exp %124 : vector<2x8x8xf32>
    %cst_97 = arith.constant dense<0.000000e+00> : vector<2x8xf32>
    %126 = vector.multi_reduction <add>, %125, %cst_97 [2] : vector<2x8x8xf32> to vector<2x8xf32>
    %127 = vector.shape_cast %126 : vector<2x8xf32> to vector<2x8x1xf32>
    %128 = tpu.reciprocal %127 {approx = true} : vector<2x8x1xf32> -> vector<2x8x1xf32>
    %129 = vector.broadcast %128 : vector<2x8x1xf32> to vector<2x8x8xf32>
    %130 = arith.mulf %125, %129 : vector<2x8x8xf32>
    "tpu.trace_start"() <{level = 10 : i32, message = "bqk,bkd->bqd"}> : () -> ()
    %cst_98 = arith.constant dense<0.000000e+00> : vector<2x8x8xf32>
    %131 = tpu.matmul %130, %115, %cst_98 {dimension_numbers = #tpu.dot_dimension_numbers<[2], [1], [1], [2], [0, 0, 0, 1, 1, 2], [0], [0]>} : vector<2x8x8xf32>, vector<2x8x8xf32>, vector<2x8x8xf32> -> vector<2x8x8xf32>
    "tpu.trace_stop"() : () -> ()
    %132 = vector.shape_cast %131 : vector<2x8x8xf32> to vector<16x8xf32>
    %133 = vector.extract_strided_slice %32 {offsets = [24, 0], sizes = [8, 32], strides = [1, 1]} : vector<32x32xf32> to vector<8x32xf32>
    %cst_99 = arith.constant dense<0.000000e+00> : vector<16x32xf32>
    %134 = tpu.matmul %132, %133, %cst_99 {dimension_numbers = #tpu.dot_dimension_numbers<[1], [0], [0], [1], [0, 0, 1, 1], [], []>} : vector<16x8xf32>, vector<8x32xf32>, vector<16x32xf32> -> vector<16x32xf32>
    %135 = arith.addf %112, %134 : vector<16x32xf32>
    %136 = vector.broadcast %22 : vector<1x32xf32> to vector<16x32xf32>
    %137 = arith.addf %135, %136 : vector<16x32xf32>
    %138 = vector.shape_cast %137 : vector<16x32xf32> to vector<2x8x32xf32>
    %139 = arith.addf %34, %138 : vector<2x8x32xf32>
    %cst_100 = arith.constant dense<0.000000e+00> : vector<2x8xf32>
    %140 = vector.multi_reduction <add>, %139, %cst_100 [2] : vector<2x8x32xf32> to vector<2x8xf32>
    %141 = vector.shape_cast %140 : vector<2x8xf32> to vector<2x8x1xf32>
    %cst_101 = arith.constant 3.200000e+01 : f32
    %142 = vector.broadcast %cst_101 : f32 to vector<2x8x1xf32>
    %143 = arith.divf %141, %142 : vector<2x8x1xf32>
    %144 = vector.broadcast %143 : vector<2x8x1xf32> to vector<2x8x32xf32>
    %145 = arith.subf %139, %144 : vector<2x8x32xf32>
    %146 = arith.mulf %145, %145 : vector<2x8x32xf32>
    %cst_102 = arith.constant dense<0.000000e+00> : vector<2x8xf32>
    %147 = vector.multi_reduction <add>, %146, %cst_102 [2] : vector<2x8x32xf32> to vector<2x8xf32>
    %148 = vector.shape_cast %147 : vector<2x8xf32> to vector<2x8x1xf32>
    %cst_103 = arith.constant 3.200000e+01 : f32
    %149 = vector.broadcast %cst_103 : f32 to vector<2x8x1xf32>
    %150 = arith.divf %148, %149 : vector<2x8x1xf32>
    %151 = vector.broadcast %143 : vector<2x8x1xf32> to vector<2x8x32xf32>
    %152 = arith.subf %139, %151 : vector<2x8x32xf32>
    %cst_104 = arith.constant 9.99999997E-7 : f32
    %153 = vector.broadcast %cst_104 : f32 to vector<2x8x1xf32>
    %154 = arith.addf %150, %153 : vector<2x8x1xf32>
    %155 = math.rsqrt %154 : vector<2x8x1xf32>
    %156 = vector.broadcast %155 : vector<2x8x1xf32> to vector<2x8x32xf32>
    %157 = arith.mulf %152, %156 : vector<2x8x32xf32>
    %158 = vector.shape_cast %29 : vector<1x32xf32> to vector<1x1x32xf32>
    %159 = vector.broadcast %158 : vector<1x1x32xf32> to vector<2x8x32xf32>
    %160 = arith.mulf %157, %159 : vector<2x8x32xf32>
    %161 = vector.shape_cast %28 : vector<1x32xf32> to vector<1x1x32xf32>
    %162 = vector.broadcast %161 : vector<1x1x32xf32> to vector<2x8x32xf32>
    %163 = arith.addf %160, %162 : vector<2x8x32xf32>
    %164 = vector.shape_cast %163 : vector<2x8x32xf32> to vector<16x32xf32>
    %cst_105 = arith.constant dense<0.000000e+00> : vector<16x128xf32>
    %165 = tpu.matmul %164, %26, %cst_105 {dimension_numbers = #tpu.dot_dimension_numbers<[1], [0], [0], [1], [0, 0, 1, 1], [], []>} : vector<16x32xf32>, vector<32x128xf32>, vector<16x128xf32> -> vector<16x128xf32>
    %166 = vector.broadcast %24 : vector<1x128xf32> to vector<16x128xf32>
    %167 = arith.addf %165, %166 : vector<16x128xf32>
    %cst_106 = arith.constant 0.000000e+00 : f32
    %168 = vector.broadcast %cst_106 : f32 to vector<16x128xf32>
    %169 = arith.maximumf %167, %168 : vector<16x128xf32>
    %cst_107 = arith.constant dense<0.000000e+00> : vector<16x32xf32>
    %170 = tpu.matmul %169, %27, %cst_107 {dimension_numbers = #tpu.dot_dimension_numbers<[1], [0], [0], [1], [0, 0, 1, 1], [], []>} : vector<16x128xf32>, vector<128x32xf32>, vector<16x32xf32> -> vector<16x32xf32>
    %171 = vector.broadcast %25 : vector<1x32xf32> to vector<16x32xf32>
    %172 = arith.addf %170, %171 : vector<16x32xf32>
    %173 = vector.shape_cast %172 : vector<16x32xf32> to vector<2x8x32xf32>
    %174 = arith.addf %163, %173 : vector<2x8x32xf32>
    %cst_108 = arith.constant dense<0.000000e+00> : vector<2x8xf32>
    %175 = vector.multi_reduction <add>, %174, %cst_108 [2] : vector<2x8x32xf32> to vector<2x8xf32>
    %176 = vector.shape_cast %175 : vector<2x8xf32> to vector<2x8x1xf32>
    %cst_109 = arith.constant 3.200000e+01 : f32
    %177 = vector.broadcast %cst_109 : f32 to vector<2x8x1xf32>
    %178 = arith.divf %176, %177 : vector<2x8x1xf32>
    %179 = vector.broadcast %178 : vector<2x8x1xf32> to vector<2x8x32xf32>
    %180 = arith.subf %174, %179 : vector<2x8x32xf32>
    %181 = arith.mulf %180, %180 : vector<2x8x32xf32>
    %cst_110 = arith.constant dense<0.000000e+00> : vector<2x8xf32>
    %182 = vector.multi_reduction <add>, %181, %cst_110 [2] : vector<2x8x32xf32> to vector<2x8xf32>
    %183 = vector.shape_cast %182 : vector<2x8xf32> to vector<2x8x1xf32>
    %cst_111 = arith.constant 3.200000e+01 : f32
    %184 = vector.broadcast %cst_111 : f32 to vector<2x8x1xf32>
    %185 = arith.divf %183, %184 : vector<2x8x1xf32>
    %186 = vector.broadcast %178 : vector<2x8x1xf32> to vector<2x8x32xf32>
    %187 = arith.subf %174, %186 : vector<2x8x32xf32>
    %cst_112 = arith.constant 9.99999997E-7 : f32
    %188 = vector.broadcast %cst_112 : f32 to vector<2x8x1xf32>
    %189 = arith.addf %185, %188 : vector<2x8x1xf32>
    %190 = math.rsqrt %189 : vector<2x8x1xf32>
    %191 = vector.broadcast %190 : vector<2x8x1xf32> to vector<2x8x32xf32>
    %192 = arith.mulf %187, %191 : vector<2x8x32xf32>
    %193 = vector.shape_cast %31 : vector<1x32xf32> to vector<1x1x32xf32>
    %194 = vector.broadcast %193 : vector<1x1x32xf32> to vector<2x8x32xf32>
    %195 = arith.mulf %192, %194 : vector<2x8x32xf32>
    %196 = vector.shape_cast %30 : vector<1x32xf32> to vector<1x1x32xf32>
    %197 = vector.broadcast %196 : vector<1x1x32xf32> to vector<2x8x32xf32>
    %198 = arith.addf %195, %197 : vector<2x8x32xf32>
    %199 = vector.shape_cast %35 : vector<2x16x32xf32> to vector<32x32xf32>
    %cst_113 = arith.constant dense<0.000000e+00> : vector<32x96xf32>
    %200 = tpu.matmul %199, %21, %cst_113 {dimension_numbers = #tpu.dot_dimension_numbers<[1], [0], [0], [1], [0, 0, 1, 1], [], []>} : vector<32x32xf32>, vector<32x96xf32>, vector<32x96xf32> -> vector<32x96xf32>
    %201 = vector.broadcast %19 : vector<1x96xf32> to vector<32x96xf32>
    %202 = arith.addf %200, %201 : vector<32x96xf32>
    %203 = vector.shape_cast %202 : vector<32x96xf32> to vector<2x16x96xf32>
    %204 = vector.extract_strided_slice %203 {offsets = [0, 0, 0], sizes = [2, 16, 32], strides = [1, 1, 1]} : vector<2x16x96xf32> to vector<2x16x32xf32>
    %205 = vector.extract_strided_slice %203 {offsets = [0, 0, 32], sizes = [2, 16, 32], strides = [1, 1, 1]} : vector<2x16x96xf32> to vector<2x16x32xf32>
    %206 = vector.extract_strided_slice %203 {offsets = [0, 0, 64], sizes = [2, 16, 32], strides = [1, 1, 1]} : vector<2x16x96xf32> to vector<2x16x32xf32>
    %207 = vector.extract_strided_slice %204 {offsets = [0, 0, 0], sizes = [2, 16, 8], strides = [1, 1, 1]} : vector<2x16x32xf32> to vector<2x16x8xf32>
    %208 = vector.extract_strided_slice %205 {offsets = [0, 0, 0], sizes = [2, 16, 8], strides = [1, 1, 1]} : vector<2x16x32xf32> to vector<2x16x8xf32>
    %209 = vector.extract_strided_slice %206 {offsets = [0, 0, 0], sizes = [2, 16, 8], strides = [1, 1, 1]} : vector<2x16x32xf32> to vector<2x16x8xf32>
    "tpu.trace_start"() <{level = 10 : i32, message = "bqd,bkd->bqk"}> : () -> ()
    %cst_114 = arith.constant dense<0.000000e+00> : vector<2x16x16xf32>
    %210 = tpu.matmul %207, %208, %cst_114 {dimension_numbers = #tpu.dot_dimension_numbers<[2], [2], [1], [1], [0, 0, 0, 1, 1, 1], [0], [0]>} : vector<2x16x8xf32>, vector<2x16x8xf32>, vector<2x16x16xf32> -> vector<2x16x16xf32>
    "tpu.trace_stop"() : () -> ()
    %cst_115 = arith.constant 0.353553385 : f32
    %211 = vector.broadcast %cst_115 : f32 to vector<2x16x16xf32>
    %212 = arith.mulf %210, %211 : vector<2x16x16xf32>
    %cst_116 = arith.constant dense<0xFF800000> : vector<2x16xf32>
    %213 = vector.multi_reduction <maximumf>, %212, %cst_116 [2] : vector<2x16x16xf32> to vector<2x16xf32>
    %214 = vector.shape_cast %213 : vector<2x16xf32> to vector<2x16x1xf32>
    %215 = vector.broadcast %214 : vector<2x16x1xf32> to vector<2x16x16xf32>
    %216 = arith.subf %212, %215 : vector<2x16x16xf32>
    %217 = math.exp %216 : vector<2x16x16xf32>
    %cst_117 = arith.constant dense<0.000000e+00> : vector<2x16xf32>
    %218 = vector.multi_reduction <add>, %217, %cst_117 [2] : vector<2x16x16xf32> to vector<2x16xf32>
    %219 = vector.shape_cast %218 : vector<2x16xf32> to vector<2x16x1xf32>
    %220 = tpu.reciprocal %219 {approx = true} : vector<2x16x1xf32> -> vector<2x16x1xf32>
    %221 = vector.broadcast %220 : vector<2x16x1xf32> to vector<2x16x16xf32>
    %222 = arith.mulf %217, %221 : vector<2x16x16xf32>
    "tpu.trace_start"() <{level = 10 : i32, message = "bqk,bkd->bqd"}> : () -> ()
    %cst_118 = arith.constant dense<0.000000e+00> : vector<2x16x8xf32>
    %223 = tpu.matmul %222, %209, %cst_118 {dimension_numbers = #tpu.dot_dimension_numbers<[2], [1], [1], [2], [0, 0, 0, 1, 1, 2], [0], [0]>} : vector<2x16x16xf32>, vector<2x16x8xf32>, vector<2x16x8xf32> -> vector<2x16x8xf32>
    "tpu.trace_stop"() : () -> ()
    %224 = vector.shape_cast %223 : vector<2x16x8xf32> to vector<32x8xf32>
    %225 = vector.extract_strided_slice %20 {offsets = [0, 0], sizes = [8, 32], strides = [1, 1]} : vector<32x32xf32> to vector<8x32xf32>
    %cst_119 = arith.constant dense<0.000000e+00> : vector<32x32xf32>
    %226 = tpu.matmul %224, %225, %cst_119 {dimension_numbers = #tpu.dot_dimension_numbers<[1], [0], [0], [1], [0, 0, 1, 1], [], []>} : vector<32x8xf32>, vector<8x32xf32>, vector<32x32xf32> -> vector<32x32xf32>
    %227 = vector.extract_strided_slice %204 {offsets = [0, 0, 8], sizes = [2, 16, 8], strides = [1, 1, 1]} : vector<2x16x32xf32> to vector<2x16x8xf32>
    %228 = vector.extract_strided_slice %205 {offsets = [0, 0, 8], sizes = [2, 16, 8], strides = [1, 1, 1]} : vector<2x16x32xf32> to vector<2x16x8xf32>
    %229 = vector.extract_strided_slice %206 {offsets = [0, 0, 8], sizes = [2, 16, 8], strides = [1, 1, 1]} : vector<2x16x32xf32> to vector<2x16x8xf32>
    "tpu.trace_start"() <{level = 10 : i32, message = "bqd,bkd->bqk"}> : () -> ()
    %cst_120 = arith.constant dense<0.000000e+00> : vector<2x16x16xf32>
    %230 = tpu.matmul %227, %228, %cst_120 {dimension_numbers = #tpu.dot_dimension_numbers<[2], [2], [1], [1], [0, 0, 0, 1, 1, 1], [0], [0]>} : vector<2x16x8xf32>, vector<2x16x8xf32>, vector<2x16x16xf32> -> vector<2x16x16xf32>
    "tpu.trace_stop"() : () -> ()
    %cst_121 = arith.constant 0.353553385 : f32
    %231 = vector.broadcast %cst_121 : f32 to vector<2x16x16xf32>
    %232 = arith.mulf %230, %231 : vector<2x16x16xf32>
    %cst_122 = arith.constant dense<0xFF800000> : vector<2x16xf32>
    %233 = vector.multi_reduction <maximumf>, %232, %cst_122 [2] : vector<2x16x16xf32> to vector<2x16xf32>
    %234 = vector.shape_cast %233 : vector<2x16xf32> to vector<2x16x1xf32>
    %235 = vector.broadcast %234 : vector<2x16x1xf32> to vector<2x16x16xf32>
    %236 = arith.subf %232, %235 : vector<2x16x16xf32>
    %237 = math.exp %236 : vector<2x16x16xf32>
    %cst_123 = arith.constant dense<0.000000e+00> : vector<2x16xf32>
    %238 = vector.multi_reduction <add>, %237, %cst_123 [2] : vector<2x16x16xf32> to vector<2x16xf32>
    %239 = vector.shape_cast %238 : vector<2x16xf32> to vector<2x16x1xf32>
    %240 = tpu.reciprocal %239 {approx = true} : vector<2x16x1xf32> -> vector<2x16x1xf32>
    %241 = vector.broadcast %240 : vector<2x16x1xf32> to vector<2x16x16xf32>
    %242 = arith.mulf %237, %241 : vector<2x16x16xf32>
    "tpu.trace_start"() <{level = 10 : i32, message = "bqk,bkd->bqd"}> : () -> ()
    %cst_124 = arith.constant dense<0.000000e+00> : vector<2x16x8xf32>
    %243 = tpu.matmul %242, %229, %cst_124 {dimension_numbers = #tpu.dot_dimension_numbers<[2], [1], [1], [2], [0, 0, 0, 1, 1, 2], [0], [0]>} : vector<2x16x16xf32>, vector<2x16x8xf32>, vector<2x16x8xf32> -> vector<2x16x8xf32>
    "tpu.trace_stop"() : () -> ()
    %244 = vector.shape_cast %243 : vector<2x16x8xf32> to vector<32x8xf32>
    %245 = vector.extract_strided_slice %20 {offsets = [8, 0], sizes = [8, 32], strides = [1, 1]} : vector<32x32xf32> to vector<8x32xf32>
    %cst_125 = arith.constant dense<0.000000e+00> : vector<32x32xf32>
    %246 = tpu.matmul %244, %245, %cst_125 {dimension_numbers = #tpu.dot_dimension_numbers<[1], [0], [0], [1], [0, 0, 1, 1], [], []>} : vector<32x8xf32>, vector<8x32xf32>, vector<32x32xf32> -> vector<32x32xf32>
    %247 = arith.addf %226, %246 : vector<32x32xf32>
    %248 = vector.extract_strided_slice %204 {offsets = [0, 0, 16], sizes = [2, 16, 8], strides = [1, 1, 1]} : vector<2x16x32xf32> to vector<2x16x8xf32>
    %249 = vector.extract_strided_slice %205 {offsets = [0, 0, 16], sizes = [2, 16, 8], strides = [1, 1, 1]} : vector<2x16x32xf32> to vector<2x16x8xf32>
    %250 = vector.extract_strided_slice %206 {offsets = [0, 0, 16], sizes = [2, 16, 8], strides = [1, 1, 1]} : vector<2x16x32xf32> to vector<2x16x8xf32>
    "tpu.trace_start"() <{level = 10 : i32, message = "bqd,bkd->bqk"}> : () -> ()
    %cst_126 = arith.constant dense<0.000000e+00> : vector<2x16x16xf32>
    %251 = tpu.matmul %248, %249, %cst_126 {dimension_numbers = #tpu.dot_dimension_numbers<[2], [2], [1], [1], [0, 0, 0, 1, 1, 1], [0], [0]>} : vector<2x16x8xf32>, vector<2x16x8xf32>, vector<2x16x16xf32> -> vector<2x16x16xf32>
    "tpu.trace_stop"() : () -> ()
    %cst_127 = arith.constant 0.353553385 : f32
    %252 = vector.broadcast %cst_127 : f32 to vector<2x16x16xf32>
    %253 = arith.mulf %251, %252 : vector<2x16x16xf32>
    %cst_128 = arith.constant dense<0xFF800000> : vector<2x16xf32>
    %254 = vector.multi_reduction <maximumf>, %253, %cst_128 [2] : vector<2x16x16xf32> to vector<2x16xf32>
    %255 = vector.shape_cast %254 : vector<2x16xf32> to vector<2x16x1xf32>
    %256 = vector.broadcast %255 : vector<2x16x1xf32> to vector<2x16x16xf32>
    %257 = arith.subf %253, %256 : vector<2x16x16xf32>
    %258 = math.exp %257 : vector<2x16x16xf32>
    %cst_129 = arith.constant dense<0.000000e+00> : vector<2x16xf32>
    %259 = vector.multi_reduction <add>, %258, %cst_129 [2] : vector<2x16x16xf32> to vector<2x16xf32>
    %260 = vector.shape_cast %259 : vector<2x16xf32> to vector<2x16x1xf32>
    %261 = tpu.reciprocal %260 {approx = true} : vector<2x16x1xf32> -> vector<2x16x1xf32>
    %262 = vector.broadcast %261 : vector<2x16x1xf32> to vector<2x16x16xf32>
    %263 = arith.mulf %258, %262 : vector<2x16x16xf32>
    "tpu.trace_start"() <{level = 10 : i32, message = "bqk,bkd->bqd"}> : () -> ()
    %cst_130 = arith.constant dense<0.000000e+00> : vector<2x16x8xf32>
    %264 = tpu.matmul %263, %250, %cst_130 {dimension_numbers = #tpu.dot_dimension_numbers<[2], [1], [1], [2], [0, 0, 0, 1, 1, 2], [0], [0]>} : vector<2x16x16xf32>, vector<2x16x8xf32>, vector<2x16x8xf32> -> vector<2x16x8xf32>
    "tpu.trace_stop"() : () -> ()
    %265 = vector.shape_cast %264 : vector<2x16x8xf32> to vector<32x8xf32>
    %266 = vector.extract_strided_slice %20 {offsets = [16, 0], sizes = [8, 32], strides = [1, 1]} : vector<32x32xf32> to vector<8x32xf32>
    %cst_131 = arith.constant dense<0.000000e+00> : vector<32x32xf32>
    %267 = tpu.matmul %265, %266, %cst_131 {dimension_numbers = #tpu.dot_dimension_numbers<[1], [0], [0], [1], [0, 0, 1, 1], [], []>} : vector<32x8xf32>, vector<8x32xf32>, vector<32x32xf32> -> vector<32x32xf32>
    %268 = arith.addf %247, %267 : vector<32x32xf32>
    %269 = vector.extract_strided_slice %204 {offsets = [0, 0, 24], sizes = [2, 16, 8], strides = [1, 1, 1]} : vector<2x16x32xf32> to vector<2x16x8xf32>
    %270 = vector.extract_strided_slice %205 {offsets = [0, 0, 24], sizes = [2, 16, 8], strides = [1, 1, 1]} : vector<2x16x32xf32> to vector<2x16x8xf32>
    %271 = vector.extract_strided_slice %206 {offsets = [0, 0, 24], sizes = [2, 16, 8], strides = [1, 1, 1]} : vector<2x16x32xf32> to vector<2x16x8xf32>
    "tpu.trace_start"() <{level = 10 : i32, message = "bqd,bkd->bqk"}> : () -> ()
    %cst_132 = arith.constant dense<0.000000e+00> : vector<2x16x16xf32>
    %272 = tpu.matmul %269, %270, %cst_132 {dimension_numbers = #tpu.dot_dimension_numbers<[2], [2], [1], [1], [0, 0, 0, 1, 1, 1], [0], [0]>} : vector<2x16x8xf32>, vector<2x16x8xf32>, vector<2x16x16xf32> -> vector<2x16x16xf32>
    "tpu.trace_stop"() : () -> ()
    %cst_133 = arith.constant 0.353553385 : f32
    %273 = vector.broadcast %cst_133 : f32 to vector<2x16x16xf32>
    %274 = arith.mulf %272, %273 : vector<2x16x16xf32>
    %cst_134 = arith.constant dense<0xFF800000> : vector<2x16xf32>
    %275 = vector.multi_reduction <maximumf>, %274, %cst_134 [2] : vector<2x16x16xf32> to vector<2x16xf32>
    %276 = vector.shape_cast %275 : vector<2x16xf32> to vector<2x16x1xf32>
    %277 = vector.broadcast %276 : vector<2x16x1xf32> to vector<2x16x16xf32>
    %278 = arith.subf %274, %277 : vector<2x16x16xf32>
    %279 = math.exp %278 : vector<2x16x16xf32>
    %cst_135 = arith.constant dense<0.000000e+00> : vector<2x16xf32>
    %280 = vector.multi_reduction <add>, %279, %cst_135 [2] : vector<2x16x16xf32> to vector<2x16xf32>
    %281 = vector.shape_cast %280 : vector<2x16xf32> to vector<2x16x1xf32>
    %282 = tpu.reciprocal %281 {approx = true} : vector<2x16x1xf32> -> vector<2x16x1xf32>
    %283 = vector.broadcast %282 : vector<2x16x1xf32> to vector<2x16x16xf32>
    %284 = arith.mulf %279, %283 : vector<2x16x16xf32>
    "tpu.trace_start"() <{level = 10 : i32, message = "bqk,bkd->bqd"}> : () -> ()
    %cst_136 = arith.constant dense<0.000000e+00> : vector<2x16x8xf32>
    %285 = tpu.matmul %284, %271, %cst_136 {dimension_numbers = #tpu.dot_dimension_numbers<[2], [1], [1], [2], [0, 0, 0, 1, 1, 2], [0], [0]>} : vector<2x16x16xf32>, vector<2x16x8xf32>, vector<2x16x8xf32> -> vector<2x16x8xf32>
    "tpu.trace_stop"() : () -> ()
    %286 = vector.shape_cast %285 : vector<2x16x8xf32> to vector<32x8xf32>
    %287 = vector.extract_strided_slice %20 {offsets = [24, 0], sizes = [8, 32], strides = [1, 1]} : vector<32x32xf32> to vector<8x32xf32>
    %cst_137 = arith.constant dense<0.000000e+00> : vector<32x32xf32>
    %288 = tpu.matmul %286, %287, %cst_137 {dimension_numbers = #tpu.dot_dimension_numbers<[1], [0], [0], [1], [0, 0, 1, 1], [], []>} : vector<32x8xf32>, vector<8x32xf32>, vector<32x32xf32> -> vector<32x32xf32>
    %289 = arith.addf %268, %288 : vector<32x32xf32>
    %290 = vector.broadcast %18 : vector<1x32xf32> to vector<32x32xf32>
    %291 = arith.addf %289, %290 : vector<32x32xf32>
    %292 = vector.shape_cast %291 : vector<32x32xf32> to vector<2x16x32xf32>
    %293 = arith.addf %35, %292 : vector<2x16x32xf32>
    %cst_138 = arith.constant dense<0.000000e+00> : vector<2x16xf32>
    %294 = vector.multi_reduction <add>, %293, %cst_138 [2] : vector<2x16x32xf32> to vector<2x16xf32>
    %295 = vector.shape_cast %294 : vector<2x16xf32> to vector<2x16x1xf32>
    %cst_139 = arith.constant 3.200000e+01 : f32
    %296 = vector.broadcast %cst_139 : f32 to vector<2x16x1xf32>
    %297 = arith.divf %295, %296 : vector<2x16x1xf32>
    %298 = vector.broadcast %297 : vector<2x16x1xf32> to vector<2x16x32xf32>
    %299 = arith.subf %293, %298 : vector<2x16x32xf32>
    %300 = arith.mulf %299, %299 : vector<2x16x32xf32>
    %cst_140 = arith.constant dense<0.000000e+00> : vector<2x16xf32>
    %301 = vector.multi_reduction <add>, %300, %cst_140 [2] : vector<2x16x32xf32> to vector<2x16xf32>
    %302 = vector.shape_cast %301 : vector<2x16xf32> to vector<2x16x1xf32>
    %cst_141 = arith.constant 3.200000e+01 : f32
    %303 = vector.broadcast %cst_141 : f32 to vector<2x16x1xf32>
    %304 = arith.divf %302, %303 : vector<2x16x1xf32>
    %305 = vector.broadcast %297 : vector<2x16x1xf32> to vector<2x16x32xf32>
    %306 = arith.subf %293, %305 : vector<2x16x32xf32>
    %cst_142 = arith.constant 9.99999997E-7 : f32
    %307 = vector.broadcast %cst_142 : f32 to vector<2x16x1xf32>
    %308 = arith.addf %304, %307 : vector<2x16x1xf32>
    %309 = math.rsqrt %308 : vector<2x16x1xf32>
    %310 = vector.broadcast %309 : vector<2x16x1xf32> to vector<2x16x32xf32>
    %311 = arith.mulf %306, %310 : vector<2x16x32xf32>
    %312 = vector.shape_cast %13 : vector<1x32xf32> to vector<1x1x32xf32>
    %313 = vector.broadcast %312 : vector<1x1x32xf32> to vector<2x16x32xf32>
    %314 = arith.mulf %311, %313 : vector<2x16x32xf32>
    %315 = vector.shape_cast %12 : vector<1x32xf32> to vector<1x1x32xf32>
    %316 = vector.broadcast %315 : vector<1x1x32xf32> to vector<2x16x32xf32>
    %317 = arith.addf %314, %316 : vector<2x16x32xf32>
    %318 = vector.shape_cast %317 : vector<2x16x32xf32> to vector<32x32xf32>
    %cst_143 = arith.constant dense<0.000000e+00> : vector<32x32xf32>
    %319 = tpu.matmul %318, %11, %cst_143 {dimension_numbers = #tpu.dot_dimension_numbers<[1], [0], [0], [1], [0, 0, 1, 1], [], []>} : vector<32x32xf32>, vector<32x32xf32>, vector<32x32xf32> -> vector<32x32xf32>
    %320 = vector.broadcast %8 : vector<1x32xf32> to vector<32x32xf32>
    %321 = arith.addf %319, %320 : vector<32x32xf32>
    %322 = vector.shape_cast %321 : vector<32x32xf32> to vector<2x16x32xf32>
    %323 = vector.shape_cast %198 : vector<2x8x32xf32> to vector<16x32xf32>
    %cst_144 = arith.constant dense<0.000000e+00> : vector<16x64xf32>
    %324 = tpu.matmul %323, %9, %cst_144 {dimension_numbers = #tpu.dot_dimension_numbers<[1], [0], [0], [1], [0, 0, 1, 1], [], []>} : vector<16x32xf32>, vector<32x64xf32>, vector<16x64xf32> -> vector<16x64xf32>
    %325 = vector.broadcast %6 : vector<1x64xf32> to vector<16x64xf32>
    %326 = arith.addf %324, %325 : vector<16x64xf32>
    %327 = vector.shape_cast %326 : vector<16x64xf32> to vector<2x8x64xf32>
    %328 = vector.extract_strided_slice %327 {offsets = [0, 0, 0], sizes = [2, 8, 32], strides = [1, 1, 1]} : vector<2x8x64xf32> to vector<2x8x32xf32>
    %329 = vector.extract_strided_slice %327 {offsets = [0, 0, 32], sizes = [2, 8, 32], strides = [1, 1, 1]} : vector<2x8x64xf32> to vector<2x8x32xf32>
    %330 = vector.extract_strided_slice %322 {offsets = [0, 0, 0], sizes = [2, 16, 8], strides = [1, 1, 1]} : vector<2x16x32xf32> to vector<2x16x8xf32>
    %331 = vector.extract_strided_slice %328 {offsets = [0, 0, 0], sizes = [2, 8, 8], strides = [1, 1, 1]} : vector<2x8x32xf32> to vector<2x8x8xf32>
    %332 = vector.extract_strided_slice %329 {offsets = [0, 0, 0], sizes = [2, 8, 8], strides = [1, 1, 1]} : vector<2x8x32xf32> to vector<2x8x8xf32>
    "tpu.trace_start"() <{level = 10 : i32, message = "bqd,bkd->bqk"}> : () -> ()
    %cst_145 = arith.constant dense<0.000000e+00> : vector<2x16x8xf32>
    %333 = tpu.matmul %330, %331, %cst_145 {dimension_numbers = #tpu.dot_dimension_numbers<[2], [2], [1], [1], [0, 0, 0, 1, 1, 1], [0], [0]>} : vector<2x16x8xf32>, vector<2x8x8xf32>, vector<2x16x8xf32> -> vector<2x16x8xf32>
    "tpu.trace_stop"() : () -> ()
    %cst_146 = arith.constant 0.353553385 : f32
    %334 = vector.broadcast %cst_146 : f32 to vector<2x16x8xf32>
    %335 = arith.mulf %333, %334 : vector<2x16x8xf32>
    %336 = vector.broadcast %36 : vector<2x1x8xf32> to vector<2x16x8xf32>
    %337 = arith.addf %335, %336 : vector<2x16x8xf32>
    %cst_147 = arith.constant dense<0xFF800000> : vector<2x16xf32>
    %338 = vector.multi_reduction <maximumf>, %337, %cst_147 [2] : vector<2x16x8xf32> to vector<2x16xf32>
    %339 = vector.shape_cast %338 : vector<2x16xf32> to vector<2x16x1xf32>
    %340 = vector.broadcast %339 : vector<2x16x1xf32> to vector<2x16x8xf32>
    %341 = arith.subf %337, %340 : vector<2x16x8xf32>
    %342 = math.exp %341 : vector<2x16x8xf32>
    %cst_148 = arith.constant dense<0.000000e+00> : vector<2x16xf32>
    %343 = vector.multi_reduction <add>, %342, %cst_148 [2] : vector<2x16x8xf32> to vector<2x16xf32>
    %344 = vector.shape_cast %343 : vector<2x16xf32> to vector<2x16x1xf32>
    %345 = tpu.reciprocal %344 {approx = true} : vector<2x16x1xf32> -> vector<2x16x1xf32>
    %346 = vector.broadcast %345 : vector<2x16x1xf32> to vector<2x16x8xf32>
    %347 = arith.mulf %342, %346 : vector<2x16x8xf32>
    "tpu.trace_start"() <{level = 10 : i32, message = "bqk,bkd->bqd"}> : () -> ()
    %cst_149 = arith.constant dense<0.000000e+00> : vector<2x16x8xf32>
    %348 = tpu.matmul %347, %332, %cst_149 {dimension_numbers = #tpu.dot_dimension_numbers<[2], [1], [1], [2], [0, 0, 0, 1, 1, 2], [0], [0]>} : vector<2x16x8xf32>, vector<2x8x8xf32>, vector<2x16x8xf32> -> vector<2x16x8xf32>
    "tpu.trace_stop"() : () -> ()
    %349 = vector.shape_cast %348 : vector<2x16x8xf32> to vector<32x8xf32>
    %350 = vector.extract_strided_slice %10 {offsets = [0, 0], sizes = [8, 32], strides = [1, 1]} : vector<32x32xf32> to vector<8x32xf32>
    %cst_150 = arith.constant dense<0.000000e+00> : vector<32x32xf32>
    %351 = tpu.matmul %349, %350, %cst_150 {dimension_numbers = #tpu.dot_dimension_numbers<[1], [0], [0], [1], [0, 0, 1, 1], [], []>} : vector<32x8xf32>, vector<8x32xf32>, vector<32x32xf32> -> vector<32x32xf32>
    %352 = vector.extract_strided_slice %322 {offsets = [0, 0, 8], sizes = [2, 16, 8], strides = [1, 1, 1]} : vector<2x16x32xf32> to vector<2x16x8xf32>
    %353 = vector.extract_strided_slice %328 {offsets = [0, 0, 8], sizes = [2, 8, 8], strides = [1, 1, 1]} : vector<2x8x32xf32> to vector<2x8x8xf32>
    %354 = vector.extract_strided_slice %329 {offsets = [0, 0, 8], sizes = [2, 8, 8], strides = [1, 1, 1]} : vector<2x8x32xf32> to vector<2x8x8xf32>
    "tpu.trace_start"() <{level = 10 : i32, message = "bqd,bkd->bqk"}> : () -> ()
    %cst_151 = arith.constant dense<0.000000e+00> : vector<2x16x8xf32>
    %355 = tpu.matmul %352, %353, %cst_151 {dimension_numbers = #tpu.dot_dimension_numbers<[2], [2], [1], [1], [0, 0, 0, 1, 1, 1], [0], [0]>} : vector<2x16x8xf32>, vector<2x8x8xf32>, vector<2x16x8xf32> -> vector<2x16x8xf32>
    "tpu.trace_stop"() : () -> ()
    %cst_152 = arith.constant 0.353553385 : f32
    %356 = vector.broadcast %cst_152 : f32 to vector<2x16x8xf32>
    %357 = arith.mulf %355, %356 : vector<2x16x8xf32>
    %358 = vector.broadcast %36 : vector<2x1x8xf32> to vector<2x16x8xf32>
    %359 = arith.addf %357, %358 : vector<2x16x8xf32>
    %cst_153 = arith.constant dense<0xFF800000> : vector<2x16xf32>
    %360 = vector.multi_reduction <maximumf>, %359, %cst_153 [2] : vector<2x16x8xf32> to vector<2x16xf32>
    %361 = vector.shape_cast %360 : vector<2x16xf32> to vector<2x16x1xf32>
    %362 = vector.broadcast %361 : vector<2x16x1xf32> to vector<2x16x8xf32>
    %363 = arith.subf %359, %362 : vector<2x16x8xf32>
    %364 = math.exp %363 : vector<2x16x8xf32>
    %cst_154 = arith.constant dense<0.000000e+00> : vector<2x16xf32>
    %365 = vector.multi_reduction <add>, %364, %cst_154 [2] : vector<2x16x8xf32> to vector<2x16xf32>
    %366 = vector.shape_cast %365 : vector<2x16xf32> to vector<2x16x1xf32>
    %367 = tpu.reciprocal %366 {approx = true} : vector<2x16x1xf32> -> vector<2x16x1xf32>
    %368 = vector.broadcast %367 : vector<2x16x1xf32> to vector<2x16x8xf32>
    %369 = arith.mulf %364, %368 : vector<2x16x8xf32>
    "tpu.trace_start"() <{level = 10 : i32, message = "bqk,bkd->bqd"}> : () -> ()
    %cst_155 = arith.constant dense<0.000000e+00> : vector<2x16x8xf32>
    %370 = tpu.matmul %369, %354, %cst_155 {dimension_numbers = #tpu.dot_dimension_numbers<[2], [1], [1], [2], [0, 0, 0, 1, 1, 2], [0], [0]>} : vector<2x16x8xf32>, vector<2x8x8xf32>, vector<2x16x8xf32> -> vector<2x16x8xf32>
    "tpu.trace_stop"() : () -> ()
    %371 = vector.shape_cast %370 : vector<2x16x8xf32> to vector<32x8xf32>
    %372 = vector.extract_strided_slice %10 {offsets = [8, 0], sizes = [8, 32], strides = [1, 1]} : vector<32x32xf32> to vector<8x32xf32>
    %cst_156 = arith.constant dense<0.000000e+00> : vector<32x32xf32>
    %373 = tpu.matmul %371, %372, %cst_156 {dimension_numbers = #tpu.dot_dimension_numbers<[1], [0], [0], [1], [0, 0, 1, 1], [], []>} : vector<32x8xf32>, vector<8x32xf32>, vector<32x32xf32> -> vector<32x32xf32>
    %374 = arith.addf %351, %373 : vector<32x32xf32>
    %375 = vector.extract_strided_slice %322 {offsets = [0, 0, 16], sizes = [2, 16, 8], strides = [1, 1, 1]} : vector<2x16x32xf32> to vector<2x16x8xf32>
    %376 = vector.extract_strided_slice %328 {offsets = [0, 0, 16], sizes = [2, 8, 8], strides = [1, 1, 1]} : vector<2x8x32xf32> to vector<2x8x8xf32>
    %377 = vector.extract_strided_slice %329 {offsets = [0, 0, 16], sizes = [2, 8, 8], strides = [1, 1, 1]} : vector<2x8x32xf32> to vector<2x8x8xf32>
    "tpu.trace_start"() <{level = 10 : i32, message = "bqd,bkd->bqk"}> : () -> ()
    %cst_157 = arith.constant dense<0.000000e+00> : vector<2x16x8xf32>
    %378 = tpu.matmul %375, %376, %cst_157 {dimension_numbers = #tpu.dot_dimension_numbers<[2], [2], [1], [1], [0, 0, 0, 1, 1, 1], [0], [0]>} : vector<2x16x8xf32>, vector<2x8x8xf32>, vector<2x16x8xf32> -> vector<2x16x8xf32>
    "tpu.trace_stop"() : () -> ()
    %cst_158 = arith.constant 0.353553385 : f32
    %379 = vector.broadcast %cst_158 : f32 to vector<2x16x8xf32>
    %380 = arith.mulf %378, %379 : vector<2x16x8xf32>
    %381 = vector.broadcast %36 : vector<2x1x8xf32> to vector<2x16x8xf32>
    %382 = arith.addf %380, %381 : vector<2x16x8xf32>
    %cst_159 = arith.constant dense<0xFF800000> : vector<2x16xf32>
    %383 = vector.multi_reduction <maximumf>, %382, %cst_159 [2] : vector<2x16x8xf32> to vector<2x16xf32>
    %384 = vector.shape_cast %383 : vector<2x16xf32> to vector<2x16x1xf32>
    %385 = vector.broadcast %384 : vector<2x16x1xf32> to vector<2x16x8xf32>
    %386 = arith.subf %382, %385 : vector<2x16x8xf32>
    %387 = math.exp %386 : vector<2x16x8xf32>
    %cst_160 = arith.constant dense<0.000000e+00> : vector<2x16xf32>
    %388 = vector.multi_reduction <add>, %387, %cst_160 [2] : vector<2x16x8xf32> to vector<2x16xf32>
    %389 = vector.shape_cast %388 : vector<2x16xf32> to vector<2x16x1xf32>
    %390 = tpu.reciprocal %389 {approx = true} : vector<2x16x1xf32> -> vector<2x16x1xf32>
    %391 = vector.broadcast %390 : vector<2x16x1xf32> to vector<2x16x8xf32>
    %392 = arith.mulf %387, %391 : vector<2x16x8xf32>
    "tpu.trace_start"() <{level = 10 : i32, message = "bqk,bkd->bqd"}> : () -> ()
    %cst_161 = arith.constant dense<0.000000e+00> : vector<2x16x8xf32>
    %393 = tpu.matmul %392, %377, %cst_161 {dimension_numbers = #tpu.dot_dimension_numbers<[2], [1], [1], [2], [0, 0, 0, 1, 1, 2], [0], [0]>} : vector<2x16x8xf32>, vector<2x8x8xf32>, vector<2x16x8xf32> -> vector<2x16x8xf32>
    "tpu.trace_stop"() : () -> ()
    %394 = vector.shape_cast %393 : vector<2x16x8xf32> to vector<32x8xf32>
    %395 = vector.extract_strided_slice %10 {offsets = [16, 0], sizes = [8, 32], strides = [1, 1]} : vector<32x32xf32> to vector<8x32xf32>
    %cst_162 = arith.constant dense<0.000000e+00> : vector<32x32xf32>
    %396 = tpu.matmul %394, %395, %cst_162 {dimension_numbers = #tpu.dot_dimension_numbers<[1], [0], [0], [1], [0, 0, 1, 1], [], []>} : vector<32x8xf32>, vector<8x32xf32>, vector<32x32xf32> -> vector<32x32xf32>
    %397 = arith.addf %374, %396 : vector<32x32xf32>
    %398 = vector.extract_strided_slice %322 {offsets = [0, 0, 24], sizes = [2, 16, 8], strides = [1, 1, 1]} : vector<2x16x32xf32> to vector<2x16x8xf32>
    %399 = vector.extract_strided_slice %328 {offsets = [0, 0, 24], sizes = [2, 8, 8], strides = [1, 1, 1]} : vector<2x8x32xf32> to vector<2x8x8xf32>
    %400 = vector.extract_strided_slice %329 {offsets = [0, 0, 24], sizes = [2, 8, 8], strides = [1, 1, 1]} : vector<2x8x32xf32> to vector<2x8x8xf32>
    "tpu.trace_start"() <{level = 10 : i32, message = "bqd,bkd->bqk"}> : () -> ()
    %cst_163 = arith.constant dense<0.000000e+00> : vector<2x16x8xf32>
    %401 = tpu.matmul %398, %399, %cst_163 {dimension_numbers = #tpu.dot_dimension_numbers<[2], [2], [1], [1], [0, 0, 0, 1, 1, 1], [0], [0]>} : vector<2x16x8xf32>, vector<2x8x8xf32>, vector<2x16x8xf32> -> vector<2x16x8xf32>
    "tpu.trace_stop"() : () -> ()
    %cst_164 = arith.constant 0.353553385 : f32
    %402 = vector.broadcast %cst_164 : f32 to vector<2x16x8xf32>
    %403 = arith.mulf %401, %402 : vector<2x16x8xf32>
    %404 = vector.broadcast %36 : vector<2x1x8xf32> to vector<2x16x8xf32>
    %405 = arith.addf %403, %404 : vector<2x16x8xf32>
    %cst_165 = arith.constant dense<0xFF800000> : vector<2x16xf32>
    %406 = vector.multi_reduction <maximumf>, %405, %cst_165 [2] : vector<2x16x8xf32> to vector<2x16xf32>
    %407 = vector.shape_cast %406 : vector<2x16xf32> to vector<2x16x1xf32>
    %408 = vector.broadcast %407 : vector<2x16x1xf32> to vector<2x16x8xf32>
    %409 = arith.subf %405, %408 : vector<2x16x8xf32>
    %410 = math.exp %409 : vector<2x16x8xf32>
    %cst_166 = arith.constant dense<0.000000e+00> : vector<2x16xf32>
    %411 = vector.multi_reduction <add>, %410, %cst_166 [2] : vector<2x16x8xf32> to vector<2x16xf32>
    %412 = vector.shape_cast %411 : vector<2x16xf32> to vector<2x16x1xf32>
    %413 = tpu.reciprocal %412 {approx = true} : vector<2x16x1xf32> -> vector<2x16x1xf32>
    %414 = vector.broadcast %413 : vector<2x16x1xf32> to vector<2x16x8xf32>
    %415 = arith.mulf %410, %414 : vector<2x16x8xf32>
    "tpu.trace_start"() <{level = 10 : i32, message = "bqk,bkd->bqd"}> : () -> ()
    %cst_167 = arith.constant dense<0.000000e+00> : vector<2x16x8xf32>
    %416 = tpu.matmul %415, %400, %cst_167 {dimension_numbers = #tpu.dot_dimension_numbers<[2], [1], [1], [2], [0, 0, 0, 1, 1, 2], [0], [0]>} : vector<2x16x8xf32>, vector<2x8x8xf32>, vector<2x16x8xf32> -> vector<2x16x8xf32>
    "tpu.trace_stop"() : () -> ()
    %417 = vector.shape_cast %416 : vector<2x16x8xf32> to vector<32x8xf32>
    %418 = vector.extract_strided_slice %10 {offsets = [24, 0], sizes = [8, 32], strides = [1, 1]} : vector<32x32xf32> to vector<8x32xf32>
    %cst_168 = arith.constant dense<0.000000e+00> : vector<32x32xf32>
    %419 = tpu.matmul %417, %418, %cst_168 {dimension_numbers = #tpu.dot_dimension_numbers<[1], [0], [0], [1], [0, 0, 1, 1], [], []>} : vector<32x8xf32>, vector<8x32xf32>, vector<32x32xf32> -> vector<32x32xf32>
    %420 = arith.addf %397, %419 : vector<32x32xf32>
    %421 = vector.broadcast %7 : vector<1x32xf32> to vector<32x32xf32>
    %422 = arith.addf %420, %421 : vector<32x32xf32>
    %423 = vector.shape_cast %422 : vector<32x32xf32> to vector<2x16x32xf32>
    %424 = arith.addf %317, %423 : vector<2x16x32xf32>
    %cst_169 = arith.constant dense<0.000000e+00> : vector<2x16xf32>
    %425 = vector.multi_reduction <add>, %424, %cst_169 [2] : vector<2x16x32xf32> to vector<2x16xf32>
    %426 = vector.shape_cast %425 : vector<2x16xf32> to vector<2x16x1xf32>
    %cst_170 = arith.constant 3.200000e+01 : f32
    %427 = vector.broadcast %cst_170 : f32 to vector<2x16x1xf32>
    %428 = arith.divf %426, %427 : vector<2x16x1xf32>
    %429 = vector.broadcast %428 : vector<2x16x1xf32> to vector<2x16x32xf32>
    %430 = arith.subf %424, %429 : vector<2x16x32xf32>
    %431 = arith.mulf %430, %430 : vector<2x16x32xf32>
    %cst_171 = arith.constant dense<0.000000e+00> : vector<2x16xf32>
    %432 = vector.multi_reduction <add>, %431, %cst_171 [2] : vector<2x16x32xf32> to vector<2x16xf32>
    %433 = vector.shape_cast %432 : vector<2x16xf32> to vector<2x16x1xf32>
    %cst_172 = arith.constant 3.200000e+01 : f32
    %434 = vector.broadcast %cst_172 : f32 to vector<2x16x1xf32>
    %435 = arith.divf %433, %434 : vector<2x16x1xf32>
    %436 = vector.broadcast %428 : vector<2x16x1xf32> to vector<2x16x32xf32>
    %437 = arith.subf %424, %436 : vector<2x16x32xf32>
    %cst_173 = arith.constant 9.99999997E-7 : f32
    %438 = vector.broadcast %cst_173 : f32 to vector<2x16x1xf32>
    %439 = arith.addf %435, %438 : vector<2x16x1xf32>
    %440 = math.rsqrt %439 : vector<2x16x1xf32>
    %441 = vector.broadcast %440 : vector<2x16x1xf32> to vector<2x16x32xf32>
    %442 = arith.mulf %437, %441 : vector<2x16x32xf32>
    %443 = vector.shape_cast %15 : vector<1x32xf32> to vector<1x1x32xf32>
    %444 = vector.broadcast %443 : vector<1x1x32xf32> to vector<2x16x32xf32>
    %445 = arith.mulf %442, %444 : vector<2x16x32xf32>
    %446 = vector.shape_cast %14 : vector<1x32xf32> to vector<1x1x32xf32>
    %447 = vector.broadcast %446 : vector<1x1x32xf32> to vector<2x16x32xf32>
    %448 = arith.addf %445, %447 : vector<2x16x32xf32>
    %449 = vector.shape_cast %448 : vector<2x16x32xf32> to vector<32x32xf32>
    %cst_174 = arith.constant dense<0.000000e+00> : vector<32x128xf32>
    %450 = tpu.matmul %449, %4, %cst_174 {dimension_numbers = #tpu.dot_dimension_numbers<[1], [0], [0], [1], [0, 0, 1, 1], [], []>} : vector<32x32xf32>, vector<32x128xf32>, vector<32x128xf32> -> vector<32x128xf32>
    %451 = vector.broadcast %2 : vector<1x128xf32> to vector<32x128xf32>
    %452 = arith.addf %450, %451 : vector<32x128xf32>
    %cst_175 = arith.constant 0.000000e+00 : f32
    %453 = vector.broadcast %cst_175 : f32 to vector<32x128xf32>
    %454 = arith.maximumf %452, %453 : vector<32x128xf32>
    %cst_176 = arith.constant dense<0.000000e+00> : vector<32x32xf32>
    %455 = tpu.matmul %454, %5, %cst_176 {dimension_numbers = #tpu.dot_dimension_numbers<[1], [0], [0], [1], [0, 0, 1, 1], [], []>} : vector<32x128xf32>, vector<128x32xf32>, vector<32x32xf32> -> vector<32x32xf32>
    %456 = vector.broadcast %3 : vector<1x32xf32> to vector<32x32xf32>
    %457 = arith.addf %455, %456 : vector<32x32xf32>
    %458 = vector.shape_cast %457 : vector<32x32xf32> to vector<2x16x32xf32>
    %459 = arith.addf %448, %458 : vector<2x16x32xf32>
    %cst_177 = arith.constant dense<0.000000e+00> : vector<2x16xf32>
    %460 = vector.multi_reduction <add>, %459, %cst_177 [2] : vector<2x16x32xf32> to vector<2x16xf32>
    %461 = vector.shape_cast %460 : vector<2x16xf32> to vector<2x16x1xf32>
    %cst_178 = arith.constant 3.200000e+01 : f32
    %462 = vector.broadcast %cst_178 : f32 to vector<2x16x1xf32>
    %463 = arith.divf %461, %462 : vector<2x16x1xf32>
    %464 = vector.broadcast %463 : vector<2x16x1xf32> to vector<2x16x32xf32>
    %465 = arith.subf %459, %464 : vector<2x16x32xf32>
    %466 = arith.mulf %465, %465 : vector<2x16x32xf32>
    %cst_179 = arith.constant dense<0.000000e+00> : vector<2x16xf32>
    %467 = vector.multi_reduction <add>, %466, %cst_179 [2] : vector<2x16x32xf32> to vector<2x16xf32>
    %468 = vector.shape_cast %467 : vector<2x16xf32> to vector<2x16x1xf32>
    %cst_180 = arith.constant 3.200000e+01 : f32
    %469 = vector.broadcast %cst_180 : f32 to vector<2x16x1xf32>
    %470 = arith.divf %468, %469 : vector<2x16x1xf32>
    %471 = vector.broadcast %463 : vector<2x16x1xf32> to vector<2x16x32xf32>
    %472 = arith.subf %459, %471 : vector<2x16x32xf32>
    %cst_181 = arith.constant 9.99999997E-7 : f32
    %473 = vector.broadcast %cst_181 : f32 to vector<2x16x1xf32>
    %474 = arith.addf %470, %473 : vector<2x16x1xf32>
    %475 = math.rsqrt %474 : vector<2x16x1xf32>
    %476 = vector.broadcast %475 : vector<2x16x1xf32> to vector<2x16x32xf32>
    %477 = arith.mulf %472, %476 : vector<2x16x32xf32>
    %478 = vector.shape_cast %17 : vector<1x32xf32> to vector<1x1x32xf32>
    %479 = vector.broadcast %478 : vector<1x1x32xf32> to vector<2x16x32xf32>
    %480 = arith.mulf %477, %479 : vector<2x16x32xf32>
    %481 = vector.shape_cast %16 : vector<1x32xf32> to vector<1x1x32xf32>
    %482 = vector.broadcast %481 : vector<1x1x32xf32> to vector<2x16x32xf32>
    %483 = arith.addf %480, %482 : vector<2x16x32xf32>
    %cst_182 = arith.constant dense<0.000000e+00> : vector<2x32xf32>
    %484 = vector.multi_reduction <add>, %198, %cst_182 [1] : vector<2x8x32xf32> to vector<2x32xf32>
    %cst_183 = arith.constant 8.000000e+00 : f32
    %485 = vector.broadcast %cst_183 : f32 to vector<2x32xf32>
    %486 = arith.divf %484, %485 : vector<2x32xf32>
    %cst_184 = arith.constant dense<0.000000e+00> : vector<2x32xf32>
    %487 = vector.multi_reduction <add>, %483, %cst_184 [1] : vector<2x16x32xf32> to vector<2x32xf32>
    %cst_185 = arith.constant 1.600000e+01 : f32
    %488 = vector.broadcast %cst_185 : f32 to vector<2x32xf32>
    %489 = arith.divf %487, %488 : vector<2x32xf32>
    %490 = arith.addf %486, %489 : vector<2x32xf32>
    %cst_186 = arith.constant dense<0.000000e+00> : vector<2x128xf32>
    %491 = tpu.matmul %490, %1, %cst_186 {dimension_numbers = #tpu.dot_dimension_numbers<[1], [0], [0], [1], [0, 0, 1, 1], [], []>} : vector<2x32xf32>, vector<32x128xf32>, vector<2x128xf32> -> vector<2x128xf32>
    %492 = vector.broadcast %0 : vector<1x128xf32> to vector<2x128xf32>
    %493 = arith.addf %491, %492 : vector<2x128xf32>
    %c0_187 = arith.constant 0 : index
    %c0_188 = arith.constant 0 : index
    %494 = vector.load %arg37[%c0_187, %c0_188] : memref<2x128xf32, #tpu.memory_space<vmem>>, vector<2x128xf32>
    tpu.vector_store %arg37[%c0_187, %c0_188], %493 {strides = array<i32>} : memref<2x128xf32, #tpu.memory_space<vmem>>, vector<2x128xf32>,
    %c0_189 = arith.constant 0 : index
    %c0_190 = arith.constant 0 : index
    %495 = vector.load %arg38[%c0_189, %c0_190] : memref<2x32xf32, #tpu.memory_space<vmem>>, vector<2x32xf32>
    tpu.vector_store %arg38[%c0_189, %c0_190], %486 {strides = array<i32>} : memref<2x32xf32, #tpu.memory_space<vmem>>, vector<2x32xf32>,
    %c0_191 = arith.constant 0 : index
    %c0_192 = arith.constant 0 : index
    %496 = vector.load %arg39[%c0_191, %c0_192] : memref<2x32xf32, #tpu.memory_space<vmem>>, vector<2x32xf32>
    tpu.vector_store %arg39[%c0_191, %c0_192], %489 {strides = array<i32>} : memref<2x32xf32, #tpu.memory_space<vmem>>, vector<2x32xf32>,
    return
  }
}

</mosaic_0001>

<bundles_post_ra>
// kernel: fed_forward.1
= control target key start
LH: loop header
LB: loop body
LE: loop exit
PB: predicated region body
PF: predicated region fallthrough
CT: control target
= control target key end

     0   :  { %s9305_s6 = smov 1   ;;  %s9306_s10 = smov 2   ;;  %s10524_s0 = inlined_call_operand.smem [shape: u32[40], index: -1, kind: input, shape index: {}] }
   0x1   :  { %s9383_s5 = sld [smem:[%s10524_s0]]   ;;  %s9307_s14 = smov 3  }
   0x2   :  { %s9388_s9 = sld [smem:[%s10524_s0 + %s9305_s6]]   ;;  %s9308_s18 = smov 4  }
   0x3   :  { %s9393_s13 = sld [smem:[%s10524_s0 + %s9306_s10]]   ;;  %s9309_s22 = smov 5  }
   0x4   :  { %s9398_s17 = sld [smem:[%s10524_s0 + %s9307_s14]]   ;;  %s9310_s26 = smov 6  }
   0x5   :  { %s9403_s21 = sld [smem:[%s10524_s0 + %s9308_s18]]   ;;  %s9311_s30 = smov 7  }
   0x6   :  { %s9408_s25 = sld [smem:[%s10524_s0 + %s9309_s22]]   ;;  %s9312_s4 = smov 8  }
   0x7   :  { %s9413_s29 = sld [smem:[%s10524_s0 + %s9310_s26]]   ;;  %s9313_s10 = smov 9  }
   0x8   :  { %s9418_s3 = sld [smem:[%s10524_s0 + %s9311_s30]]   ;;  %s9314_s15 = smov 10  }
   0x9   :  { %s9423_s8 = sld [smem:[%s10524_s0 + %s9312_s4]]   ;;  %s9315_s20 = smov 11  }
   0xa   :  { %10526 = sst [smem:[#allocation35_spill]] %s9398_s17  ;;  %s9316_s26 = smov 12  }
   0xb   :  { %s9428_s14 = sld [smem:[%s10524_s0 + %s9313_s10]]   ;;  %s9317_s1 = smov 13  }
   0xc   :  { %10527 = sst [smem:[#allocation36_spill]] %s9408_s25  ;;  %s9318_s7 = smov 14  }
   0xd   :  { %10528 = sst [smem:[#allocation37_spill]] %s9413_s29  ;;  %s9320_s22 = smov 16  }
   0xe   :  { %s9433_s19 = sld [smem:[%s10524_s0 + %s9314_s15]]   ;;  %s9319_s15 = smov 15  }
   0xf   :  { %s9438_s24 = sld [smem:[%s10524_s0 + %s9315_s20]]   ;;  %s9321_s28 = smov 17  }
  0x10   :  { %s9443_s30 = sld [smem:[%s10524_s0 + %s9316_s26]]  }
  0x11   :  { %10529 = sst [smem:[#allocation38_spill]] %s9428_s14 }
  0x12   :  { %s9448_s6 = sld [smem:[%s10524_s0 + %s9317_s1]]  }
  0x13   :  { %s9453_s12 = sld [smem:[%s10524_s0 + %s9318_s7]]   ;;  %s9322_s7 = smov 18  }
  0x14   :  { %10530 = sst [smem:[#allocation39_spill]] %s9433_s19 }
  0x15   :  { %10531 = sst [smem:[#allocation40_spill]] %s9438_s24 }
  0x16   :  { %s9458_s20 = sld [smem:[%s10524_s0 + %s9319_s15]]   ;;  %s9323_s15 = smov 19  }
  0x17   :  { %s9463_s27 = sld [smem:[%s10524_s0 + %s9320_s22]]   ;;  %s9324_s22 = smov 20  }
  0x18   :  { %s9468_s4 = sld [smem:[%s10524_s0 + %s9321_s28]]   ;;  %s9325_s28 = smov 21  }
  0x19   :  { %s9473_s17 = sld [smem:[%s10524_s0 + %s9322_s7]]   ;;  %s9326_s7 = smov 22  }
  0x1a   :  { %s9478_s29 = sld [smem:[%s10524_s0 + %s9323_s15]]   ;;  %s9327_s15 = smov 23  }
  0x1b   :  { %s9483_s25 = sld [smem:[%s10524_s0 + %s9324_s22]]   ;;  %s9328_s22 = smov 24  }
  0x1c   :  { %10532 = sst [smem:[#allocation41_spill]] %s9458_s20 }
  0x1d   :  { %10533 = sst [smem:[#allocation42_spill]] %s9463_s27 }
  0x1e   :  { %10534 = sst [smem:[#allocation43_spill]] %s9468_s4 }
  0x1f   :  { %10535 = sst [smem:[#allocation44_spill]] %s9473_s17 }
  0x20   :  { %10536 = sst [smem:[#allocation45_spill]] %s9478_s29 }
  0x21   :  { %10537 = sst [smem:[#allocation46_spill]] %s9483_s25 }
  0x22   :  { %s9488_s4 = sld [smem:[%s10524_s0 + %s9325_s28]]   ;;  %s9329_s28 = smov 25  }
  0x23   :  { %s9493_s17 = sld [smem:[%s10524_s0 + %s9326_s7]]   ;;  %s9330_s7 = smov 26  }
  0x24   :  { %s9498_s29 = sld [smem:[%s10524_s0 + %s9327_s15]]   ;;  %s9331_s15 = smov 27  }
  0x25   :  { %s9503_s25 = sld [smem:[%s10524_s0 + %s9328_s22]]   ;;  %s9332_s22 = smov 28  }
  0x26   :  { %s9508_s19 = sld [smem:[%s10524_s0 + %s9329_s28]]   ;;  %s9333_s28 = smov 29  }
  0x27   :  { %s9513_s14 = sld [smem:[%s10524_s0 + %s9330_s7]]   ;;  %s9334_s7 = smov 30  }
  0x28   :  { %10538 = sst [smem:[#allocation47_spill]] %s9488_s4 }
  0x29   :  { %10539 = sst [smem:[#allocation48_spill]] %s9493_s17 }
  0x2a   :  { %s9518_s24 = sld [smem:[%s10524_s0 + %s9331_s15]]   ;;  %s9335_s15 = smov 31  }
  0x2b   :  { %s9523_s20 = sld [smem:[%s10524_s0 + %s9332_s22]]   ;;  %s9336_s22 = smov 32  }
  0x2c   :  { %10540 = sst [smem:[#allocation49_spill]] %s9508_s19 }
  0x2d   :  { %s9528_s27 = sld [smem:[%s10524_s0 + %s9333_s28]]   ;;  %s9337_s28 = smov 33  }
  0x2e   :  { %s9533_s4 = sld [smem:[%s10524_s0 + %s9334_s7]]   ;;  %s9338_s7 = smov 34  }
  0x2f   :  { %s9538_s17 = sld [smem:[%s10524_s0 + %s9335_s15]]   ;;  %s9339_s15 = smov 35  }
  0x30   :  { %10541 = sst [smem:[#allocation50_spill]] %s9518_s24 }
  0x31   :  { %10542 = sst [smem:[#allocation51_spill]] %s9523_s20 }
  0x32   :  { %s9543_s20 = sld [smem:[%s10524_s0 + %s9336_s22]]   ;;  %s9340_s22 = smov 36  }
  0x33   :  { %s9548_s24 = sld [smem:[%s10524_s0 + %s9337_s28]]   ;;  %s9341_s28 = smov 37  }
  0x34   :  { %s9553_s19 = sld [smem:[%s10524_s0 + %s9338_s7]]   ;;  %s9342_s7 = smov 38  }
  0x35   :  { %10543 = sst [smem:[#allocation52_spill]] %s9538_s17 }
  0x36   :  { %s9558_s17 = sld [smem:[%s10524_s0 + %s9339_s15]]   ;;  %s9343_s15 = smov 39  }
  0x38   :  { %10544 = sst [smem:[#allocation53_spill]] %s9543_s20 }
  0x39   :  { %10545 = sst [smem:[#allocation54_spill]] %s9548_s24 }
  0x3a   :  { %10546 = sst [smem:[#allocation55_spill]] %s9553_s19 }
  0x3b   :  { %s9563_s20 = sld [smem:[%s10524_s0 + %s9340_s22]]  }
  0x3c   :  { %10547 = sst [smem:[#allocation56_spill]] %s9558_s17 }
  0x3d   :  { %s9568_s24 = sld [smem:[%s10524_s0 + %s9341_s28]]  }
  0x3e   :  { %s9573_s19 = sld [smem:[%s10524_s0 + %s9342_s7]]  }
  0x3f   :  { %s9578_s17 = sld [smem:[%s10524_s0 + %s9343_s15]]  }
  0x40   :  { %85 = vsyncpa [#allocation3], 0 }
  0x41   :  { %86 = vsyncpa [#allocation6], 0 }
  0x42   :  { %87 = vsyncpa [#allocation9], 0 }
  0x43   :  { %88 = vsyncpa [#allocation12], 0 }
  0x44   :  { %89 = vsyncpa [#allocation15], 0 }
  0x45   :  { %90 = vsyncpa [#allocation18], 0 }
  0x46   :  { %91 = vsyncpa [#allocation21], 0 }
  0x47   :  { %92 = vsyncpa [#allocation4], 0 }
  0x48   :  { %93 = vsyncpa [#allocation24], 0  ;;  %s9344_s22 = smov [#allocation5]   ;;  %s9345_s26 = smov [#allocation8]  }
  0x49   :  { %s111_s23 = sshll.u32 %s9344_s22, 4  ;;  %s143_s28 = sshll.u32 %s9345_s26, 4  ;;  %s112_s23 = int_to_ptr.vmem [resolvable:$true] %s111_s23  ;;  %s9580_s28 = int_to_ptr.vmem [resolvable:$true] %s143_s28 }
  0x4a   :  { %s8957_s0 = scalar_lea.hbm %s9388_s9, 512 }
  0x4b   :  { %p8958_p0 = scmp.ne.s32.totalorder %s9388_s9, %s8957_s0  ;;  %p8961_p1 = scmp.lt.u32.totalorder %s8957_s0, %s9388_s9 }
  0x4d   :  { %p8963_p2 = pnand %p8961_p1, %p8958_p0 }
  0x4f   :  { %8966 = shalt.err (!%p8963_p2)
}
  0x50   :  { %s8967_s1 = scalar_lea.vmem %s112_s23, 512  ;;  %p8972_p4 = scmp.lt.s32.totalorder %s112_s23, %s112_s23 }
  0x51   :  { %p8968_p3 = scmp.ne.s32.totalorder %s112_s23, %s8967_s1  ;;  %p8973_p5 = scmp.lt.s32.totalorder %s8967_s1, %s8967_s1 }
  0x53   :  { %p8974_p6 = por %p8973_p5, %p8972_p4 }
  0x55   :  { %p8975_p7 = pnand %p8974_p6, %p8968_p3 }
  0x57   :  { %8978 = shalt.err (!%p8975_p7)
}
  0x58   :  { %s9346_s2 = smov 128   ;;  %s9347_s7 = smov 8  }
  0x59   :  { %117 = dma.hbm_to_vmem [thread:$0]  %s9388_s9, 512, %s112_s23, [#allocation6], %s9346_s2, %s9346_s2, %s9347_s7  }
  0x5a   :  { %s8979_s10 = scalar_lea.hbm %s9418_s3, 512 }
  0x5b   :  { %p8980_p8 = scmp.ne.s32.totalorder %s9418_s3, %s8979_s10  ;;  %p8983_p9 = scmp.lt.u32.totalorder %s8979_s10, %s9418_s3 }
  0x5d   :  { %p8985_p10 = pnand %p8983_p9, %p8980_p8 }
  0x5f   :  { %8988 = shalt.err (!%p8985_p10)
}
  0x60   :  { %s8989_s11 = scalar_lea.vmem %s9580_s28, 512  ;;  %p8994_p12 = scmp.lt.s32.totalorder %s9580_s28, %s9580_s28 }
  0x61   :  { %p8990_p11 = scmp.ne.s32.totalorder %s9580_s28, %s8989_s11  ;;  %p8995_p13 = scmp.lt.s32.totalorder %s8989_s11, %s8989_s11 }
  0x63   :  { %p8996_p0 = por %p8995_p13, %p8994_p12 }
  0x65   :  { %p8997_p1 = pnand %p8996_p0, %p8990_p11 }
  0x67   :  { %9000 = shalt.err (!%p8997_p1)
}
  0x68   :  { %149 = dma.hbm_to_vmem [thread:$0]  %s9418_s3, 512, %s9580_s28, [#allocation9], %s9346_s2, %s9346_s2, %s9347_s7  }
  0x69   :  { %s9348_s9 = smov [#allocation11]   ;;  %s9349_s16 = smov [#allocation14]  }
  0x6a   :  { %s173_s15 = sshll.u32 %s9348_s9, 4  ;;  %s197_s18 = sshll.u32 %s9349_s16, 4  ;;  %s174_s15 = int_to_ptr.vmem [resolvable:$true] %s173_s15  ;;  %s9601_s18 = int_to_ptr.vmem [resolvable:$true] %s197_s18 }
  0x6b   :  { %s9001_s22 = scalar_lea.hbm %s9443_s30, 512 }
  0x6c   :  { %p9002_p2 = scmp.ne.s32.totalorder %s9443_s30, %s9001_s22  ;;  %p9005_p3 = scmp.lt.u32.totalorder %s9001_s22, %s9443_s30 }
  0x6e   :  { %p9007_p4 = pnand %p9005_p3, %p9002_p2 }
  0x70   :  { %9010 = shalt.err (!%p9007_p4)
}
  0x71   :  { %s9011_s23 = scalar_lea.vmem %s174_s15, 512  ;;  %p9016_p6 = scmp.lt.s32.totalorder %s174_s15, %s174_s15 }
  0x72   :  { %p9012_p5 = scmp.ne.s32.totalorder %s174_s15, %s9011_s23  ;;  %p9017_p7 = scmp.lt.s32.totalorder %s9011_s23, %s9011_s23 }
  0x74   :  { %p9018_p8 = por %p9017_p7, %p9016_p6 }
  0x76   :  { %p9019_p9 = pnand %p9018_p8, %p9012_p5 }
  0x78   :  { %9022 = shalt.err (!%p9019_p9)
}
  0x79   :  { %179 = dma.hbm_to_vmem [thread:$0]  %s9443_s30, 512, %s174_s15, [#allocation12], %s9346_s2, %s9346_s2, %s9347_s7  }
  0x7a   :  { %s9023_s3 = scalar_lea.hbm %s9453_s12, 512 }
  0x7b   :  { %p9024_p10 = scmp.ne.s32.totalorder %s9453_s12, %s9023_s3  ;;  %p9027_p11 = scmp.lt.u32.totalorder %s9023_s3, %s9453_s12 }
  0x7d   :  { %p9029_p12 = pnand %p9027_p11, %p9024_p10 }
  0x7f   :  { %9032 = shalt.err (!%p9029_p12)
}
  0x80   :  { %s9033_s26 = scalar_lea.vmem %s9601_s18, 512  ;;  %p9038_p0 = scmp.lt.s32.totalorder %s9601_s18, %s9601_s18 }
  0x81   :  { %p9034_p13 = scmp.ne.s32.totalorder %s9601_s18, %s9033_s26  ;;  %p9039_p1 = scmp.lt.s32.totalorder %s9033_s26, %s9033_s26 }
  0x83   :  { %p9040_p2 = por %p9039_p1, %p9038_p0 }
  0x85   :  { %p9041_p3 = pnand %p9040_p2, %p9034_p13 }
  0x87   :  { %9044 = shalt.err (!%p9041_p3)
}
  0x88   :  { %203 = dma.hbm_to_vmem [thread:$0]  %s9453_s12, 512, %s9601_s18, [#allocation15], %s9346_s2, %s9346_s2, %s9347_s7  }
  0x89   :  { %s9350_s30 = smov [#allocation17]   ;;  %s9351_s0 = smov [#allocation2]  }
  0x8a   :  { %s237_s28 = sshll.u32 %s9350_s30, 4  ;;  %s99_s1 = sshll.u32 %s9351_s0, 4  ;;  %s238_s28 = int_to_ptr.vmem [resolvable:$true] %s237_s28  ;;  %s9622_s1 = int_to_ptr.vmem [resolvable:$true] %s99_s1 }
  0x8b   :  { %s9045_s10 = scalar_lea.hbm %s9503_s25, 512 }
  0x8c   :  { %p9046_p4 = scmp.ne.s32.totalorder %s9503_s25, %s9045_s10  ;;  %p9049_p5 = scmp.lt.u32.totalorder %s9045_s10, %s9503_s25 }
  0x8e   :  { %p9051_p6 = pnand %p9049_p5, %p9046_p4 }
  0x90   :  { %9054 = shalt.err (!%p9051_p6)
}
  0x91   :  { %s9055_s11 = scalar_lea.vmem %s238_s28, 512  ;;  %p9060_p8 = scmp.lt.s32.totalorder %s238_s28, %s238_s28 }
  0x92   :  { %p9056_p7 = scmp.ne.s32.totalorder %s238_s28, %s9055_s11  ;;  %p9061_p9 = scmp.lt.s32.totalorder %s9055_s11, %s9055_s11 }
  0x94   :  { %p9062_p10 = por %p9061_p9, %p9060_p8 }
  0x96   :  { %p9063_p11 = pnand %p9062_p10, %p9056_p7 }
  0x98   :  { %9066 = shalt.err (!%p9063_p11)
}
  0x99   :  { %243 = dma.hbm_to_vmem [thread:$0]  %s9503_s25, 512, %s238_s28, [#allocation18], %s9346_s2, %s9346_s2, %s9347_s7  }
  0x9a   :  { %s9067_s12 = scalar_lea.hbm %s9383_s5, 256 }
  0x9b   :  { %p9068_p12 = scmp.ne.s32.totalorder %s9383_s5, %s9067_s12  ;;  %p9071_p13 = scmp.lt.u32.totalorder %s9067_s12, %s9383_s5 }
  0x9d   :  { %p9073_p0 = pnand %p9071_p13, %p9068_p12 }
  0x9f   :  { %9076 = shalt.err (!%p9073_p0)
}
  0xa0   :  { %s9077_s9 = scalar_lea.vmem %s9622_s1, 256  ;;  %p9082_p2 = scmp.lt.s32.totalorder %s9622_s1, %s9622_s1 }
  0xa1   :  { %p9078_p1 = scmp.ne.s32.totalorder %s9622_s1, %s9077_s9  ;;  %p9083_p3 = scmp.lt.s32.totalorder %s9077_s9, %s9077_s9 }
  0xa3   :  { %p9084_p4 = por %p9083_p3, %p9082_p2 }
  0xa5   :  { %p9085_p5 = pnand %p9084_p4, %p9078_p1 }
  0xa7   :  { %9088 = shalt.err (!%p9085_p5)
}
  0xa8   :  { %105 = dma.hbm_to_vmem [thread:$0]  %s9383_s5, 256, %s9622_s1, [#allocation3], %s9346_s2, %s9346_s2, %s9347_s7  }
  0xa9   :  { %s9352_s25 = smov [#allocation7]   ;;  %s9353_s16 = smov [#allocation10]  }
  0xaa   :  { %s127_s15 = sshll.u32 %s9352_s25, 4  ;;  %s155_s18 = sshll.u32 %s9353_s16, 4  ;;  %s128_s15 = int_to_ptr.vmem [resolvable:$true] %s127_s15  ;;  %s9643_s18 = int_to_ptr.vmem [resolvable:$true] %s155_s18 }
  0xab   :  { %s9089_s22 = scalar_lea.hbm %s9403_s21, 512 }
  0xac   :  { %p9090_p6 = scmp.ne.s32.totalorder %s9403_s21, %s9089_s22  ;;  %p9093_p7 = scmp.lt.u32.totalorder %s9089_s22, %s9403_s21 }
  0xae   :  { %p9095_p8 = pnand %p9093_p7, %p9090_p6 }
  0xb0   :  { %9098 = shalt.err (!%p9095_p8)
}
  0xb1   :  { %s9099_s23 = scalar_lea.vmem %s128_s15, 512  ;;  %p9104_p10 = scmp.lt.s32.totalorder %s128_s15, %s128_s15 }
  0xb2   :  { %p9100_p9 = scmp.ne.s32.totalorder %s128_s15, %s9099_s23  ;;  %p9105_p11 = scmp.lt.s32.totalorder %s9099_s23, %s9099_s23 }
  0xb4   :  { %p9106_p12 = por %p9105_p11, %p9104_p10 }
  0xb6   :  { %p9107_p13 = pnand %p9106_p12, %p9100_p9 }
  0xb8   :  { %9110 = shalt.err (!%p9107_p13)
}
  0xb9   :  { %133 = dma.hbm_to_vmem [thread:$0]  %s9403_s21, 512, %s128_s15, [#allocation6], %s9346_s2, %s9346_s2, %s9347_s7  }
  0xba   :  { %s9111_s5 = scalar_lea.hbm %s9423_s8, 2048 }
  0xbb   :  { %p9112_p0 = scmp.ne.s32.totalorder %s9423_s8, %s9111_s5  ;;  %p9115_p1 = scmp.lt.u32.totalorder %s9111_s5, %s9423_s8 }
  0xbd   :  { %p9117_p2 = pnand %p9115_p1, %p9112_p0 }
  0xbf   :  { %9120 = shalt.err (!%p9117_p2)
}
  0xc0   :  { %s9121_s3 = scalar_lea.vmem %s9643_s18, 2048  ;;  %p9126_p4 = scmp.lt.s32.totalorder %s9643_s18, %s9643_s18 }
  0xc1   :  { %p9122_p3 = scmp.ne.s32.totalorder %s9643_s18, %s9121_s3  ;;  %p9127_p5 = scmp.lt.s32.totalorder %s9121_s3, %s9121_s3 }
  0xc3   :  { %p9128_p6 = por %p9127_p5, %p9126_p4 }
  0xc5   :  { %p9129_p7 = pnand %p9128_p6, %p9122_p3 }
  0xc7   :  { %9132 = shalt.err (!%p9129_p7)
}
  0xc8   :  { %161 = dma.hbm_to_vmem [thread:$0]  %s9423_s8, 2048, %s9643_s18, [#allocation9], %s9346_s2, %s9346_s2, %s9347_s7  }
  0xc9   :  { %s9354_s21 = smov [#allocation13]   ;;  %s9355_s30 = smov [#allocation16]  }
  0xca   :  { %s185_s26 = sshll.u32 %s9354_s21, 4  ;;  %s225_s28 = sshll.u32 %s9355_s30, 4  ;;  %s186_s26 = int_to_ptr.vmem [resolvable:$true] %s185_s26  ;;  %s9664_s28 = int_to_ptr.vmem [resolvable:$true] %s225_s28 }
  0xcb   :  { %s9133_s0 = scalar_lea.hbm %s9448_s6, 512 }
  0xcc   :  { %p9134_p8 = scmp.ne.s32.totalorder %s9448_s6, %s9133_s0  ;;  %p9137_p9 = scmp.lt.u32.totalorder %s9133_s0, %s9448_s6 }
  0xce   :  { %p9139_p10 = pnand %p9137_p9, %p9134_p8 }
  0xd0   :  { %9142 = shalt.err (!%p9139_p10)
}
  0xd1   :  { %s9143_s1 = scalar_lea.vmem %s186_s26, 512  ;;  %p9148_p12 = scmp.lt.s32.totalorder %s186_s26, %s186_s26 }
  0xd2   :  { %p9144_p11 = scmp.ne.s32.totalorder %s186_s26, %s9143_s1  ;;  %p9149_p13 = scmp.lt.s32.totalorder %s9143_s1, %s9143_s1 }
  0xd4   :  { %p9150_p0 = por %p9149_p13, %p9148_p12 }
  0xd6   :  { %p9151_p1 = pnand %p9150_p0, %p9144_p11 }
  0xd8   :  { %9154 = shalt.err (!%p9151_p1)
}
  0xd9   :  { %191 = dma.hbm_to_vmem [thread:$0]  %s9448_s6, 512, %s186_s26, [#allocation12], %s9346_s2, %s9346_s2, %s9347_s7  }
  0xda   :  { %s9155_s8 = scalar_lea.hbm %s9498_s29, 512 }
  0xdb   :  { %p9156_p2 = scmp.ne.s32.totalorder %s9498_s29, %s9155_s8  ;;  %p9159_p3 = scmp.lt.u32.totalorder %s9155_s8, %s9498_s29 }
  0xdd   :  { %p9161_p4 = pnand %p9159_p3, %p9156_p2 }
  0xdf   :  { %9164 = shalt.err (!%p9161_p4)
}
  0xe0   :  { %s9165_s10 = scalar_lea.vmem %s9664_s28, 512  ;;  %p9170_p6 = scmp.lt.s32.totalorder %s9664_s28, %s9664_s28 }
  0xe1   :  { %p9166_p5 = scmp.ne.s32.totalorder %s9664_s28, %s9165_s10  ;;  %p9171_p7 = scmp.lt.s32.totalorder %s9165_s10, %s9165_s10 }
  0xe3   :  { %p9172_p8 = por %p9171_p7, %p9170_p6 }
  0xe5   :  { %p9173_p9 = pnand %p9172_p8, %p9166_p5 }
  0xe7   :  { %9176 = shalt.err (!%p9173_p9)
}
  0xe8   :  { %231 = dma.hbm_to_vmem [thread:$0]  %s9498_s29, 512, %s9664_s28, [#allocation15], %s9346_s2, %s9346_s2, %s9347_s7  }
  0xe9   :  { %s9356_s6 = smov [#allocation19]   ;;  %s9357_s12 = smov [#allocation20]  }
  0xea   :  { %s257_s11 = sshll.u32 %s9356_s6, 4  ;;  %s269_s9 = sshll.u32 %s9357_s12, 4  ;;  %s258_s11 = int_to_ptr.vmem [resolvable:$true] %s257_s11  ;;  %s9685_s9 = int_to_ptr.vmem [resolvable:$true] %s269_s9 }
  0xeb   :  { %s9177_s25 = scalar_lea.hbm %s9528_s27, 512 }
  0xec   :  { %p9178_p10 = scmp.ne.s32.totalorder %s9528_s27, %s9177_s25  ;;  %p9181_p11 = scmp.lt.u32.totalorder %s9177_s25, %s9528_s27 }
  0xee   :  { %p9183_p12 = pnand %p9181_p11, %p9178_p10 }
  0xf0   :  { %9186 = shalt.err (!%p9183_p12)
}
  0xf1   :  { %s9187_s15 = scalar_lea.vmem %s258_s11, 512  ;;  %p9192_p0 = scmp.lt.s32.totalorder %s258_s11, %s258_s11 }
  0xf2   :  { %p9188_p13 = scmp.ne.s32.totalorder %s258_s11, %s9187_s15  ;;  %p9193_p1 = scmp.lt.s32.totalorder %s9187_s15, %s9187_s15 }
  0xf4   :  { %p9194_p2 = por %p9193_p1, %p9192_p0 }
  0xf6   :  { %p9195_p3 = pnand %p9194_p2, %p9188_p13 }
  0xf8   :  { %9198 = shalt.err (!%p9195_p3)
}
  0xf9   :  { %263 = dma.hbm_to_vmem [thread:$0]  %s9528_s27, 512, %s258_s11, [#allocation18], %s9346_s2, %s9346_s2, %s9347_s7  }
  0xfa   :  { %s9199_s29 = scalar_lea.hbm %s9533_s4, 2048 }
  0xfb   :  { %p9200_p4 = scmp.ne.s32.totalorder %s9533_s4, %s9199_s29  ;;  %p9203_p5 = scmp.lt.u32.totalorder %s9199_s29, %s9533_s4 }
  0xfd   :  { %p9205_p6 = pnand %p9203_p5, %p9200_p4 }
  0xff   :  { %9208 = shalt.err (!%p9205_p6)
}
 0x100   :  { %s9209_s16 = scalar_lea.vmem %s9685_s9, 2048  ;;  %p9214_p8 = scmp.lt.s32.totalorder %s9685_s9, %s9685_s9 }
 0x101   :  { %p9210_p7 = scmp.ne.s32.totalorder %s9685_s9, %s9209_s16  ;;  %p9215_p9 = scmp.lt.s32.totalorder %s9209_s16, %s9209_s16 }
 0x103   :  { %p9216_p10 = por %p9215_p9, %p9214_p8 }
 0x105   :  { %p9217_p11 = pnand %p9216_p10, %p9210_p7 }
 0x107   :  { %9220 = shalt.err (!%p9217_p11)
}
 0x108   :  { %275 = dma.hbm_to_vmem [thread:$0]  %s9533_s4, 2048, %s9685_s9, [#allocation21], %s9346_s2, %s9346_s2, %s9347_s7  }
 0x109   :  { %9287 = dma.done.wait [#allocation3], 256  }
 0x10a   :  { %9288 = vsyncadd [#allocation3], 4294967040 }
 0x10b   :  { %9289 = dma.done.wait [#allocation6], 1024  }
 0x10c   :  { %9290 = vsyncadd [#allocation6], 4294966272 }
 0x10d   :  { %9291 = dma.done.wait [#allocation9], 2560  }
 0x10e   :  { %9292 = vsyncadd [#allocation9], 4294964736 }
 0x10f   :  { %9293 = dma.done.wait [#allocation12], 1024  }
 0x110   :  { %9294 = vsyncadd [#allocation12], 4294966272 }
 0x111   :  { %9295 = dma.done.wait [#allocation15], 1024  }
 0x112   :  { %9296 = vsyncadd [#allocation15], 4294966272 }
 0x113   :  { %9297 = dma.done.wait [#allocation18], 1024  }
 0x114   :  { %9298 = vsyncadd [#allocation18], 4294966272 }
 0x115   :  { %9299 = dma.done.wait [#allocation21], 2048  }
 0x116   :  { %9300 = vsyncadd [#allocation21], 4294965248  ;;  %vm432_vm0 = vcmask 261120   ;;  %v414_v0 = vld [vmem:[%s9563_s20] sm:$0xff]  ;;  %v415_v1 = vld [vmem:[%s9563_s20 + $0x8] sm:$0xff]  ;;  %v9358_v8 = vmov 0.0  }
 0x117   :  { %v416_v2 = vld [vmem:[%s9563_s20 + $0x10] sm:$0xff]  ;;  %v8382_v3 = vpack.c.bf16 %v415_v1, %v414_v0  ;;  %v417_v4 = vld [vmem:[%s9563_s20 + $0x18] sm:$0xff]  ;;  %v9710_v5 = vld [vmem:[#allocation2] sm:$0xff]  ;;  %7878 = vmatprep.subr.mxu1 %v9358_v8  ;;  %vm9359_vm1 = vmmov 0   ;;  %s9360_s20 = smov 96   ;;  %s9361_s27 = smov 64  }
 0x118   :  { %v8386_v6 = vpack.c.bf16 %v417_v4, %v416_v2  ;;  %7875 = vmatprep.mubr.msk.f32.mxu0 %vm432_vm0, %v9710_v5  ;;  %v9714_v7 = vld [vmem:[#allocation2 + $0x8] sm:$0xff]  ;;  %7880 = vmatprep.mubr.msk.f32.mxu1 %vm9359_vm1, %v9358_v8  ;;  %v7391_v9 = vld [vmem:[%s9513_s14] ss:$0 sm:$0xff]  ;;  %s9362_s4 = smov 120   ;;  %vm517_vm2 = vcmask 64512   ;;  %s9363_s14 = smov 88  }
 0x119   :  { %8383 = vmatprep.subr.bf16.mxu0 %v8382_v3  ;;  %v9751_v18 = vld [vmem:[%s9393_s13] ss:$0 sm:$0xff]  ;;  %v9755_v23 = vld [vmem:[%s9393_s13 + $0x1] ss:$0 sm:$0xff]  ;;  %s9364_s2 = smov 80   ;;  %s9365_s7 = smov 56   ;;  %vm9949_vm3 = vmpackc.low %vm517_vm2, %vm517_vm2 }
 0x11a   :  { %8385 = vmatpush3.bf16.msra.mxu0 %v8382_v3  ;;  %s9366_s18 = smov 112   ;;  %s9367_s22 = smov 48   ;;  %vm2741_vm4 = vcmask 130048   ;;  %vm7218_vm5 = vcmask 1041409   ;;  %vm7297_vm6 = vcmask 254976  }
 0x11b   :  { %8387 = vmatprep.subr.bf16.mxu0 %v8386_v6  ;;  %s9368_s23 = smov 72   ;;  %s9369_s5 = smov 104  }
 0x11c   :  { %s10548_s3 = sld [smem:[#allocation56_spill]]  ;;  %s9370_s21 = smov 40  }
 0x11d   :  { %s10549_s26 = sld [smem:[#allocation49_spill]]  ;;  %s10550_s30 = sld [smem:[#allocation53_spill]] }
 0x11e   :  { %8389 = vmatpush3.bf16.msra.mxu0 %v8386_v6  ;;  %s10551_s28 = sld [smem:[#allocation52_spill]]  ;;  %s10552_s0 = sld [smem:[#allocation50_spill]] }
 0x11f   :  { %7888 = vmatprep.subr.mxu0 %v9358_v8  ;;  %s10553_s1 = sld [smem:[#allocation48_spill]]  ;;  %s10556_s8 = sld [smem:[#allocation47_spill]] }
 0x120   :  { %s10557_s10 = sld [smem:[#allocation51_spill]]  ;;  %s10558_s6 = sld [smem:[#allocation42_spill]] }
 0x121   :  { %7876 = vmatmul.mubr.msk.f32.vlgmr.msra.gmra.mrb[0].mxu0 %vm432_vm0, %v9714_v7  ;;  %s10559_s11 = sld [smem:[#allocation41_spill]]  ;;  %s10560_s12 = sld [smem:[#allocation55_spill]] }
 0x122   :  { %7890 = vmatprep.mubr.msk.f32.mxu0 %vm9359_vm1, %v9358_v8  ;;  %s10561_s9 = sld [smem:[#allocation54_spill]]  ;;  %s10562_s25 = sld [smem:[#allocation40_spill]] }
 0x123   :  { %s10563_s15 = sld [smem:[#allocation38_spill]]  ;;  %s10565_s29 = sld [smem:[#allocation44_spill]] }
 0x124   :  { %s10566_s16 = sld [smem:[#allocation43_spill]] }
 0x1f4   :  { %v7877_v10 = vpop.f32.mrb[0].mxu0 }
 0x1f5   :  { %v505_v11 = vpop.f32.mrb[1].mxu0  ;;  %v9729_v13 = vadd.f32 %v7877_v10, %v7391_v9 }
 0x1f6   :  { %v9725_v12 = vadd.f32 %v7391_v9, %v505_v11 }
 0x1f8   :  { %515 = vrot.lane.b32.xlu0 %v9725_v12, %s9360_s20 }
 0x1fc   :  { %593 = vrot.lane.b32.xlu0 %v9729_v13, %s9360_s20 }
 0x200   :  { %783 = vrot.lane.b32.xlu0 %v9729_v13, %s9361_s27 }
 0x204   :  { %937 = vrot.lane.b32.xlu0 %v9729_v13, %s9362_s4 }
 0x26a   :  { %v516_v14 = vpop.permute.xlu0 %515 }
 0x26b   :  { %7879 = vmatpush3.xpose.msk.msra.mxu1 %vm517_vm2, %v516_v14 }
 0x26c   :  { %7883 = vmatprep.subr.mxu1 %v9358_v8 }
 0x26e   :  { %7881 = vmatmul.mubr.msk.f32.vlgmr.msra.gmra.mrb[0].mxu1 %vm517_vm2, %v9725_v12  ;;  %v594_v15 = vpop.permute.xlu0 %593 }
 0x26f   :  { %7884 = vmatpush3.xpose.msk.msra.mxu1 %vm517_vm2, %v594_v15  ;;  %7885 = vmatprep.mubr.msk.f32.mxu1 %vm9359_vm1, %v9358_v8 }
 0x270   :  { %7893 = vmatprep.subr.mxu1 %v9358_v8 }
 0x272   :  { %7886 = vmatmul.mubr.msk.f32.vlgmr.msra.gmra.mrb[2].mxu1 %vm517_vm2, %v9729_v13  ;;  %v784_v16 = vpop.permute.xlu0 %783 }
 0x273   :  { %7894 = vmatpush3.msra.mxu1 %v784_v16  ;;  %7895 = vmatprep.mubr.msk.f32.mxu1 %vm9359_vm1, %v9358_v8 }
 0x274   :  { %7903 = vmatprep.subr.mxu1 %v9358_v8 }
 0x276   :  { %v938_v29 = vpop.permute.xlu0 %937 }
 0x341   :  { %v588_v17 = vpop.f32.mrb[0].mxu1 }
 0x342   :  { %v669_v19 = vmul.f32 0.35355338, %v588_v17  ;;  %v7882_v20 = vpop.f32.mrb[1].mxu1 }
 0x344   :  { %v683_v21 = vadd.f32 %v9751_v18, %v669_v19 }
 0x345   :  { %v665_v22 = vpop.f32.mrb[2].mxu1 }
 0x346   :  { %v670_v24 = vmul.f32 0.35355338, %v665_v22  ;;  %v7887_v25 = vpop.f32.mrb[3].mxu1  ;;  %v685_v26 = vsel %vm517_vm2, %v683_v21, -inf }
 0x347   :  { %686 = vmax.xlane.f32.xlu0 %v685_v26 }
 0x348   :  { %v684_v27 = vadd.f32 %v9755_v23, %v670_v24 }
 0x34a   :  { %v688_v28 = vsel %vm517_vm2, %v684_v27, -inf }
 0x34b   :  { %689 = vmax.xlane.f32.xlu1 %v688_v28 }
 0x35d   :  { %707 = vrot.lane.b32.xlu0 %v9725_v12, %s9361_s27 }
 0x361   :  { %859 = vrot.lane.b32.xlu0 %v9725_v12, %s9362_s4 }
 0x3d4   :  { %v687_v30 = vpop.xlane.xlu0 %686 }
 0x3d5   :  { %v691_v37 = vsub.f32 %v683_v21, %v687_v30  ;;  %v410_v30 = vld [vmem:[%s10548_s3] sm:$0xff] }
 0x3d7   :  { %v693_v38 = vmul.f32 1.442695, %v691_v37 }
 0x3d8   :  { %v690_v31 = vpop.xlane.xlu1 %689  ;;  %v708_v32 = vpop.permute.xlu0 %707 }
 0x3d9   :  { %v692_v33 = vsub.f32 %v684_v27, %v690_v31  ;;  %7889 = vmatpush3.msra.mxu0 %v708_v32 }
 0x3da   :  { %7898 = vmatprep.subr.mxu0 %v9358_v8 }
 0x3db   :  { %v695_v34 = vmul.f32 1.442695, %v692_v33 }
 0x3dc   :  { %v860_v49 = vpop.permute.xlu0 %859 }
 0x3dd   :  { %8760 = vpow2.f32 %v695_v34 }
 0x3de   :  { %8762 = vpow2.f32 %v693_v38 }
 0x3e7   :  { %v8761_v35 = vpop.eup %8760 }
 0x3e8   :  { %v700_v36 = vsel %vm517_vm2, %v8761_v35, 0.0  ;;  %v8763_v39 = vpop.eup %8762 }
 0x3e9   :  { %701 = vadd.xlane.f32.xlu1 %v700_v36  ;;  %v697_v40 = vsel %vm517_vm2, %v8763_v39, 0.0 }
 0x3fa   :  { %939 = vrot.lane.b32.xlu1 %v9729_v13, %s9363_s14 }
 0x41e   :  { %698 = vadd.xlane.f32.xlu1 %v697_v40 }
 0x42f   :  { %861 = vrot.lane.b32.xlu1 %v9725_v12, %s9363_s14 }
 0x433   :  { %1357 = vrot.lane.b32.xlu1 %v9725_v12, %s9364_s2 }
 0x476   :  { %v702_v41 = vpop.xlane.xlu1 %701 }
 0x477   :  { %8764 = vrcp.f32 %v702_v41 }
 0x47a   :  { %v940_v44 = vpop.permute.xlu1 %939 }
 0x481   :  { %v8765_v42 = vpop.eup %8764 }
 0x482   :  { %v706_v43 = vmul.f32 %v8765_v42, %v8761_v35 }
 0x484   :  { %7896 = vmatmul.mubr.msk.f32.vlgmr.msra.gmra.mrb[4].mxu1 %vm517_vm2, %v706_v43 }
 0x485   :  { %7904 = vmatpush3.xpose.msk.msra.mxu1 %vm517_vm2, %v940_v44  ;;  %7905 = vmatprep.mubr.msk.f32.mxu1 %vm9359_vm1, %v9358_v8 }
 0x486   :  { %7913 = vmatprep.subr.mxu1 %v9358_v8 }
 0x488   :  { %7906 = vmatmul.mubr.msk.f32.vlgmr.msra.gmra.mrb[6].mxu1 %vm517_vm2, %v938_v29  ;;  %v411_v29 = vld [vmem:[%s10548_s3 + $0x8] sm:$0xff] }
 0x489   :  { %7915 = vmatprep.mubr.msk.f32.mxu1 %vm9359_vm1, %v9358_v8 }
 0x4ab   :  { %v699_v45 = vpop.xlane.xlu1 %698 }
 0x4ac   :  { %8766 = vrcp.f32 %v699_v45 }
 0x4af   :  { %v862_v48 = vpop.permute.xlu1 %861 }
 0x4b3   :  { %v1358_v20 = vpop.permute.xlu1 %1357 }
 0x4b6   :  { %v8767_v46 = vpop.eup %8766 }
 0x4b7   :  { %v705_v47 = vmul.f32 %v8767_v46, %v8763_v39 }
 0x4b9   :  { %7891 = vmatmul.mubr.msk.f32.vlgmr.msra.gmra.mrb[2].mxu0 %vm517_vm2, %v705_v47 }
 0x4ba   :  { %7899 = vmatpush3.xpose.msk.msra.mxu0 %vm517_vm2, %v862_v48  ;;  %7900 = vmatprep.mubr.msk.f32.mxu0 %vm9359_vm1, %v9358_v8 }
 0x4bb   :  { %7908 = vmatprep.subr.mxu0 %v9358_v8 }
 0x4bd   :  { %7901 = vmatmul.mubr.msk.f32.vlgmr.msra.gmra.mrb[4].mxu0 %vm517_vm2, %v860_v49 }
 0x4be   :  { %7910 = vmatprep.mubr.msk.f32.mxu0 %vm9359_vm1, %v9358_v8 }
 0x557   :  { %v9789_v50 = vpop.f32.mrb[4].mxu1 }
 0x558   :  { %v7897_v51 = vpop.f32.mrb[5].mxu1 }
 0x55b   :  { %v1011_v52 = vpop.f32.mrb[6].mxu1 }
 0x55c   :  { %v1016_v53 = vmul.f32 0.35355338, %v1011_v52  ;;  %v7907_v54 = vpop.f32.mrb[7].mxu1 }
 0x55e   :  { %v1018_v55 = vadd.f32 %v9755_v23, %v1016_v53 }
 0x560   :  { %v1022_v56 = vsel %vm517_vm2, %v1018_v55, -inf }
 0x561   :  { %1023 = vmax.xlane.f32.xlu0 %v1022_v56  ;;  %v412_v56 = vld [vmem:[%s10548_s3 + $0x10] sm:$0xff] }
 0x577   :  { %1117 = vrot.lane.b32.xlu0 %v9729_v13, %s9365_s7 }
 0x57b   :  { %1355 = vrot.lane.b32.xlu0 %v9725_v12, %s9366_s18 }
 0x57f   :  { %1435 = vrot.lane.b32.xlu0 %v9729_v13, %s9364_s2 }
 0x58c   :  { %v9799_v57 = vpop.f32.mrb[2].mxu0 }
 0x58d   :  { %v7892_v58 = vpop.f32.mrb[3].mxu0 }
 0x590   :  { %v933_v59 = vpop.f32.mrb[4].mxu0 }
 0x591   :  { %v7902_v60 = vpop.f32.mrb[5].mxu0  ;;  %v1015_v61 = vmul.f32 0.35355338, %v933_v59 }
 0x593   :  { %v1017_v62 = vadd.f32 %v9751_v18, %v1015_v61 }
 0x595   :  { %v1019_v63 = vsel %vm517_vm2, %v1017_v62, -inf }
 0x59e   :  { %1020 = vmax.xlane.f32.xlu0 %v1019_v63 }
 0x5b4   :  { %1041 = vrot.lane.b32.xlu0 %v9725_v12, %s9365_s7 }
 0x5b8   :  { %1537 = vrot.lane.b32.xlu0 %v9725_v12, %s9367_s22 }
 0x5bc   :  { %1774 = vrot.lane.b32.xlu0 %v9725_v12, %s9368_s23 }
 0x5c0   :  { %1852 = vrot.lane.b32.xlu0 %v9729_v13, %s9368_s23 }
 0x5c4   :  { %1772 = vrot.lane.b32.xlu0 %v9725_v12, %s9369_s5 }
 0x5c8   :  { %1850 = vrot.lane.b32.xlu0 %v9729_v13, %s9369_s5 }
 0x5ee   :  { %v1024_v0 = vpop.xlane.xlu0 %1023 }
 0x5ef   :  { %v1026_v1 = vsub.f32 %v1018_v55, %v1024_v0 }
 0x5f1   :  { %v1029_v2 = vmul.f32 1.442695, %v1026_v1 }
 0x5f2   :  { %v1118_v3 = vpop.permute.xlu0 %1117 }
 0x5f3   :  { %8768 = vpow2.f32 %v1029_v2  ;;  %7914 = vmatpush3.msra.mxu1 %v1118_v3 }
 0x5f4   :  { %7928 = vmatprep.subr.mxu1 %v9358_v8 }
 0x5f6   :  { %v1356_v9 = vpop.permute.xlu0 %1355 }
 0x5fa   :  { %v1436_v10 = vpop.permute.xlu0 %1435 }
 0x5fd   :  { %v8769_v4 = vpop.eup %8768 }
 0x5fe   :  { %v1034_v6 = vsel %vm517_vm2, %v8769_v4, 0.0 }
 0x5ff   :  { %1035 = vadd.xlane.f32.xlu1 %v1034_v6 }
 0x610   :  { %1433 = vrot.lane.b32.xlu1 %v9729_v13, %s9366_s18 }
 0x62b   :  { %v1021_v11 = vpop.xlane.xlu0 %1020 }
 0x62c   :  { %v1025_v14 = vsub.f32 %v1017_v62, %v1021_v11 }
 0x62e   :  { %v1027_v15 = vmul.f32 1.442695, %v1025_v14 }
 0x62f   :  { %v1042_v16 = vpop.permute.xlu0 %1041 }
 0x630   :  { %8770 = vpow2.f32 %v1027_v15  ;;  %7909 = vmatpush3.msra.mxu0 %v1042_v16 }
 0x631   :  { %7918 = vmatprep.subr.mxu0 %v411_v29 }
 0x633   :  { %v1538_v45 = vpop.permute.xlu0 %1537 }
 0x637   :  { %v1775_v60 = vpop.permute.xlu0 %1774 }
 0x63a   :  { %v8771_v17 = vpop.eup %8770 }
 0x63b   :  { %v1031_v19 = vsel %vm517_vm2, %v8771_v17, 0.0  ;;  %v1853_v0 = vpop.permute.xlu0 %1852 }
 0x63c   :  { %1032 = vadd.xlane.f32.xlu1 %v1031_v19 }
 0x63f   :  { %v1773_v2 = vpop.permute.xlu0 %1772 }
 0x68c   :  { %v1036_v21 = vpop.xlane.xlu1 %1035 }
 0x68d   :  { %8772 = vrcp.f32 %v1036_v21 }
 0x690   :  { %v1434_v25 = vpop.permute.xlu1 %1433 }
 0x697   :  { %v8773_v22 = vpop.eup %8772 }
 0x698   :  { %v1040_v24 = vmul.f32 %v8773_v22, %v8769_v4 }
 0x69a   :  { %7916 = vmatmul.mubr.msk.f32.vlgmr.msra.gmra.mrb[8].mxu1 %vm517_vm2, %v1040_v24 }
 0x69b   :  { %7929 = vmatpush3.xpose.msk.msra.mxu1 %vm517_vm2, %v1358_v20  ;;  %7930 = vmatprep.mubr.msk.f32.mxu1 %vm9359_vm1, %v9358_v8 }
 0x69c   :  { %7933 = vmatprep.subr.mxu1 %v9358_v8 }
 0x69e   :  { %7931 = vmatmul.mubr.msk.f32.vlgmr.msra.gmra.mrb[10].mxu1 %vm517_vm2, %v1356_v9 }
 0x69f   :  { %7934 = vmatpush3.xpose.msk.msra.mxu1 %vm517_vm2, %v1436_v10  ;;  %7935 = vmatprep.mubr.msk.f32.mxu1 %vm9359_vm1, %v9358_v8  ;;  %v1851_v10 = vpop.permute.xlu0 %1850 }
 0x6a0   :  { %7943 = vmatprep.subr.mxu1 %v9358_v8 }
 0x6a2   :  { %7936 = vmatmul.mubr.msk.f32.vlgmr.msra.gmra.mrb[12].mxu1 %vm517_vm2, %v1434_v25 }
 0x6a3   :  { %7945 = vmatprep.mubr.msk.f32.mxu1 %vm9359_vm1, %v9358_v8 }
 0x6c9   :  { %v1033_v26 = vpop.xlane.xlu1 %1032 }
 0x6ca   :  { %8774 = vrcp.f32 %v1033_v26 }
 0x6d4   :  { %v8775_v27 = vpop.eup %8774 }
 0x6d5   :  { %v1039_v28 = vmul.f32 %v8775_v27, %v8771_v17 }
 0x6d7   :  { %7911 = vmatmul.mubr.msk.f32.vlgmr.msra.gmra.mrb[6].mxu0 %vm517_vm2, %v1039_v28 }
 0x6d8   :  { %7919 = vmatpush3.msra.mxu0 %v411_v29 }
 0x6d9   :  { %7923 = vmatprep.subr.mxu0 %v410_v30 }
 0x76d   :  { %v1189_v31 = vpop.f32.mrb[8].mxu1 }
 0x76e   :  { %v7917_v32 = vpop.f32.mrb[9].mxu1 }
 0x771   :  { %v1429_v33 = vpop.f32.mrb[10].mxu1 }
 0x772   :  { %v1511_v34 = vmul.f32 0.35355338, %v1429_v33  ;;  %v7932_v35 = vpop.f32.mrb[11].mxu1 }
 0x774   :  { %v1513_v36 = vadd.f32 %v9751_v18, %v1511_v34 }
 0x775   :  { %v1507_v37 = vpop.f32.mrb[12].mxu1 }
 0x776   :  { %v1512_v38 = vmul.f32 0.35355338, %v1507_v37  ;;  %v7937_v39 = vpop.f32.mrb[13].mxu1  ;;  %v1515_v40 = vsel %vm517_vm2, %v1513_v36, -inf  ;;  %v413_v37 = vld [vmem:[%s10548_s3 + $0x18] sm:$0xff] }
 0x777   :  { %1516 = vmax.xlane.f32.xlu1 %v1515_v40 }
 0x778   :  { %v1514_v41 = vadd.f32 %v9755_v23, %v1512_v38 }
 0x77a   :  { %v1518_v42 = vsel %vm517_vm2, %v1514_v41, -inf }
 0x77b   :  { %1519 = vmax.xlane.f32.xlu1 %v1518_v42 }
 0x7aa   :  { %v1113_v43 = vpop.f32.mrb[6].mxu0 }
 0x7ab   :  { %v7912_v44 = vpop.f32.mrb[7].mxu0  ;;  %7920 = vmatprep.mubr.msk.f32.mxu0 %vm517_vm2, %v1113_v43 }
 0x7ac   :  { %7921 = vmatmul.mubr.msk.f32.vlgmr.msra.gmra.mrb[8].mxu0 %vm517_vm2, %v1189_v31 }
 0x7ad   :  { %7925 = vmatprep.mubr.msk.f32.mxu0 %vm517_vm2, %v9799_v57  ;;  %7924 = vmatpush3.msra.mxu0 %v410_v30 }
 0x7ae   :  { %7938 = vmatprep.subr.mxu0 %v9358_v8 }
 0x7b4   :  { %7926 = vmatmul.mubr.msk.f32.vlgmr.msra.gmra.mrb[8].mxu0 %vm517_vm2, %v9789_v50 }
 0x7b5   :  { %7939 = vmatpush3.msra.mxu0 %v1538_v45  ;;  %7940 = vmatprep.mubr.msk.f32.mxu0 %vm9359_vm1, %v9358_v8 }
 0x7b6   :  { %7948 = vmatprep.subr.mxu0 %v412_v56 }
 0x804   :  { %v1517_v46 = vpop.xlane.xlu1 %1516 }
 0x805   :  { %v1521_v47 = vsub.f32 %v1513_v36, %v1517_v46 }
 0x807   :  { %v1523_v48 = vmul.f32 1.442695, %v1521_v47 }
 0x808   :  { %v1520_v49 = vpop.xlane.xlu1 %1519 }
 0x809   :  { %8776 = vpow2.f32 %v1523_v48  ;;  %v1522_v51 = vsub.f32 %v1514_v41, %v1520_v49 }
 0x80b   :  { %v1525_v52 = vmul.f32 1.442695, %v1522_v51 }
 0x80d   :  { %8778 = vpow2.f32 %v1525_v52 }
 0x813   :  { %v8777_v53 = vpop.eup %8776 }
 0x814   :  { %v1527_v54 = vsel %vm517_vm2, %v8777_v53, 0.0 }
 0x815   :  { %1528 = vadd.xlane.f32.xlu1 %v1527_v54 }
 0x817   :  { %v8779_v55 = vpop.eup %8778 }
 0x818   :  { %v1530_v50 = vsel %vm517_vm2, %v8779_v55, 0.0 }
 0x819   :  { %1531 = vadd.xlane.f32.xlu1 %v1530_v50 }
 0x82a   :  { %1613 = vrot.lane.b32.xlu1 %v9729_v13, %s9367_s22 }
 0x8a2   :  { %v1529_v57 = vpop.xlane.xlu1 %1528 }
 0x8a3   :  { %8780 = vrcp.f32 %v1529_v57 }
 0x8a6   :  { %v1532_v58 = vpop.xlane.xlu1 %1531 }
 0x8a7   :  { %8782 = vrcp.f32 %v1532_v58 }
 0x8aa   :  { %v1614_v59 = vpop.permute.xlu1 %1613 }
 0x8ab   :  { %7944 = vmatpush3.msra.mxu1 %v1614_v59 }
 0x8ac   :  { %7953 = vmatprep.subr.mxu1 %v9358_v8 }
 0x8ad   :  { %v8781_v61 = vpop.eup %8780 }
 0x8ae   :  { %v1535_v62 = vmul.f32 %v8781_v61, %v8777_v53  ;;  %v386_v61 = vld [vmem:[#allocation19] sm:$0xff] }
 0x8b0   :  { %7941 = vmatmul.mubr.msk.f32.vlgmr.msra.gmra.mrb[10].mxu0 %vm517_vm2, %v1535_v62  ;;  %v387_v62 = vld [vmem:[#allocation19 + $0x8] sm:$0xff] }
 0x8b1   :  { %v8783_v63 = vpop.eup %8782  ;;  %7949 = vmatpush3.msra.mxu0 %v412_v56 }
 0x8b2   :  { %v1536_v1 = vmul.f32 %v8783_v63, %v8779_v55  ;;  %7958 = vmatprep.subr.mxu0 %v9358_v8  ;;  %v388_v63 = vld [vmem:[#allocation19 + $0x10] sm:$0xff] }
 0x8b4   :  { %7946 = vmatmul.mubr.msk.f32.vlgmr.msra.gmra.mrb[14].mxu1 %vm517_vm2, %v1536_v1  ;;  %v389_v1 = vld [vmem:[#allocation19 + $0x18] sm:$0xff] }
 0x8b5   :  { %7954 = vmatpush3.xpose.msk.msra.mxu1 %vm517_vm2, %v1775_v60  ;;  %7955 = vmatprep.mubr.msk.f32.mxu1 %vm9359_vm1, %v9358_v8 }
 0x8b6   :  { %7963 = vmatprep.subr.mxu1 %v9358_v8 }
 0x8b8   :  { %7956 = vmatmul.mubr.msk.f32.vlgmr.msra.gmra.mrb[16].mxu1 %vm517_vm2, %v1773_v2  ;;  %v8394_v2 = vpack.c.bf16 %v389_v1, %v388_v63 }
 0x8b9   :  { %7965 = vmatprep.mubr.msk.f32.mxu1 %vm9359_vm1, %v9358_v8 }
 0x983   :  { %v1609_v3 = vpop.f32.mrb[10].mxu0 }
 0x984   :  { %v7942_v4 = vpop.f32.mrb[11].mxu0  ;;  %7950 = vmatprep.mubr.msk.f32.mxu0 %vm517_vm2, %v1609_v3  ;;  %v378_v3 = vld [vmem:[#allocation17] sm:$0xff] }
 0x985   :  { %v379_v4 = vld [vmem:[#allocation17 + $0x8] sm:$0xff] }
 0x987   :  { %v1685_v6 = vpop.f32.mrb[14].mxu1 }
 0x988   :  { %v7947_v9 = vpop.f32.mrb[15].mxu1  ;;  %7951 = vmatmul.mubr.msk.f32.vlgmr.msra.gmra.mrb[8].mxu0 %vm517_vm2, %v1685_v6  ;;  %v8430_v6 = vpack.c.bf16 %v379_v4, %v378_v3 }
 0x989   :  { %7959 = vmatpush3.xpose.msk.msra.mxu0 %vm517_vm2, %v1853_v0  ;;  %7960 = vmatprep.mubr.msk.f32.mxu0 %vm9359_vm1, %v9358_v8  ;;  %v8390_v0 = vpack.c.bf16 %v387_v62, %v386_v61  ;;  %v390_v9 = vld [vmem:[#allocation20] sm:$0xff]  ;;  %v7437_v61 = vld [vmem:[%s10553_s1] ss:$0 sm:$0xff] }
 0x98a   :  { %7968 = vmatprep.subr.mxu0 %v9358_v8 }
 0x98b   :  { %v1846_v11 = vpop.f32.mrb[16].mxu1 }
 0x98c   :  { %v1928_v14 = vmul.f32 0.35355338, %v1846_v11  ;;  %v7957_v15 = vpop.f32.mrb[17].mxu1  ;;  %7961 = vmatmul.mubr.msk.f32.vlgmr.msra.gmra.mrb[12].mxu0 %vm517_vm2, %v1851_v10  ;;  %v391_v10 = vld [vmem:[#allocation20 + $0x8] sm:$0xff]  ;;  %v392_v11 = vld [vmem:[#allocation20 + $0x10] sm:$0xff] }
 0x98d   :  { %7970 = vmatprep.mubr.msk.f32.mxu0 %vm9359_vm1, %v9358_v8  ;;  %v393_v15 = vld [vmem:[#allocation20 + $0x18] sm:$0xff] }
 0x98e   :  { %v1930_v16 = vadd.f32 %v9751_v18, %v1928_v14  ;;  %v8398_v14 = vpack.c.bf16 %v391_v10, %v390_v9 }
 0x990   :  { %v1932_v17 = vsel %vm517_vm2, %v1930_v16, -inf }
 0x991   :  { %1933 = vmax.xlane.f32.xlu1 %v1932_v17  ;;  %v394_v17 = vld [vmem:[#allocation20 + $0x20] sm:$0xff] }
 0xa1e   :  { %v1934_v19 = vpop.xlane.xlu1 %1933 }
 0xa1f   :  { %v1938_v20 = vsub.f32 %v1930_v16, %v1934_v19  ;;  %v8402_v16 = vpack.c.bf16 %v393_v15, %v392_v11  ;;  %v395_v19 = vld [vmem:[#allocation20 + $0x28] sm:$0xff] }
 0xa21   :  { %v1940_v21 = vmul.f32 1.442695, %v1938_v20  ;;  %v8406_v20 = vpack.c.bf16 %v395_v19, %v394_v17 }
 0xa23   :  { %8784 = vpow2.f32 %v1940_v21  ;;  %v396_v21 = vld [vmem:[#allocation20 + $0x30] sm:$0xff] }
 0xa2d   :  { %v8785_v28 = vpop.eup %8784 }
 0xa2e   :  { %v1944_v29 = vsel %vm517_vm2, %v8785_v28, 0.0 }
 0xa5f   :  { %v1924_v22 = vpop.f32.mrb[12].mxu0 }
 0xa60   :  { %v1929_v24 = vmul.f32 0.35355338, %v1924_v22  ;;  %v7962_v25 = vpop.f32.mrb[13].mxu0  ;;  %v397_v22 = vld [vmem:[#allocation20 + $0x38] sm:$0xff] }
 0xa61   :  { %v398_v25 = vld [vmem:[#allocation20 + $0x40] sm:$0xff] }
 0xa62   :  { %v1931_v26 = vadd.f32 %v9755_v23, %v1929_v24  ;;  %v8410_v24 = vpack.c.bf16 %v397_v22, %v396_v21 }
 0xa64   :  { %v1935_v27 = vsel %vm517_vm2, %v1931_v26, -inf }
 0xa65   :  { %1936 = vmax.xlane.f32.xlu0 %v1935_v27 }
 0xa69   :  { %1945 = vadd.xlane.f32.xlu0 %v1944_v29  ;;  %v401_v29 = vld [vmem:[#allocation20 + $0x58] sm:$0xff] }
 0xa7f   :  { %1954 = vrot.lane.b32.xlu0 %v9725_v12, %s9370_s21 }
 0xaf2   :  { %v1937_v18 = vpop.xlane.xlu0 %1936 }
 0xaf3   :  { %v1939_v30 = vsub.f32 %v1931_v26, %v1937_v18  ;;  %v399_v26 = vld [vmem:[#allocation20 + $0x48] sm:$0xff] }
 0xaf4   :  { %v8414_v27 = vpack.c.bf16 %v399_v26, %v398_v25 }
 0xaf5   :  { %v1942_v31 = vmul.f32 1.442695, %v1939_v30  ;;  %v402_v30 = vld [vmem:[#allocation20 + $0x60] sm:$0xff] }
 0xaf6   :  { %v1946_v32 = vpop.xlane.xlu0 %1945 }
 0xaf7   :  { %8786 = vpow2.f32 %v1942_v31  ;;  %v403_v31 = vld [vmem:[#allocation20 + $0x68] sm:$0xff] }
 0xaf8   :  { %8788 = vrcp.f32 %v1946_v32  ;;  %v8422_v32 = vpack.c.bf16 %v403_v31, %v402_v30 }
 0xafa   :  { %v1955_v33 = vpop.permute.xlu0 %1954 }
 0xafb   :  { %7964 = vmatpush3.msra.mxu1 %v1955_v33 }
 0xafc   :  { %8391 = vmatprep.subr.bf16.mxu1 %v8390_v0 }
 0xb01   :  { %v8787_v23 = vpop.eup %8786 }
 0xb02   :  { %v8789_v34 = vpop.eup %8788  ;;  %v1947_v35 = vsel %vm517_vm2, %v8787_v23, 0.0 }
 0xb03   :  { %1948 = vadd.xlane.f32.xlu1 %v1947_v35  ;;  %v1952_v36 = vmul.f32 %v8789_v34, %v8785_v28  ;;  %v400_v28 = vld [vmem:[#allocation20 + $0x50] sm:$0xff] }
 0xb04   :  { %v8418_v18 = vpack.c.bf16 %v401_v29, %v400_v28 }
 0xb05   :  { %7966 = vmatmul.mubr.msk.f32.vlgmr.msra.gmra.mrb[18].mxu1 %vm517_vm2, %v1952_v36 }
 0xb06   :  { %8393 = vmatpush3.bf16.msra.mxu1 %v8390_v0 }
 0xb07   :  { %8395 = vmatprep.subr.bf16.mxu1 %v8394_v2 }
 0xb0a   :  { %8397 = vmatpush3.bf16.msra.mxu1 %v8394_v2 }
 0xb0b   :  { %8431 = vmatprep.subr.bf16.mxu1 %v8430_v6 }
 0xb14   :  { %2030 = vrot.lane.b32.xlu1 %v9729_v13, %s9370_s21  ;;  %v7428_v13 = vld [vmem:[%s10549_s26] ss:$0 sm:$0xff] }
 0xb90   :  { %v1949_v12 = vpop.xlane.xlu1 %1948 }
 0xb91   :  { %8790 = vrcp.f32 %v1949_v12 }
 0xb94   :  { %v2031_v38 = vpop.permute.xlu1 %2030 }
 0xb95   :  { %7969 = vmatpush3.msra.mxu0 %v2031_v38  ;;  %v7429_v38 = vld [vmem:[%s10550_s30] ss:$0 sm:$0xff] }
 0xb96   :  { %7973 = vmatprep.subr.mxu0 %v413_v37 }
 0xb9b   :  { %v8791_v39 = vpop.eup %8790 }
 0xb9c   :  { %v1953_v40 = vmul.f32 %v8791_v39, %v8787_v23 }
 0xb9e   :  { %7971 = vmatmul.mubr.msk.f32.vlgmr.msra.gmra.mrb[14].mxu0 %vm517_vm2, %v1953_v40 }
 0xb9f   :  { %7974 = vmatpush3.msra.mxu0 %v413_v37 }
 0xba0   :  { %8399 = vmatprep.subr.bf16.mxu0 %v8398_v14 }
 0xbd8   :  { %v2026_v41 = vpop.f32.mrb[18].mxu1 }
 0xbd9   :  { %v7967_v42 = vpop.f32.mrb[19].mxu1  ;;  %7975 = vmatprep.mubr.msk.f32.mxu0 %vm517_vm2, %v2026_v41 }
 0xbda   :  { %v7430_v42 = vld [vmem:[%s10551_s28] ss:$0 sm:$0xff] }
 0xc71   :  { %v2102_v43 = vpop.f32.mrb[14].mxu0 }
 0xc72   :  { %v7972_v44 = vpop.f32.mrb[15].mxu0  ;;  %7976 = vmatmul.mubr.msk.f32.vlgmr.msra.gmra.mrb[8].mxu0 %vm517_vm2, %v2102_v43 }
 0xc73   :  { %8401 = vmatpush3.bf16.msra.mxu0 %v8398_v14 }
 0xc74   :  { %8403 = vmatprep.subr.bf16.mxu0 %v8402_v16 }
 0xc77   :  { %8405 = vmatpush3.bf16.msra.mxu0 %v8402_v16 }
 0xc78   :  { %8407 = vmatprep.subr.bf16.mxu0 %v8406_v20 }
 0xc7b   :  { %8409 = vmatpush3.bf16.msra.mxu0 %v8406_v20 }
 0xc7c   :  { %8411 = vmatprep.subr.bf16.mxu0 %v8410_v24 }
 0xc7f   :  { %8413 = vmatpush3.bf16.msra.mxu0 %v8410_v24 }
 0xc80   :  { %8415 = vmatprep.subr.bf16.mxu0 %v8414_v27 }
 0xc83   :  { %8417 = vmatpush3.bf16.msra.mxu0 %v8414_v27 }
 0xc84   :  { %8419 = vmatprep.subr.bf16.mxu0 %v8418_v18 }
 0xc87   :  { %8421 = vmatpush3.bf16.msra.mxu0 %v8418_v18 }
 0xc88   :  { %8423 = vmatprep.subr.bf16.mxu0 %v8422_v32 }
 0xc8b   :  { %8425 = vmatpush3.bf16.msra.mxu0 %v8422_v32 }
 0xd45   :  { %v7977_v45 = vpop.f32.mrb[8].mxu0 }
 0xd46   :  { %v2196_v46 = vadd.f32 %v7977_v45, %v7428_v13  ;;  %v2178_v47 = vpop.f32.mrb[9].mxu0  ;;  %v381_v45 = vld [vmem:[#allocation17 + $0x18] sm:$0xff] }
 0xd47   :  { %v2195_v48 = vadd.f32 %v7428_v13, %v2178_v47  ;;  %v380_v13 = vld [vmem:[#allocation17 + $0x10] sm:$0xff] }
 0xd48   :  { %v2198_v49 = vadd.f32 %v2196_v46, %v9714_v7 }
 0xd49   :  { %v2197_v51 = vadd.f32 %v2195_v48, %v9710_v5  ;;  %v8434_v48 = vpack.c.bf16 %v381_v45, %v380_v13 }
 0xd4a   :  { %v2202_v52 = vsel %vm432_vm0, %v2198_v49, 0.0 }
 0xd4b   :  { %2203 = vadd.xlane.f32.xlu0 %v2202_v52  ;;  %v2199_v53 = vsel %vm432_vm0, %v2197_v51, 0.0  ;;  %v422_v52 = vld [vmem:[#allocation5 + $0x10] sm:$0xff] }
 0xd4c   :  { %2200 = vadd.xlane.f32.xlu1 %v2199_v53  ;;  %v423_v53 = vld [vmem:[#allocation5 + $0x18] sm:$0xff] }
 0xdd8   :  { %v2204_v54 = vpop.xlane.xlu0 %2203 }
 0xdd9   :  { %v2207_v55 = vmul.f32 0.03125, %v2204_v54  ;;  %v2201_v50 = vpop.xlane.xlu1 %2200  ;;  %v404_v54 = vld [vmem:[#allocation20 + $0x70] sm:$0xff] }
 0xdda   :  { %v2206_v56 = vmul.f32 0.03125, %v2201_v50 }
 0xddb   :  { %v9894_v57 = vsub.f32 %v2198_v49, %v2207_v55  ;;  %v420_v49 = vld [vmem:[#allocation5] sm:$0xff]  ;;  %v405_v55 = vld [vmem:[#allocation20 + $0x78] sm:$0xff] }
 0xddc   :  { %v9896_v58 = vsub.f32 %v2197_v51, %v2206_v56  ;;  %v9917_v51 = vld [vmem:[#allocation5 + $0x8] sm:$0xff]  ;;  %v8426_v50 = vpack.c.bf16 %v405_v55, %v404_v54  ;;  %v7431_v56 = vld [vmem:[%s10552_s0] ss:$0 sm:$0xff] }
 0xddd   :  { %v2211_v59 = vmul.f32 %v9894_v57, %v9894_v57 }
 0xdde   :  { %v2210_v5 = vmul.f32 %v9896_v58, %v9896_v58  ;;  %8427 = vmatprep.subr.bf16.mxu0 %v8426_v50 }
 0xddf   :  { %v2215_v7 = vsel %vm432_vm0, %v2211_v59, 0.0  ;;  %8429 = vmatpush3.bf16.msra.mxu0 %v8426_v50 }
 0xde0   :  { %2216 = vadd.xlane.f32.xlu1 %v2215_v7  ;;  %v2212_v60 = vsel %vm432_vm0, %v2210_v5, 0.0 }
 0xde1   :  { %2213 = vadd.xlane.f32.xlu0 %v2212_v60 }
 0xe6d   :  { %v2217_v33 = vpop.xlane.xlu1 %2216 }
 0xe6e   :  { %v2219_v23 = vmul.f32 0.03125, %v2217_v33  ;;  %v2214_v34 = vpop.xlane.xlu0 %2213 }
 0xe6f   :  { %v2218_v35 = vmul.f32 0.03125, %v2214_v34 }
 0xe70   :  { %v2221_v36 = vadd.f32 1e-06, %v2219_v23 }
 0xe71   :  { %v2220_v12 = vadd.f32 1e-06, %v2218_v35 }
 0xe72   :  { %8792 = vrsqrt.f32 %v2221_v36 }
 0xe73   :  { %8794 = vrsqrt.f32 %v2220_v12 }
 0xe7c   :  { %v8793_v37 = vpop.eup %8792 }
 0xe7d   :  { %v8795_v39 = vpop.eup %8794  ;;  %v2225_v40 = vmul.f32 %v8793_v37, %v9894_v57 }
 0xe7e   :  { %v2224_v41 = vmul.f32 %v8795_v39, %v9896_v58 }
 0xe7f   :  { %v2233_v43 = vmul.f32 %v7429_v38, %v2225_v40 }
 0xe80   :  { %v2232_v44 = vmul.f32 %v7429_v38, %v2224_v41 }
 0xe81   :  { %v9910_v47 = vadd.f32 %v7430_v42, %v2233_v43 }
 0xe82   :  { %v9908_v46 = vadd.f32 %v7430_v42, %v2232_v44 }
 0xe84   :  { %7986 = vmatprep.mubr.msk.f32.mxu1 %vm432_vm0, %v9908_v46 }
 0xe85   :  { %7987 = vmatmul.mubr.msk.f32.vlgmr.msra.gmra.mrb[20].mxu1 %vm432_vm0, %v9910_v47 }
 0xe86   :  { %8433 = vmatpush3.bf16.msra.mxu1 %v8430_v6  ;;  %8032 = vmatprep.mubr.msk.f32.mxu1 %vm432_vm0, %v420_v49 }
 0xe87   :  { %8435 = vmatprep.subr.bf16.mxu1 %v8434_v48 }
 0xe8a   :  { %8437 = vmatpush3.bf16.msra.mxu1 %v8434_v48 }
 0xe8d   :  { %8033 = vmatmul.mubr.msk.f32.vlgmr.msra.gmra.mrb[22].mxu1 %vm432_vm0, %v9917_v51 }
 0xe8e   :  { %8035 = vmatprep.mubr.msk.f32.mxu1 %vm432_vm0, %v422_v52 }
 0xe91   :  { %8036 = vmatmul.mubr.msk.f32.gmra.mrb[24].mxu1 %vm432_vm0, %v423_v53 }
 0xf58   :  { %v7988_v57 = vpop.f32.mrb[20].mxu1 }
 0xf59   :  { %v2326_v58 = vadd.f32 %v7988_v57, %v7431_v56  ;;  %v2320_v59 = vpop.f32.mrb[21].mxu1 }
 0xf5a   :  { %v2321_v5 = vadd.f32 %v7431_v56, %v2320_v59 }
 0xf5b   :  { %v2330_v60 = vmax.f32 %v2326_v58, 0.0 }
 0xf5c   :  { %v2329_v7 = vmax.f32 %v2321_v5, 0.0 }
 0xf5e   :  { %8021 = vmatprep.mubr.f32.mxu0 %v2329_v7 }
 0xf5f   :  { %8022 = vmatmul.mubr.f32.vlgmr.msra.gmra.mrb[16].mxu0 %v2330_v60 }
 0xf60   :  { %v8034_v62 = vpop.f32.mrb[22].mxu1 }
 0xf61   :  { %v9925_v63 = vadd.f32 %v8034_v62, %v7437_v61  ;;  %v2540_v0 = vpop.f32.mrb[23].mxu1 }
 0xf62   :  { %v9927_v1 = vadd.f32 %v7437_v61, %v2540_v0 }
 0xf64   :  { %8042 = vmatprep.mubr.msk.f32.mxu1 %vm517_vm2, %v9927_v1  ;;  %v9933_v2 = vpack.i.bf16 %v9925_v63, %v9927_v1  ;;  %v8037_v3 = vpop.f32.mrb[24].mxu1 }
 0xf65   :  { %v9935_v4 = vadd.f32 %v8037_v3, %v7437_v61  ;;  %v2550_v6 = vpop.f32.mrb[25].mxu1 }
 0xf66   :  { %8681 = vrot.lane.b32.xlu0 %v9933_v2, %s9360_s20  ;;  %v9939_v9 = vadd.f32 %v7437_v61, %v2550_v6 }
 0xf68   :  { %v9943_v10 = vpack.i.bf16 %v9935_v4, %v9939_v9 }
 0xf6a   :  { %8686 = vrot.lane.b32.xlu1 %v9943_v10, %s9360_s20 }
 0xfd8   :  { %v8682_v11 = vpop.permute.xlu0 %8681 }
 0xfd9   :  { %v8684_v14 = vunpack.i.h.bf16 %v8682_v11  ;;  %v8683_v15 = vunpack.i.l.bf16 %v8682_v11 }
 0xfdb   :  { %v8438_v17 = vpack.c.bf16 %v8684_v14, %v8683_v15 }
 0xfdc   :  { %v8687_v19 = vpop.permute.xlu1 %8686 }
 0xfdd   :  { %8440 = vmatprep.subr.msk.bf16.mxu1 %vm9949_vm3, %v8438_v17  ;;  %v8689_v20 = vunpack.i.h.bf16 %v8687_v19  ;;  %v8688_v21 = vunpack.i.l.bf16 %v8687_v19 }
 0xfde   :  { %8443 = vmatpush3.bf16.xpose.msk.msra.mxu1 %vm9949_vm3, %v8438_v17 }
 0xfdf   :  { %v8444_v22 = vpack.c.bf16 %v8689_v20, %v8688_v21 }
 0xfe1   :  { %8446 = vmatprep.subr.msk.bf16.mxu1 %vm9949_vm3, %v8444_v22 }
 0xfe5   :  { %8043 = vmatmul.mubr.msk.f32.vlgmr.msra.gmra.mrb[26].mxu1 %vm517_vm2, %v9925_v63 }
 0xfe6   :  { %8449 = vmatpush3.bf16.xpose.msk.msra.mxu1 %vm9949_vm3, %v8444_v22  ;;  %8049 = vmatprep.mubr.msk.f32.mxu1 %vm517_vm2, %v9939_v9 }
 0xfed   :  { %8050 = vmatmul.mubr.msk.f32.vlgmr.msra.gmra.mrb[28].mxu1 %vm517_vm2, %v9935_v4 }
0x1032   :  { %v9967_v24 = vpop.f32.mrb[16].mxu0 }
0x1033   :  { %v9969_v25 = vpop.f32.mrb[17].mxu0 }
0x10b8   :  { %v8044_v26 = vpop.f32.mrb[26].mxu1 }
0x10b9   :  { %v2738_v27 = vmul.f32 0.35355338, %v8044_v26  ;;  %v2639_v28 = vpop.f32.mrb[27].mxu1 }
0x10ba   :  { %v2737_v29 = vmul.f32 0.35355338, %v2639_v28 }
0x10bb   :  { %v2745_v18 = vsel %vm2741_vm4, %v2738_v27, -inf }
0x10bc   :  { %2746 = vmax.xlane.f32.xlu0 %v2745_v18  ;;  %v2742_v30 = vsel %vm2741_vm4, %v2737_v29, -inf }
0x10bd   :  { %2743 = vmax.xlane.f32.xlu1 %v2742_v30 }
0x10c0   :  { %v8051_v31 = vpop.f32.mrb[28].mxu1 }
0x10c1   :  { %v2740_v32 = vmul.f32 0.35355338, %v8051_v31  ;;  %v2728_v33 = vpop.f32.mrb[29].mxu1 }
0x10c2   :  { %v2739_v23 = vmul.f32 0.35355338, %v2728_v33 }
0x10c3   :  { %v2751_v34 = vsel %vm2741_vm4, %v2740_v32, -inf }
0x10c4   :  { %2752 = vmax.xlane.f32.xlu1 %v2751_v34  ;;  %v2748_v35 = vsel %vm2741_vm4, %v2739_v23, -inf }
0x10c5   :  { %2749 = vmax.xlane.f32.xlu0 %v2748_v35 }
0x1149   :  { %v2747_v36 = vpop.xlane.xlu0 %2746 }
0x114a   :  { %v2755_v12 = vsub.f32 %v2738_v27, %v2747_v36  ;;  %v2744_v37 = vpop.xlane.xlu1 %2743 }
0x114b   :  { %v2754_v38 = vsub.f32 %v2737_v29, %v2744_v37 }
0x114c   :  { %v2760_v39 = vmul.f32 1.442695, %v2755_v12 }
0x114d   :  { %v2758_v40 = vmul.f32 1.442695, %v2754_v38 }
0x114e   :  { %8796 = vpow2.f32 %v2760_v39 }
0x114f   :  { %8798 = vpow2.f32 %v2758_v40 }
0x1151   :  { %v2753_v41 = vpop.xlane.xlu1 %2752 }
0x1152   :  { %v2757_v42 = vsub.f32 %v2740_v32, %v2753_v41  ;;  %v2750_v43 = vpop.xlane.xlu0 %2749 }
0x1153   :  { %v2756_v44 = vsub.f32 %v2739_v23, %v2750_v43 }
0x1154   :  { %v2764_v13 = vmul.f32 1.442695, %v2757_v42 }
0x1155   :  { %v2762_v45 = vmul.f32 1.442695, %v2756_v44 }
0x1156   :  { %8800 = vpow2.f32 %v2764_v13 }
0x1157   :  { %8802 = vpow2.f32 %v2762_v45 }
0x1158   :  { %v8797_v48 = vpop.eup %8796 }
0x1159   :  { %v8799_v49 = vpop.eup %8798  ;;  %v2769_v52 = vsel %vm2741_vm4, %v8797_v48, 0.0 }
0x115a   :  { %2770 = vadd.xlane.f32.xlu1 %v2769_v52  ;;  %v2766_v53 = vsel %vm2741_vm4, %v8799_v49, 0.0 }
0x115b   :  { %2767 = vadd.xlane.f32.xlu0 %v2766_v53 }
0x1160   :  { %v8801_v54 = vpop.eup %8800 }
0x1161   :  { %v8803_v55 = vpop.eup %8802  ;;  %v2775_v50 = vsel %vm2741_vm4, %v8801_v54, 0.0 }
0x1162   :  { %2776 = vadd.xlane.f32.xlu1 %v2775_v50  ;;  %v2772_v56 = vsel %vm2741_vm4, %v8803_v55, 0.0 }
0x1163   :  { %2773 = vadd.xlane.f32.xlu0 %v2772_v56 }
0x1173   :  { %8696 = vrot.lane.b32.xlu1 %v9943_v10, %s9361_s27 }
0x1177   :  { %8701 = vrot.lane.b32.xlu1 %v9943_v10, %s9363_s14 }
0x1179   :  { %8691 = vrot.lane.b32.xlu0 %v9933_v2, %s9361_s27  ;;  %s10568_s27 = sld [smem:[#allocation37_spill]] }
0x117b   :  { %3053 = vrot.lane.b32.xlu1 %v9935_v4, %s9362_s4 }
0x117d   :  { %3051 = vrot.lane.b32.xlu0 %v9939_v9, %s9362_s4 }
0x117f   :  { %2960 = vrot.lane.b32.xlu1 %v9927_v1, %s9362_s4 }
0x1181   :  { %8706 = vrot.lane.b32.xlu0 %v9933_v2, %s9363_s14 }
0x1185   :  { %2962 = vrot.lane.b32.xlu0 %v9925_v63, %s9362_s4 }
0x11e7   :  { %v2771_v58 = vpop.xlane.xlu1 %2770 }
0x11e8   :  { %v2768_v57 = vpop.xlane.xlu0 %2767 }
0x11e9   :  { %8804 = vrcp.f32 %v2768_v57 }
0x11ea   :  { %8806 = vrcp.f32 %v2771_v58 }
0x11ef   :  { %v2777_v59 = vpop.xlane.xlu1 %2776 }
0x11f0   :  { %v2774_v5 = vpop.xlane.xlu0 %2773 }
0x11f1   :  { %8808 = vrcp.f32 %v2774_v5 }
0x11f2   :  { %8810 = vrcp.f32 %v2777_v59 }
0x11f3   :  { %v8805_v7 = vpop.eup %8804  ;;  %v8697_v60 = vpop.permute.xlu1 %8696 }
0x11f4   :  { %v8692_v61 = vpop.permute.xlu0 %8691  ;;  %v2782_v62 = vmul.f32 %v8805_v7, %v8799_v49  ;;  %v8699_v0 = vunpack.i.h.bf16 %v8697_v60  ;;  %v8698_v3 = vunpack.i.l.bf16 %v8697_v60  ;;  %v8807_v17 = vpop.eup %8806 }
0x11f5   :  { %v8694_v6 = vunpack.i.h.bf16 %v8692_v61  ;;  %v8693_v11 = vunpack.i.l.bf16 %v8692_v61  ;;  %v2783_v28 = vmul.f32 %v8807_v17, %v8797_v48 }
0x11f6   :  { %8056 = vmatprep.mubr.msk.f32.mxu1 %vm2741_vm4, %v2782_v62  ;;  %v8454_v22 = vpack.c.bf16 %v8699_v0, %v8698_v3 }
0x11f7   :  { %v8702_v14 = vpop.permute.xlu1 %8701  ;;  %v8450_v15 = vpack.c.bf16 %v8694_v6, %v8693_v11 }
0x11f8   :  { %v3052_v19 = vpop.permute.xlu0 %3051  ;;  %v8704_v20 = vunpack.i.h.bf16 %v8702_v14  ;;  %v8703_v21 = vunpack.i.l.bf16 %v8702_v14 }
0x11f9   :  { %8451 = vmatprep.subr.bf16.mxu1 %v8450_v15 }
0x11fa   :  { %8453 = vmatpush3.bf16.msra.mxu1 %v8450_v15  ;;  %v8464_v31 = vpack.c.bf16 %v8704_v20, %v8703_v21 }
0x11fb   :  { %v8809_v26 = vpop.eup %8808  ;;  %v3054_v27 = vpop.permute.xlu1 %3053  ;;  %8455 = vmatprep.subr.bf16.mxu1 %v8454_v22 }
0x11fc   :  { %v8811_v29 = vpop.eup %8810  ;;  %v8707_v18 = vpop.permute.xlu0 %8706  ;;  %v2784_v30 = vmul.f32 %v8809_v26, %v8803_v55 }
0x11fd   :  { %v8709_v32 = vunpack.i.h.bf16 %v8707_v18  ;;  %v8708_v33 = vunpack.i.l.bf16 %v8707_v18  ;;  %8057 = vmatmul.mubr.msk.f32.vlgmr.msra.gmra.mrb[30].mxu1 %vm2741_vm4, %v2783_v28  ;;  %v2785_v35 = vmul.f32 %v8811_v29, %v8801_v54 }
0x11fe   :  { %8457 = vmatpush3.bf16.msra.mxu1 %v8454_v22  ;;  %8063 = vmatprep.mubr.msk.f32.mxu1 %vm2741_vm4, %v2784_v30 }
0x11ff   :  { %v8458_v23 = vpack.c.bf16 %v8709_v32, %v8708_v33  ;;  %v2961_v34 = vpop.permute.xlu1 %2960  ;;  %8466 = vmatprep.subr.msk.bf16.mxu1 %vm9949_vm3, %v8464_v31 }
0x1200   :  { %8070 = vmatprep.mubr.msk.f32.mxu0 %vm517_vm2, %v2961_v34  ;;  %v2963_v36 = vpop.permute.xlu0 %2962 }
0x1201   :  { %8064 = vmatmul.mubr.msk.f32.vlgmr.msra.gmra.mrb[32].mxu1 %vm2741_vm4, %v2785_v35  ;;  %8460 = vmatprep.subr.msk.bf16.mxu0 %vm9949_vm3, %v8458_v23 }
0x1202   :  { %8463 = vmatpush3.bf16.xpose.msk.msra.mxu0 %vm9949_vm3, %v8458_v23  ;;  %8077 = vmatprep.mubr.msk.f32.mxu1 %vm517_vm2, %v3052_v19 }
0x1207   :  { %8469 = vmatpush3.bf16.xpose.msk.msra.mxu1 %vm9949_vm3, %v8464_v31 }
0x1209   :  { %8071 = vmatmul.mubr.msk.f32.vlgmr.msra.gmra.mrb[18].mxu0 %vm517_vm2, %v2963_v36 }
0x120e   :  { %8078 = vmatmul.mubr.msk.f32.vlgmr.msra.gmra.mrb[34].mxu1 %vm517_vm2, %v3054_v27 }
0x12d0   :  { %v10011_v12 = vpop.f32.mrb[30].mxu1 }
0x12d1   :  { %v10013_v37 = vpop.f32.mrb[31].mxu1 }
0x12d4   :  { %v10015_v38 = vpop.f32.mrb[32].mxu1 }
0x12d5   :  { %v10017_v39 = vpop.f32.mrb[33].mxu1 }
0x12dc   :  { %v8072_v40 = vpop.f32.mrb[18].mxu0 }
0x12dd   :  { %v3042_v41 = vpop.f32.mrb[19].mxu0  ;;  %v3143_v7 = vmul.f32 0.35355338, %v8072_v40 }
0x12de   :  { %v3142_v5 = vmul.f32 0.35355338, %v3042_v41 }
0x12df   :  { %v3149_v61 = vsel %vm2741_vm4, %v3143_v7, -inf }
0x12e0   :  { %v3146_v60 = vsel %vm2741_vm4, %v3142_v5, -inf }
0x12e1   :  { %v8079_v42 = vpop.f32.mrb[34].mxu1 }
0x12e2   :  { %v3145_v43 = vmul.f32 0.35355338, %v8079_v42  ;;  %v3133_v44 = vpop.f32.mrb[35].mxu1 }
0x12e3   :  { %v3144_v13 = vmul.f32 0.35355338, %v3133_v44 }
0x12e4   :  { %v3155_v45 = vsel %vm2741_vm4, %v3145_v43, -inf }
0x12e5   :  { %3156 = vmax.xlane.f32.xlu0 %v3155_v45  ;;  %v3152_v48 = vsel %vm2741_vm4, %v3144_v13, -inf }
0x12e6   :  { %3153 = vmax.xlane.f32.xlu1 %v3152_v48 }
0x1372   :  { %v3157_v49 = vpop.xlane.xlu0 %3156 }
0x1373   :  { %v3161_v52 = vsub.f32 %v3145_v43, %v3157_v49  ;;  %v3154_v53 = vpop.xlane.xlu1 %3153 }
0x1374   :  { %v3160_v54 = vsub.f32 %v3144_v13, %v3154_v53 }
0x1375   :  { %v3168_v55 = vmul.f32 1.442695, %v3161_v52 }
0x1376   :  { %v3166_v50 = vmul.f32 1.442695, %v3160_v54 }
0x1377   :  { %8812 = vpow2.f32 %v3168_v55 }
0x1378   :  { %8814 = vpow2.f32 %v3166_v50 }
0x1381   :  { %v8813_v56 = vpop.eup %8812 }
0x1382   :  { %v8815_v57 = vpop.eup %8814  ;;  %v3179_v58 = vsel %vm2741_vm4, %v8813_v56, 0.0 }
0x1383   :  { %3180 = vadd.xlane.f32.xlu1 %v3179_v58  ;;  %v3176_v59 = vsel %vm2741_vm4, %v8815_v57, 0.0 }
0x1384   :  { %3177 = vadd.xlane.f32.xlu0 %v3176_v59 }
0x1394   :  { %8716 = vrot.lane.b32.xlu1 %v9933_v2, %s9364_s2 }
0x1398   :  { %8721 = vrot.lane.b32.xlu1 %v9943_v10, %s9364_s2 }
0x139a   :  { %8711 = vrot.lane.b32.xlu0 %v9943_v10, %s9365_s7 }
0x139c   :  { %3560 = vrot.lane.b32.xlu1 %v9925_v63, %s9366_s18 }
0x139e   :  { %3558 = vrot.lane.b32.xlu0 %v9927_v1, %s9366_s18 }
0x13a0   :  { %3651 = vrot.lane.b32.xlu1 %v9935_v4, %s9366_s18 }
0x13a2   :  { %3649 = vrot.lane.b32.xlu0 %v9939_v9, %s9366_s18 }
0x13c1   :  { %3147 = vmax.xlane.f32.xlu0 %v3146_v60 }
0x13c4   :  { %3150 = vmax.xlane.f32.xlu1 %v3149_v61 }
0x13d5   :  { %8726 = vrot.lane.b32.xlu1 %v9933_v2, %s9365_s7 }
0x1410   :  { %v3181_v62 = vpop.xlane.xlu1 %3180 }
0x1411   :  { %8816 = vrcp.f32 %v3181_v62  ;;  %v3178_v0 = vpop.xlane.xlu0 %3177 }
0x1412   :  { %8818 = vrcp.f32 %v3178_v0 }
0x1414   :  { %v8717_v3 = vpop.permute.xlu1 %8716 }
0x1415   :  { %v8712_v6 = vpop.permute.xlu0 %8711  ;;  %v8719_v11 = vunpack.i.h.bf16 %v8717_v3  ;;  %v8718_v14 = vunpack.i.l.bf16 %v8717_v3 }
0x1416   :  { %v8714_v15 = vunpack.i.h.bf16 %v8712_v6  ;;  %v8713_v17 = vunpack.i.l.bf16 %v8712_v6 }
0x1417   :  { %v8478_v20 = vpack.c.bf16 %v8719_v11, %v8718_v14 }
0x1418   :  { %v8474_v19 = vpack.c.bf16 %v8714_v15, %v8713_v17  ;;  %v8722_v26 = vpop.permute.xlu1 %8721 }
0x1419   :  { %v8724_v29 = vunpack.i.h.bf16 %v8722_v26  ;;  %v8723_v18 = vunpack.i.l.bf16 %v8722_v26  ;;  %v3559_v30 = vpop.permute.xlu0 %3558 }
0x141a   :  { %8475 = vmatprep.subr.bf16.mxu1 %v8474_v19 }
0x141b   :  { %v8817_v21 = vpop.eup %8816  ;;  %8477 = vmatpush3.bf16.msra.mxu1 %v8474_v19  ;;  %v8484_v31 = vpack.c.bf16 %v8724_v29, %v8723_v18 }
0x141c   :  { %v8819_v22 = vpop.eup %8818  ;;  %8480 = vmatprep.subr.msk.bf16.mxu1 %vm9949_vm3, %v8478_v20  ;;  %v3189_v28 = vmul.f32 %v8817_v21, %v8813_v56  ;;  %v3561_v32 = vpop.permute.xlu1 %3560  ;;  %v374_v21 = vld [vmem:[#allocation16] sm:$0xff] }
0x141d   :  { %v3188_v27 = vmul.f32 %v8819_v22, %v8815_v57  ;;  %v3650_v33 = vpop.permute.xlu0 %3649 }
0x141f   :  { %8091 = vmatprep.mubr.msk.f32.mxu1 %vm2741_vm4, %v3188_v27 }
0x1420   :  { %8092 = vmatmul.mubr.msk.f32.vlgmr.msra.gmra.mrb[36].mxu1 %vm2741_vm4, %v3189_v28  ;;  %v3652_v23 = vpop.permute.xlu1 %3651 }
0x1421   :  { %8114 = vmatprep.mubr.msk.f32.mxu1 %vm517_vm2, %v3559_v30 }
0x1424   :  { %8483 = vmatpush3.bf16.xpose.msk.msra.mxu1 %vm9949_vm3, %v8478_v20  ;;  %v375_v20 = vld [vmem:[#allocation16 + $0x8] sm:$0xff] }
0x1425   :  { %8486 = vmatprep.subr.msk.bf16.mxu1 %vm9949_vm3, %v8484_v31 }
0x142b   :  { %8115 = vmatmul.mubr.msk.f32.vlgmr.msra.gmra.mrb[38].mxu1 %vm517_vm2, %v3561_v32 }
0x142c   :  { %8489 = vmatpush3.bf16.xpose.msk.msra.mxu1 %vm9949_vm3, %v8484_v31  ;;  %8121 = vmatprep.mubr.msk.f32.mxu1 %vm517_vm2, %v3650_v33 }
0x1433   :  { %8122 = vmatmul.mubr.msk.f32.vlgmr.msra.gmra.mrb[40].mxu1 %vm517_vm2, %v3652_v23 }
0x144e   :  { %v3148_v34 = vpop.xlane.xlu0 %3147 }
0x144f   :  { %v3158_v35 = vsub.f32 %v3142_v5, %v3148_v34 }
0x1451   :  { %v3162_v36 = vmul.f32 1.442695, %v3158_v35  ;;  %v3151_v40 = vpop.xlane.xlu1 %3150 }
0x1452   :  { %v3159_v41 = vsub.f32 %v3143_v7, %v3151_v40 }
0x1453   :  { %8820 = vpow2.f32 %v3162_v36 }
0x1454   :  { %v3164_v42 = vmul.f32 1.442695, %v3159_v41 }
0x1455   :  { %v8727_v43 = vpop.permute.xlu1 %8726 }
0x1456   :  { %8822 = vpow2.f32 %v3164_v42  ;;  %v8729_v44 = vunpack.i.h.bf16 %v8727_v43  ;;  %v8728_v13 = vunpack.i.l.bf16 %v8727_v43 }
0x1458   :  { %v8470_v45 = vpack.c.bf16 %v8729_v44, %v8728_v13 }
0x145a   :  { %8471 = vmatprep.subr.bf16.mxu0 %v8470_v45 }
0x145b   :  { %8473 = vmatpush3.bf16.msra.mxu0 %v8470_v45 }
0x145c   :  { %8094 = vmatprep.subr.mxu0 %v375_v20 }
0x145d   :  { %v8821_v48 = vpop.eup %8820 }
0x145e   :  { %v3170_v49 = vsel %vm2741_vm4, %v8821_v48, 0.0 }
0x145f   :  { %3171 = vadd.xlane.f32.xlu0 %v3170_v49 }
0x1460   :  { %v8823_v52 = vpop.eup %8822 }
0x1461   :  { %v3173_v53 = vsel %vm2741_vm4, %v8823_v52, 0.0 }
0x1463   :  { %3174 = vadd.xlane.f32.xlu0 %v3173_v53 }
0x14ec   :  { %v3172_v54 = vpop.xlane.xlu0 %3171 }
0x14ed   :  { %8824 = vrcp.f32 %v3172_v54 }
0x14f0   :  { %v3175_v55 = vpop.xlane.xlu0 %3174 }
0x14f1   :  { %8826 = vrcp.f32 %v3175_v55 }
0x14f3   :  { %v10057_v50 = vpop.f32.mrb[36].mxu1 }
0x14f4   :  { %v3355_v56 = vpop.f32.mrb[37].mxu1 }
0x14f7   :  { %v8825_v57 = vpop.eup %8824 }
0x14f8   :  { %v3186_v58 = vmul.f32 %v8825_v57, %v8821_v48 }
0x14fa   :  { %8084 = vmatprep.mubr.msk.f32.mxu0 %vm2741_vm4, %v3186_v58 }
0x14fb   :  { %v8827_v59 = vpop.eup %8826 }
0x14fc   :  { %v3187_v5 = vmul.f32 %v8827_v59, %v8823_v52  ;;  %v376_v52 = vld [vmem:[#allocation16 + $0x10] sm:$0xff] }
0x14fe   :  { %8085 = vmatmul.mubr.msk.f32.vlgmr.msra.gmra.mrb[20].mxu0 %vm2741_vm4, %v3187_v5  ;;  %v8116_v7 = vpop.f32.mrb[38].mxu1 }
0x14ff   :  { %v3741_v60 = vmul.f32 0.35355338, %v8116_v7  ;;  %v3640_v61 = vpop.f32.mrb[39].mxu1  ;;  %8095 = vmatpush3.msra.mxu0 %v375_v20 }
0x1500   :  { %v3740_v62 = vmul.f32 0.35355338, %v3640_v61  ;;  %8102 = vmatprep.subr.mxu0 %v374_v21 }
0x1501   :  { %v3747_v0 = vsel %vm2741_vm4, %v3741_v60, -inf }
0x1502   :  { %3748 = vmax.xlane.f32.xlu0 %v3747_v0  ;;  %v3744_v3 = vsel %vm2741_vm4, %v3740_v62, -inf }
0x1506   :  { %3745 = vmax.xlane.f32.xlu0 %v3744_v3  ;;  %v8123_v6 = vpop.f32.mrb[40].mxu1 }
0x1507   :  { %v3731_v11 = vpop.f32.mrb[41].mxu1  ;;  %v3743_v15 = vmul.f32 0.35355338, %v8123_v6 }
0x1508   :  { %v3742_v14 = vmul.f32 0.35355338, %v3731_v11 }
0x1509   :  { %v3753_v19 = vsel %vm2741_vm4, %v3743_v15, -inf }
0x150a   :  { %v3750_v17 = vsel %vm2741_vm4, %v3742_v14, -inf }
0x150b   :  { %3751 = vmax.xlane.f32.xlu0 %v3750_v17 }
0x150f   :  { %3754 = vmax.xlane.f32.xlu0 %v3753_v19 }
0x158f   :  { %v3749_v22 = vpop.xlane.xlu0 %3748 }
0x1590   :  { %v3757_v26 = vsub.f32 %v3741_v60, %v3749_v22 }
0x1592   :  { %v3762_v27 = vmul.f32 1.442695, %v3757_v26 }
0x1593   :  { %v3746_v28 = vpop.xlane.xlu0 %3745 }
0x1594   :  { %8828 = vpow2.f32 %v3762_v27  ;;  %v3756_v29 = vsub.f32 %v3740_v62, %v3746_v28 }
0x1596   :  { %v3760_v18 = vmul.f32 1.442695, %v3756_v29 }
0x1598   :  { %8830 = vpow2.f32 %v3760_v18  ;;  %v3752_v23 = vpop.xlane.xlu0 %3751 }
0x1599   :  { %v3758_v36 = vsub.f32 %v3742_v14, %v3752_v23 }
0x159b   :  { %v3764_v41 = vmul.f32 1.442695, %v3758_v36 }
0x159c   :  { %v3755_v34 = vpop.xlane.xlu0 %3754 }
0x159d   :  { %v3759_v35 = vsub.f32 %v3743_v15, %v3755_v34 }
0x159e   :  { %v8829_v30 = vpop.eup %8828 }
0x159f   :  { %v3771_v31 = vsel %vm2741_vm4, %v8829_v30, 0.0  ;;  %v3766_v40 = vmul.f32 1.442695, %v3759_v35 }
0x15a0   :  { %3772 = vadd.xlane.f32.xlu0 %v3771_v31 }
0x15a1   :  { %8832 = vpow2.f32 %v3766_v40 }
0x15a2   :  { %v8831_v32 = vpop.eup %8830  ;;  %8834 = vpow2.f32 %v3764_v41 }
0x15a3   :  { %v3768_v33 = vsel %vm2741_vm4, %v8831_v32, 0.0 }
0x15a4   :  { %3769 = vadd.xlane.f32.xlu1 %v3768_v33 }
0x15ab   :  { %v10073_v42 = vpop.eup %8832 }
0x15ac   :  { %v3777_v13 = vsel %vm2741_vm4, %v10073_v42, 0.0  ;;  %v8835_v45 = vpop.eup %8834 }
0x15b5   :  { %8741 = vrot.lane.b32.xlu1 %v9933_v2, %s9368_s23 }
0x15b6   :  { %8731 = vrot.lane.b32.xlu0 %v9933_v2, %s9367_s22 }
0x15b9   :  { %4156 = vrot.lane.b32.xlu1 %v9935_v4, %s9369_s5  ;;  %v3774_v4 = vsel %vm2741_vm4, %v8835_v45, 0.0 }
0x15d1   :  { %v8086_v43 = vpop.f32.mrb[20].mxu0 }
0x15d2   :  { %v3268_v44 = vpop.f32.mrb[21].mxu0 }
0x15d3   :  { %8096 = vmatprep.mubr.msk.f32.mxu0 %vm517_vm2, %v3268_v44 }
0x15d4   :  { %8097 = vmatmul.mubr.msk.f32.vlgmr.msra.gmra.mrb[22].mxu0 %vm517_vm2, %v8086_v43 }
0x15d5   :  { %3778 = vadd.xlane.f32.xlu0 %v3777_v13  ;;  %8099 = vmatprep.mubr.msk.f32.mxu0 %vm517_vm2, %v3355_v56 }
0x15d6   :  { %8103 = vmatpush3.msra.mxu0 %v374_v21 }
0x15d8   :  { %8100 = vmatmul.mubr.msk.f32.gmra.mrb[24].mxu0 %vm517_vm2, %v10057_v50 }
0x15d9   :  { %3775 = vadd.xlane.f32.xlu0 %v3774_v4  ;;  %8104 = vmatprep.mubr.msk.f32.mxu0 %vm517_vm2, %v10013_v37 }
0x15dc   :  { %8105 = vmatmul.mubr.msk.f32.vlgmr.msra.gmra.mrb[22].mxu0 %vm517_vm2, %v10011_v12 }
0x15dd   :  { %8107 = vmatprep.mubr.msk.f32.mxu0 %vm517_vm2, %v10017_v39 }
0x15e0   :  { %8108 = vmatmul.mubr.msk.f32.gmra.mrb[24].mxu0 %vm517_vm2, %v10015_v38 }
0x15ef   :  { %8736 = vrot.lane.b32.xlu0 %v9943_v10, %s9367_s22 }
0x15f3   :  { %8746 = vrot.lane.b32.xlu0 %v9943_v10, %s9368_s23 }
0x15f7   :  { %4063 = vrot.lane.b32.xlu0 %v9927_v1, %s9369_s5 }
0x15fb   :  { %4065 = vrot.lane.b32.xlu0 %v9925_v63, %s9369_s5 }
0x15ff   :  { %4154 = vrot.lane.b32.xlu0 %v9939_v9, %s9369_s5 }
0x162d   :  { %v3773_v12 = vpop.xlane.xlu0 %3772 }
0x162e   :  { %8836 = vrcp.f32 %v3773_v12 }
0x1631   :  { %v3770_v37 = vpop.xlane.xlu1 %3769  ;;  %v8732_v39 = vpop.permute.xlu0 %8731 }
0x1632   :  { %8838 = vrcp.f32 %v3770_v37  ;;  %v8734_v38 = vunpack.i.h.bf16 %v8732_v39  ;;  %v8733_v48 = vunpack.i.l.bf16 %v8732_v39 }
0x1634   :  { %v8490_v49 = vpack.c.bf16 %v8734_v38, %v8733_v48 }
0x1635   :  { %v8742_v50 = vpop.permute.xlu1 %8741 }
0x1636   :  { %8491 = vmatprep.subr.bf16.mxu0 %v8490_v49  ;;  %v8744_v57 = vunpack.i.h.bf16 %v8742_v50  ;;  %v8743_v58 = vunpack.i.l.bf16 %v8742_v50 }
0x1637   :  { %8493 = vmatpush3.bf16.msra.mxu0 %v8490_v49 }
0x1638   :  { %8138 = vmatprep.subr.mxu0 %v376_v52  ;;  %v8837_v53 = vpop.eup %8836  ;;  %v8498_v61 = vpack.c.bf16 %v8744_v57, %v8743_v58 }
0x1639   :  { %v3785_v55 = vmul.f32 %v8837_v53, %v8829_v30  ;;  %v4157_v28 = vpop.permute.xlu1 %4156 }
0x163c   :  { %v8839_v1 = vpop.eup %8838 }
0x163d   :  { %v3784_v54 = vmul.f32 %v8839_v1, %v8831_v32 }
0x163f   :  { %8128 = vmatprep.mubr.msk.f32.mxu0 %vm2741_vm4, %v3784_v54 }
0x1640   :  { %8129 = vmatmul.mubr.msk.f32.vlgmr.msra.gmra.mrb[26].mxu0 %vm2741_vm4, %v3785_v55 }
0x1641   :  { %8139 = vmatpush3.msra.mxu0 %v376_v52 }
0x1662   :  { %v3779_v63 = vpop.xlane.xlu0 %3778 }
0x1663   :  { %8840 = vrcp.f32 %v3779_v63 }
0x1666   :  { %v3776_v9 = vpop.xlane.xlu0 %3775 }
0x1667   :  { %8842 = vrcp.f32 %v3776_v9 }
0x166a   :  { %v8737_v56 = vpop.permute.xlu0 %8736 }
0x166b   :  { %v8739_v59 = vunpack.i.h.bf16 %v8737_v56  ;;  %v8738_v5 = vunpack.i.l.bf16 %v8737_v56 }
0x166d   :  { %v8494_v7 = vpack.c.bf16 %v8739_v59, %v8738_v5  ;;  %v8841_v3 = vpop.eup %8840 }
0x166e   :  { %v8747_v60 = vpop.permute.xlu0 %8746  ;;  %v3787_v15 = vmul.f32 %v8841_v3, %v10073_v42 }
0x166f   :  { %v8749_v62 = vunpack.i.h.bf16 %v8747_v60  ;;  %v8748_v0 = vunpack.i.l.bf16 %v8747_v60  ;;  %8495 = vmatprep.subr.bf16.mxu1 %v8494_v7 }
0x1670   :  { %8497 = vmatpush3.bf16.msra.mxu1 %v8494_v7 }
0x1671   :  { %v8843_v6 = vpop.eup %8842  ;;  %v8504_v11 = vpack.c.bf16 %v8749_v62, %v8748_v0  ;;  %8500 = vmatprep.subr.msk.bf16.mxu1 %vm9949_vm3, %v8498_v61 }
0x1672   :  { %v3786_v14 = vmul.f32 %v8843_v6, %v8835_v45  ;;  %v4064_v17 = vpop.permute.xlu0 %4063 }
0x1673   :  { %8506 = vmatprep.subr.msk.bf16.mxu0 %vm9949_vm3, %v8504_v11 }
0x1674   :  { %8135 = vmatprep.mubr.msk.f32.mxu1 %vm2741_vm4, %v3786_v14 }
0x1675   :  { %8136 = vmatmul.mubr.msk.f32.vlgmr.msra.gmra.mrb[42].mxu1 %vm2741_vm4, %v3787_v15 }
0x1676   :  { %8150 = vmatprep.mubr.msk.f32.mxu1 %vm517_vm2, %v4064_v17  ;;  %v4066_v19 = vpop.permute.xlu0 %4065 }
0x1679   :  { %8503 = vmatpush3.bf16.xpose.msk.msra.mxu1 %vm9949_vm3, %v8498_v61 }
0x167a   :  { %v4155_v27 = vpop.permute.xlu0 %4154 }
0x1680   :  { %8151 = vmatmul.mubr.msk.f32.vlgmr.msra.gmra.mrb[44].mxu1 %vm517_vm2, %v4066_v19 }
0x1713   :  { %v8130_v20 = vpop.f32.mrb[26].mxu0 }
0x1714   :  { %v3866_v21 = vpop.f32.mrb[27].mxu0 }
0x1715   :  { %8140 = vmatprep.mubr.msk.f32.mxu0 %vm517_vm2, %v3866_v21 }
0x1716   :  { %8141 = vmatmul.mubr.msk.f32.vlgmr.msra.gmra.mrb[22].mxu0 %vm517_vm2, %v8130_v20  ;;  %v377_v20 = vld [vmem:[#allocation16 + $0x18] sm:$0xff] }
0x1717   :  { %8509 = vmatpush3.bf16.xpose.msk.msra.mxu0 %vm9949_vm3, %v8504_v11 }
0x1748   :  { %v8137_v22 = vpop.f32.mrb[42].mxu1 }
0x1749   :  { %v3953_v26 = vpop.f32.mrb[43].mxu1 }
0x174a   :  { %8143 = vmatprep.mubr.msk.f32.mxu0 %vm517_vm2, %v3953_v26 }
0x174b   :  { %8144 = vmatmul.mubr.msk.f32.gmra.mrb[24].mxu0 %vm517_vm2, %v8137_v22 }
0x174c   :  { %8157 = vmatprep.mubr.msk.f32.mxu0 %vm517_vm2, %v4155_v27 }
0x174f   :  { %8158 = vmatmul.mubr.msk.f32.vlgmr.msra.gmra.mrb[28].mxu0 %vm517_vm2, %v4157_v28  ;;  %v7506_v28 = vld [vmem:[%s10556_s8] ss:$0 sm:$0xff] }
0x1753   :  { %v8152_v29 = vpop.f32.mrb[44].mxu1 }
0x1754   :  { %v4246_v18 = vmul.f32 0.35355338, %v8152_v29  ;;  %v4145_v30 = vpop.f32.mrb[45].mxu1 }
0x1755   :  { %v4245_v31 = vmul.f32 0.35355338, %v4145_v30 }
0x1756   :  { %v4252_v32 = vsel %vm2741_vm4, %v4246_v18, -inf }
0x1757   :  { %4253 = vmax.xlane.f32.xlu1 %v4252_v32  ;;  %v4249_v16 = vsel %vm2741_vm4, %v4245_v31, -inf  ;;  %v7434_v32 = vld [vmem:[%s10557_s10] ss:$0 sm:$0xff] }
0x1758   :  { %4250 = vmax.xlane.f32.xlu0 %v4249_v16 }
0x17e4   :  { %v4254_v40 = vpop.xlane.xlu1 %4253 }
0x17e5   :  { %v4251_v33 = vpop.xlane.xlu0 %4250  ;;  %v4262_v41 = vsub.f32 %v4246_v18, %v4254_v40 }
0x17e6   :  { %v4261_v23 = vsub.f32 %v4245_v31, %v4251_v33  ;;  %v8952_v33 = vld [vmem:[#allocation5] sm:$0xff] }
0x17e7   :  { %v4267_v42 = vmul.f32 1.442695, %v4262_v41 }
0x17e8   :  { %v4265_v34 = vmul.f32 1.442695, %v4261_v23 }
0x17ea   :  { %8844 = vpow2.f32 %v4265_v34 }
0x17eb   :  { %8846 = vpow2.f32 %v4267_v42 }
0x17f4   :  { %v8845_v35 = vpop.eup %8844 }
0x17f5   :  { %v4273_v36 = vsel %vm2741_vm4, %v8845_v35, 0.0  ;;  %v8847_v37 = vpop.eup %8846 }
0x17f6   :  { %4274 = vadd.xlane.f32.xlu1 %v4273_v36  ;;  %v4276_v39 = vsel %vm2741_vm4, %v8847_v37, 0.0  ;;  %v2409_v36 = vadd.f32 %v9967_v24, %v7434_v32 }
0x1822   :  { %v8159_v43 = vpop.f32.mrb[28].mxu0 }
0x1823   :  { %v4236_v44 = vpop.f32.mrb[29].mxu0  ;;  %v4248_v45 = vmul.f32 0.35355338, %v8159_v43  ;;  %v2404_v43 = vadd.f32 %v7434_v32, %v9969_v25 }
0x1824   :  { %v4247_v13 = vmul.f32 0.35355338, %v4236_v44 }
0x1825   :  { %v4258_v12 = vsel %vm2741_vm4, %v4248_v45, -inf }
0x1826   :  { %v4255_v4 = vsel %vm2741_vm4, %v4247_v13, -inf }
0x1827   :  { %4256 = vmax.xlane.f32.xlu0 %v4255_v4  ;;  %v8954_v4 = vld [vmem:[#allocation5 + $0x10] sm:$0xff] }
0x182b   :  { %4259 = vmax.xlane.f32.xlu0 %v4258_v12  ;;  %v2413_v12 = vadd.f32 %v2409_v36, %v9910_v47 }
0x182f   :  { %4277 = vadd.xlane.f32.xlu0 %v4276_v39  ;;  %v2412_v39 = vadd.f32 %v2404_v43, %v9908_v46 }
0x1831   :  { %v2414_v25 = vsel %vm432_vm0, %v2412_v39, 0.0 }
0x1883   :  { %v4275_v38 = vpop.xlane.xlu1 %4274 }
0x1884   :  { %8848 = vrcp.f32 %v4275_v38  ;;  %v2417_v38 = vsel %vm432_vm0, %v2413_v12, 0.0 }
0x188e   :  { %v8849_v48 = vpop.eup %8848 }
0x188f   :  { %v4289_v49 = vmul.f32 %v8849_v48, %v8845_v35 }
0x1891   :  { %8164 = vmatprep.mubr.msk.f32.mxu1 %vm2741_vm4, %v4289_v49 }
0x18b4   :  { %v4257_v52 = vpop.xlane.xlu0 %4256 }
0x18b5   :  { %v4263_v53 = vsub.f32 %v4247_v13, %v4257_v52  ;;  %v8953_v13 = vld [vmem:[#allocation5 + $0x18] sm:$0xff] }
0x18b7   :  { %v4269_v1 = vmul.f32 1.442695, %v4263_v53 }
0x18b8   :  { %v4260_v54 = vpop.xlane.xlu0 %4259 }
0x18b9   :  { %8850 = vpow2.f32 %v4269_v1  ;;  %v4264_v55 = vsub.f32 %v4248_v45, %v4260_v54 }
0x18bb   :  { %v4271_v63 = vmul.f32 1.442695, %v4264_v55 }
0x18bc   :  { %v4278_v58 = vpop.xlane.xlu0 %4277 }
0x18bd   :  { %8852 = vpow2.f32 %v4271_v63 }
0x18be   :  { %8854 = vrcp.f32 %v4278_v58 }
0x18c3   :  { %v8851_v9 = vpop.eup %8850 }
0x18c4   :  { %v4279_v50 = vsel %vm2741_vm4, %v8851_v9, 0.0 }
0x18c5   :  { %4280 = vadd.xlane.f32.xlu1 %v4279_v50 }
0x18c7   :  { %v8853_v56 = vpop.eup %8852 }
0x18c8   :  { %v4282_v57 = vsel %vm2741_vm4, %v8853_v56, 0.0  ;;  %v8855_v0 = vpop.eup %8854 }
0x18c9   :  { %4283 = vadd.xlane.f32.xlu0 %v4282_v57  ;;  %v4290_v14 = vmul.f32 %v8855_v0, %v8847_v37 }
0x18d6   :  { %8751 = vrot.lane.b32.xlu1 %v9933_v2, %s9370_s21 }
0x18df   :  { %8756 = vrot.lane.b32.xlu0 %v9943_v10, %s9370_s21 }
0x1952   :  { %v4281_v59 = vpop.xlane.xlu1 %4280 }
0x1953   :  { %8856 = vrcp.f32 %v4281_v59 }
0x1956   :  { %v8752_v5 = vpop.permute.xlu1 %8751  ;;  %v4284_v7 = vpop.xlane.xlu0 %4283 }
0x1957   :  { %v8754_v60 = vunpack.i.h.bf16 %v8752_v5  ;;  %v8753_v61 = vunpack.i.l.bf16 %v8752_v5  ;;  %8858 = vrcp.f32 %v4284_v7 }
0x1959   :  { %v8510_v62 = vpack.c.bf16 %v8754_v60, %v8753_v61 }
0x195a   :  { %v8757_v3 = vpop.permute.xlu0 %8756 }
0x195b   :  { %v8759_v6 = vunpack.i.h.bf16 %v8757_v3  ;;  %v8758_v11 = vunpack.i.l.bf16 %v8757_v3  ;;  %8511 = vmatprep.subr.bf16.mxu1 %v8510_v62 }
0x195c   :  { %8513 = vmatpush3.bf16.msra.mxu1 %v8510_v62 }
0x195d   :  { %v8857_v2 = vpop.eup %8856  ;;  %v8514_v15 = vpack.c.bf16 %v8759_v6, %v8758_v11 }
0x195e   :  { %v4291_v10 = vmul.f32 %v8857_v2, %v8851_v9 }
0x195f   :  { %8165 = vmatmul.mubr.msk.f32.vlgmr.msra.gmra.mrb[46].mxu1 %vm2741_vm4, %v4290_v14  ;;  %8515 = vmatprep.subr.bf16.mxu0 %v8514_v15 }
0x1960   :  { %8517 = vmatpush3.bf16.msra.mxu0 %v8514_v15  ;;  %8171 = vmatprep.mubr.msk.f32.mxu0 %vm2741_vm4, %v4291_v10 }
0x1961   :  { %v8859_v17 = vpop.eup %8858  ;;  %8174 = vmatprep.subr.mxu0 %v377_v20 }
0x1962   :  { %v4292_v19 = vmul.f32 %v8859_v17, %v8853_v56 }
0x1964   :  { %8172 = vmatmul.mubr.msk.f32.vlgmr.msra.gmra.mrb[30].mxu0 %vm2741_vm4, %v4292_v19  ;;  %v362_v19 = vld [vmem:[#allocation14] sm:$0xff] }
0x1965   :  { %8175 = vmatpush3.msra.mxu0 %v377_v20  ;;  %v363_v20 = vld [vmem:[#allocation14 + $0x8] sm:$0xff] }
0x1a32   :  { %v8166_v21 = vpop.f32.mrb[46].mxu1 }
0x1a33   :  { %v4371_v22 = vpop.f32.mrb[47].mxu1 }
0x1a34   :  { %8176 = vmatprep.mubr.msk.f32.mxu0 %vm517_vm2, %v4371_v22  ;;  %v364_v22 = vld [vmem:[#allocation14 + $0x10] sm:$0xff] }
0x1a35   :  { %8177 = vmatmul.mubr.msk.f32.vlgmr.msra.gmra.mrb[22].mxu0 %vm517_vm2, %v8166_v21  ;;  %v8518_v21 = vpack.c.bf16 %v363_v20, %v362_v19 }
0x1a37   :  { %v8173_v26 = vpop.f32.mrb[30].mxu0  ;;  %8519 = vmatprep.subr.bf16.mxu0 %v8518_v21 }
0x1a38   :  { %v4458_v27 = vpop.f32.mrb[31].mxu0  ;;  %8521 = vmatpush3.bf16.msra.mxu0 %v8518_v21 }
0x1a39   :  { %8179 = vmatprep.mubr.msk.f32.mxu0 %vm517_vm2, %v4458_v27 }
0x1a3a   :  { %8180 = vmatmul.mubr.msk.f32.gmra.mrb[24].mxu0 %vm517_vm2, %v8173_v26  ;;  %v365_v26 = vld [vmem:[#allocation14 + $0x18] sm:$0xff] }
0x1a3b   :  { %v8522_v27 = vpack.c.bf16 %v365_v26, %v364_v22 }
0x1a3d   :  { %8523 = vmatprep.subr.bf16.mxu0 %v8522_v27 }
0x1a3e   :  { %8525 = vmatpush3.bf16.msra.mxu0 %v8522_v27 }
0x1b08   :  { %v8178_v29 = vpop.f32.mrb[22].mxu0 }
0x1b09   :  { %v4575_v18 = vadd.f32 %v8178_v29, %v7506_v28  ;;  %v4545_v30 = vpop.f32.mrb[23].mxu0  ;;  %v355_v29 = vld [vmem:[#allocation11 + $0x8] sm:$0xff] }
0x1b0a   :  { %v4574_v31 = vadd.f32 %v7506_v28, %v4545_v30 }
0x1b0b   :  { %v4579_v16 = vadd.f32 %v4575_v18, %v9917_v51 }
0x1b0c   :  { %v4578_v23 = vadd.f32 %v8952_v33, %v4574_v31 }
0x1b0d   :  { %v8181_v34 = vpop.f32.mrb[24].mxu0  ;;  %v4585_v35 = vsel %vm432_vm0, %v4579_v16, 0.0 }
0x1b0e   :  { %v4577_v40 = vadd.f32 %v8181_v34, %v7506_v28  ;;  %v4555_v41 = vpop.f32.mrb[25].mxu0  ;;  %4586 = vadd.xlane.f32.xlu0 %v4585_v35  ;;  %v4582_v42 = vsel %vm432_vm0, %v4578_v23, 0.0 }
0x1b0f   :  { %v4576_v44 = vadd.f32 %v7506_v28, %v4555_v41  ;;  %4583 = vadd.xlane.f32.xlu1 %v4582_v42  ;;  %v354_v28 = vld [vmem:[#allocation11] sm:$0xff] }
0x1b10   :  { %v4581_v45 = vadd.f32 %v8953_v13, %v4577_v40  ;;  %v8526_v18 = vpack.c.bf16 %v355_v29, %v354_v28 }
0x1b11   :  { %v4580_v51 = vadd.f32 %v8954_v4, %v4576_v44 }
0x1b12   :  { %v4591_v37 = vsel %vm432_vm0, %v4581_v45, 0.0  ;;  %8527 = vmatprep.subr.bf16.mxu0 %v8526_v18 }
0x1b13   :  { %4592 = vadd.xlane.f32.xlu0 %v4591_v37  ;;  %v4588_v24 = vsel %vm432_vm0, %v4580_v51, 0.0  ;;  %v7507_v37 = vld [vmem:[%s10558_s6] ss:$0 sm:$0xff] }
0x1b14   :  { %4589 = vadd.xlane.f32.xlu1 %v4588_v24 }
0x1b17   :  { %2418 = vadd.xlane.f32.xlu0 %v2417_v38 }
0x1b18   :  { %2415 = vadd.xlane.f32.xlu1 %v2414_v25  ;;  %v7508_v25 = vld [vmem:[%s10559_s11] ss:$0 sm:$0xff] }
0x1b9b   :  { %v4587_v48 = vpop.xlane.xlu0 %4586 }
0x1b9c   :  { %v4595_v49 = vmul.f32 0.03125, %v4587_v48  ;;  %v4584_v52 = vpop.xlane.xlu1 %4583 }
0x1b9d   :  { %v4594_v53 = vmul.f32 0.03125, %v4584_v52  ;;  %v356_v52 = vld [vmem:[#allocation11 + $0x10] sm:$0xff] }
0x1b9e   :  { %v10155_v1 = vsub.f32 %v4579_v16, %v4595_v49 }
0x1b9f   :  { %v10157_v47 = vsub.f32 %v4578_v23, %v4594_v53  ;;  %v357_v53 = vld [vmem:[#allocation11 + $0x18] sm:$0xff] }
0x1ba0   :  { %v4593_v54 = vpop.xlane.xlu0 %4592  ;;  %v4603_v55 = vmul.f32 %v10155_v1, %v10155_v1 }
0x1ba1   :  { %v4597_v46 = vmul.f32 0.03125, %v4593_v54  ;;  %v4590_v63 = vpop.xlane.xlu1 %4589  ;;  %v4602_v9 = vmul.f32 %v10157_v47, %v10157_v47 }
0x1ba2   :  { %v4596_v50 = vmul.f32 0.03125, %v4590_v63  ;;  %v4609_v56 = vsel %vm432_vm0, %v4603_v55, 0.0 }
0x1ba3   :  { %v10164_v57 = vsub.f32 %v4581_v45, %v4597_v46  ;;  %4610 = vadd.xlane.f32.xlu0 %v4609_v56  ;;  %v4606_v58 = vsel %vm432_vm0, %v4602_v9, 0.0 }
0x1ba4   :  { %v10167_v59 = vsub.f32 %v4580_v51, %v4596_v50  ;;  %v2419_v5 = vpop.xlane.xlu0 %2418  ;;  %4607 = vadd.xlane.f32.xlu1 %v4606_v58 }
0x1ba5   :  { %v2421_v7 = vmul.f32 0.03125, %v2419_v5  ;;  %v2416_v60 = vpop.xlane.xlu1 %2415  ;;  %v4605_v61 = vmul.f32 %v10164_v57, %v10164_v57  ;;  %v7435_v5 = vld [vmem:[%s10560_s12] ss:$0 sm:$0xff] }
0x1ba6   :  { %v2420_v62 = vmul.f32 0.03125, %v2416_v60  ;;  %v4604_v0 = vmul.f32 %v10167_v59, %v10167_v59 }
0x1ba7   :  { %v10173_v3 = vsub.f32 %v2413_v12, %v2421_v7  ;;  %v4615_v6 = vsel %vm432_vm0, %v4605_v61, 0.0  ;;  %v7436_v61 = vld [vmem:[%s10561_s9] ss:$0 sm:$0xff] }
0x1ba8   :  { %v10176_v11 = vsub.f32 %v2412_v39, %v2420_v62  ;;  %4616 = vadd.xlane.f32.xlu0 %v4615_v6  ;;  %v4612_v2 = vsel %vm432_vm0, %v4604_v0, 0.0 }
0x1ba9   :  { %4613 = vadd.xlane.f32.xlu1 %v4612_v2  ;;  %v2425_v14 = vmul.f32 %v10173_v3, %v10173_v3 }
0x1baa   :  { %v2424_v15 = vmul.f32 %v10176_v11, %v10176_v11 }
0x1bab   :  { %v2429_v10 = vsel %vm432_vm0, %v2425_v14, 0.0 }
0x1bac   :  { %2430 = vadd.xlane.f32.xlu0 %v2429_v10  ;;  %v2426_v17 = vsel %vm432_vm0, %v2424_v15, 0.0 }
0x1bad   :  { %2427 = vadd.xlane.f32.xlu1 %v2426_v17 }
0x1c30   :  { %v4611_v30 = vpop.xlane.xlu0 %4610 }
0x1c31   :  { %v4619_v31 = vmul.f32 0.03125, %v4611_v30  ;;  %v4608_v32 = vpop.xlane.xlu1 %4607 }
0x1c32   :  { %v4618_v16 = vmul.f32 0.03125, %v4608_v32 }
0x1c33   :  { %v4623_v33 = vadd.f32 1e-06, %v4619_v31 }
0x1c34   :  { %v4622_v23 = vadd.f32 1e-06, %v4618_v16  ;;  %v7509_v16 = vld [vmem:[%s10562_s25] ss:$0 sm:$0xff] }
0x1c35   :  { %8860 = vrsqrt.f32 %v4623_v33  ;;  %v4617_v34 = vpop.xlane.xlu0 %4616 }
0x1c36   :  { %8862 = vrsqrt.f32 %v4622_v23  ;;  %v4621_v35 = vmul.f32 0.03125, %v4617_v34  ;;  %v4614_v36 = vpop.xlane.xlu1 %4613 }
0x1c37   :  { %v4620_v40 = vmul.f32 0.03125, %v4614_v36 }
0x1c38   :  { %v4625_v41 = vadd.f32 1e-06, %v4621_v35 }
0x1c39   :  { %v4624_v42 = vadd.f32 1e-06, %v4620_v40  ;;  %v2431_v43 = vpop.xlane.xlu0 %2430 }
0x1c3a   :  { %8864 = vrsqrt.f32 %v4625_v41  ;;  %v2433_v44 = vmul.f32 0.03125, %v2431_v43  ;;  %v2428_v13 = vpop.xlane.xlu1 %2427  ;;  %v7514_v41 = vld [vmem:[%s10563_s15] ss:$0 sm:$0xff] }
0x1c3b   :  { %8866 = vrsqrt.f32 %v4624_v42  ;;  %v2432_v45 = vmul.f32 0.03125, %v2428_v13 }
0x1c3c   :  { %v2435_v4 = vadd.f32 1e-06, %v2433_v44 }
0x1c3d   :  { %v2434_v51 = vadd.f32 1e-06, %v2432_v45 }
0x1c3e   :  { %8868 = vrsqrt.f32 %v2435_v4 }
0x1c3f   :  { %v8861_v12 = vpop.eup %8860  ;;  %8870 = vrsqrt.f32 %v2434_v51 }
0x1c40   :  { %v8863_v24 = vpop.eup %8862  ;;  %v4631_v39 = vmul.f32 %v8861_v12, %v10155_v1  ;;  %v8530_v1 = vpack.c.bf16 %v357_v53, %v356_v52 }
0x1c41   :  { %v4630_v38 = vmul.f32 %v8863_v24, %v10157_v47 }
0x1c42   :  { %v4641_v48 = vmul.f32 %v7507_v37, %v4631_v39 }
0x1c43   :  { %v4640_v49 = vmul.f32 %v7507_v37, %v4630_v38 }
0x1c44   :  { %v8865_v54 = vpop.eup %8864  ;;  %v10192_v9 = vadd.f32 %v7508_v25, %v4641_v48 }
0x1c45   :  { %v8867_v55 = vpop.eup %8866  ;;  %v10189_v46 = vadd.f32 %v7508_v25, %v4640_v49  ;;  %v4633_v63 = vmul.f32 %v8865_v54, %v10164_v57 }
0x1c46   :  { %v4632_v50 = vmul.f32 %v8867_v55, %v10167_v59 }
0x1c47   :  { %8190 = vmatprep.mubr.msk.f32.mxu0 %vm432_vm0, %v10189_v46  ;;  %v4643_v47 = vmul.f32 %v7507_v37, %v4633_v63 }
0x1c48   :  { %v8869_v56 = vpop.eup %8868  ;;  %8191 = vmatmul.mubr.msk.f32.vlgmr.msra.gmra.mrb[32].mxu0 %vm432_vm0, %v10192_v9  ;;  %v4642_v58 = vmul.f32 %v7507_v37, %v4632_v50 }
0x1c49   :  { %v8871_v7 = vpop.eup %8870  ;;  %v2439_v60 = vmul.f32 %v8869_v56, %v10173_v3  ;;  %8529 = vmatpush3.bf16.msra.mxu0 %v8526_v18  ;;  %v10205_v62 = vadd.f32 %v7508_v25, %v4643_v47 }
0x1c4a   :  { %v10201_v57 = vadd.f32 %v7508_v25, %v4642_v58  ;;  %8531 = vmatprep.subr.bf16.mxu0 %v8530_v1  ;;  %v2438_v59 = vmul.f32 %v8871_v7, %v10176_v11  ;;  %v10256_v25 = vld [vmem:[%s9393_s13 + $0x1] ss:$0 sm:$0xff] }
0x1c4b   :  { %v2447_v0 = vmul.f32 %v7435_v5, %v2439_v60 }
0x1c4c   :  { %8193 = vmatprep.mubr.msk.f32.mxu0 %vm432_vm0, %v10201_v57  ;;  %v2446_v6 = vmul.f32 %v7435_v5, %v2438_v59 }
0x1c4d   :  { %8194 = vmatmul.mubr.msk.f32.gmra.mrb[34].mxu0 %vm432_vm0, %v10205_v62  ;;  %v2455_v2 = vadd.f32 %v7436_v61, %v2447_v0 }
0x1c4e   :  { %8533 = vmatpush3.bf16.msra.mxu0 %v8530_v1  ;;  %v2454_v3 = vadd.f32 %v7436_v61, %v2446_v6 }
0x1c4f   :  { %v7177_v14 = vsel %vm432_vm0, %v2455_v2, 0.0 }
0x1c50   :  { %8204 = vmatprep.mubr.msk.f32.mxu0 %vm432_vm0, %v2454_v3  ;;  %v7170_v15 = vsel %vm432_vm0, %v2454_v3, 0.0  ;;  %v7178_v11 = vrot.slane %v7177_v14, 4 }
0x1c51   :  { %v7171_v10 = vrot.slane %v7170_v15, 4  ;;  %8205 = vmatmul.mubr.msk.f32.vlgmr.msra.gmra.mrb[36].mxu0 %vm432_vm0, %v2455_v2 }
0x1c52   :  { %v7179_v17 = vadd.f32 %v7178_v11, %v7177_v14 }
0x1c53   :  { %v7172_v19 = vadd.f32 %v7171_v10, %v7170_v15 }
0x1c54   :  { %v7180_v20 = vrot.slane %v7179_v17, 2 }
0x1c55   :  { %v7173_v21 = vrot.slane %v7172_v19, 2 }
0x1c56   :  { %v7181_v22 = vadd.f32 %v7180_v20, %v7179_v17 }
0x1c57   :  { %v7174_v26 = vadd.f32 %v7173_v21, %v7172_v19 }
0x1c58   :  { %v7182_v27 = vrot.slane %v7181_v22, 1 }
0x1c59   :  { %v7175_v28 = vrot.slane %v7174_v26, 1 }
0x1c5a   :  { %v7183_v29 = vadd.f32 %v7182_v27, %v7181_v22 }
0x1c5b   :  { %v7176_v18 = vadd.f32 %v7175_v28, %v7174_v26 }
0x1c5c   :  { %v10215_v30 = vmul.f32 0.125, %v7183_v29 }
0x1c5d   :  { %v10217_v31 = vmul.f32 0.125, %v7176_v18 }
0x1c5f   :  { %v7295_v32 = vsel %vm7218_vm5, %v10215_v30, %v10217_v31 }
0x1c60   :  { %7298 = vst.msk [vmem:[#allocation23] sm:$0x3] %vm7297_vm6, %v7295_v32  ;;  %v10295_v32 = vld [vmem:[%s9393_s13] ss:$0 sm:$0xff]  ;;  %s10564_s13 = sld [smem:[#allocation39_spill]] }
0x1d1b   :  { %v8192_v33 = vpop.f32.mrb[32].mxu0 }
0x1d1c   :  { %v4738_v23 = vpop.f32.mrb[33].mxu0  ;;  %v10247_v4 = vadd.f32 %v8192_v33, %v7509_v16 }
0x1d1d   :  { %v10224_v34 = vadd.f32 %v7509_v16, %v4738_v23 }
0x1d1f   :  { %8209 = vmatprep.mubr.msk.f32.mxu1 %vm517_vm2, %v10224_v34 }
0x1d20   :  { %v8195_v35 = vpop.f32.mrb[34].mxu0 }
0x1d21   :  { %v4748_v36 = vpop.f32.mrb[35].mxu0  ;;  %v10243_v45 = vadd.f32 %v8195_v35, %v7509_v16 }
0x1d22   :  { %v10228_v40 = vadd.f32 %v7509_v16, %v4748_v36 }
0x1d24   :  { %v8206_v42 = vpop.f32.mrb[36].mxu0  ;;  %8214 = vmatprep.mubr.msk.f32.mxu0 %vm517_vm2, %v10228_v40 }
0x1d25   :  { %v10233_v43 = vadd.f32 %v8206_v42, %v7514_v41  ;;  %v4835_v44 = vpop.f32.mrb[37].mxu0 }
0x1d26   :  { %v10235_v13 = vadd.f32 %v7514_v41, %v4835_v44 }
0x1d27   :  { %8212 = vmatprep.subr.msk.mxu0 %vm517_vm2, %v10233_v43 }
0x1d28   :  { %8207 = vmatprep.subr.msk.mxu1 %vm517_vm2, %v10235_v13  ;;  %8213 = vmatpush3.xpose.msk.msra.mxu0 %vm517_vm2, %v10233_v43 }
0x1d29   :  { %8208 = vmatpush3.xpose.msk.msra.mxu1 %vm517_vm2, %v10235_v13 }
0x1d2b   :  { %8215 = vmatmul.mubr.msk.f32.vlgmr.msra.gmra.mrb[38].mxu0 %vm517_vm2, %v10243_v45 }
0x1d2c   :  { %8210 = vmatmul.mubr.msk.f32.vlgmr.msra.gmra.mrb[48].mxu1 %vm517_vm2, %v10247_v4 }
0x1dfe   :  { %v8216_v51 = vpop.f32.mrb[38].mxu0 }
0x1dff   :  { %v5015_v12 = vmul.f32 0.35355338, %v8216_v51  ;;  %v10253_v37 = vpop.f32.mrb[48].mxu1  ;;  %v5003_v24 = vpop.f32.mrb[39].mxu0 }
0x1e00   :  { %v5014_v39 = vmul.f32 0.35355338, %v5003_v24  ;;  %v4919_v38 = vpop.f32.mrb[49].mxu1 }
0x1e01   :  { %v5019_v48 = vadd.f32 %v10256_v25, %v5015_v12  ;;  %v5012_v18 = vmul.f32 0.35355338, %v4919_v38 }
0x1e02   :  { %v5018_v49 = vadd.f32 %v10256_v25, %v5014_v39 }
0x1e03   :  { %v5029_v52 = vsel %vm517_vm2, %v5019_v48, -inf  ;;  %v5016_v16 = vadd.f32 %v10295_v32, %v5012_v18 }
0x1e04   :  { %5030 = vmax.xlane.f32.xlu0 %v5029_v52  ;;  %v5026_v53 = vsel %vm517_vm2, %v5018_v49, -inf }
0x1e05   :  { %5027 = vmax.xlane.f32.xlu1 %v5026_v53  ;;  %v5020_v33 = vsel %vm517_vm2, %v5016_v16, -inf }
0x1e16   :  { %5148 = vrot.lane.b32.xlu1 %v10233_v43, %s9360_s20 }
0x1e1a   :  { %5319 = vrot.lane.b32.xlu1 %v10228_v40, %s9362_s4 }
0x1e91   :  { %v5031_v54 = vpop.xlane.xlu0 %5030 }
0x1e92   :  { %v5035_v55 = vsub.f32 %v5019_v48, %v5031_v54  ;;  %v5028_v63 = vpop.xlane.xlu1 %5027 }
0x1e93   :  { %v5034_v50 = vsub.f32 %v5018_v49, %v5028_v63  ;;  %v5013_v63 = vmul.f32 0.35355338, %v10253_v37 }
0x1e94   :  { %v5042_v1 = vmul.f32 1.442695, %v5035_v55 }
0x1e95   :  { %v5040_v47 = vmul.f32 1.442695, %v5034_v50  ;;  %v5017_v50 = vadd.f32 %v10295_v32, %v5013_v63 }
0x1e96   :  { %8872 = vpow2.f32 %v5042_v1  ;;  %v5149_v56 = vpop.permute.xlu1 %5148 }
0x1e97   :  { %8874 = vpow2.f32 %v5040_v47  ;;  %8222 = vmatprep.subr.mxu0 %v5149_v56  ;;  %v5023_v1 = vsel %vm517_vm2, %v5017_v50, -inf }
0x1e98   :  { %8223 = vmatpush3.msra.mxu0 %v5149_v56 }
0x1e9a   :  { %v5320_v61 = vpop.permute.xlu1 %5319 }
0x1ea0   :  { %v8873_v58 = vpop.eup %8872 }
0x1ea1   :  { %v8875_v5 = vpop.eup %8874  ;;  %v5053_v7 = vsel %vm517_vm2, %v8873_v58, 0.0 }
0x1ea2   :  { %5054 = vadd.xlane.f32.xlu0 %v5053_v7  ;;  %v5050_v60 = vsel %vm517_vm2, %v8875_v5, 0.0 }
0x1ea3   :  { %5051 = vadd.xlane.f32.xlu1 %v5050_v60 }
0x1eb4   :  { %5321 = vrot.lane.b32.xlu1 %v10243_v45, %s9362_s4 }
0x1eb8   :  { %5323 = vrot.lane.b32.xlu0 %v10233_v43, %s9362_s4 }
0x1f2f   :  { %v5055_v59 = vpop.xlane.xlu0 %5054 }
0x1f30   :  { %8876 = vrcp.f32 %v5055_v59  ;;  %v5052_v0 = vpop.xlane.xlu1 %5051 }
0x1f31   :  { %8878 = vrcp.f32 %v5052_v0 }
0x1f33   :  { %v5324_v6 = vpop.permute.xlu0 %5323 }
0x1f34   :  { %8232 = vmatprep.subr.msk.mxu0 %vm517_vm2, %v5324_v6  ;;  %v5322_v11 = vpop.permute.xlu1 %5321 }
0x1f3a   :  { %v8877_v2 = vpop.eup %8876 }
0x1f3b   :  { %v8879_v3 = vpop.eup %8878  ;;  %v5063_v15 = vmul.f32 %v8877_v2, %v8873_v58 }
0x1f3c   :  { %v5062_v14 = vmul.f32 %v8879_v3, %v8875_v5 }
0x1f3e   :  { %8224 = vmatprep.mubr.msk.f32.mxu0 %vm517_vm2, %v5062_v14 }
0x1f3f   :  { %8225 = vmatmul.mubr.msk.f32.vlgmr.msra.gmra.mrb[40].mxu0 %vm517_vm2, %v5063_v15 }
0x1f40   :  { %8233 = vmatpush3.xpose.msk.msra.mxu0 %vm517_vm2, %v5324_v6  ;;  %8234 = vmatprep.mubr.msk.f32.mxu0 %vm517_vm2, %v5320_v61 }
0x1f43   :  { %8235 = vmatmul.mubr.msk.f32.vlgmr.msra.gmra.mrb[42].mxu0 %vm517_vm2, %v5322_v11 }
0x2012   :  { %v10278_v10 = vpop.f32.mrb[40].mxu0 }
0x2013   :  { %v10280_v17 = vpop.f32.mrb[41].mxu0 }
0x2016   :  { %v8236_v19 = vpop.f32.mrb[42].mxu0 }
0x2017   :  { %v5409_v20 = vmul.f32 0.35355338, %v8236_v19  ;;  %v5397_v21 = vpop.f32.mrb[43].mxu0 }
0x2018   :  { %v5408_v22 = vmul.f32 0.35355338, %v5397_v21 }
0x2019   :  { %v5413_v26 = vadd.f32 %v10256_v25, %v5409_v20 }
0x201a   :  { %v5412_v27 = vadd.f32 %v10256_v25, %v5408_v22 }
0x201b   :  { %v5423_v28 = vsel %vm517_vm2, %v5413_v26, -inf }
0x201c   :  { %5424 = vmax.xlane.f32.xlu1 %v5423_v28  ;;  %v5420_v29 = vsel %vm517_vm2, %v5412_v27, -inf }
0x201d   :  { %5421 = vmax.xlane.f32.xlu0 %v5420_v29 }
0x202d   :  { %5542 = vrot.lane.b32.xlu1 %v10233_v43, %s9363_s14 }
0x2031   :  { %5820 = vrot.lane.b32.xlu1 %v10224_v34, %s9366_s18 }
0x2035   :  { %5822 = vrot.lane.b32.xlu1 %v10247_v4, %s9366_s18 }
0x2039   :  { %5907 = vrot.lane.b32.xlu1 %v10228_v40, %s9366_s18 }
0x205d   :  { %5021 = vmax.xlane.f32.xlu1 %v5020_v33 }
0x20a9   :  { %v5425_v23 = vpop.xlane.xlu1 %5424 }
0x20aa   :  { %v5429_v35 = vsub.f32 %v5413_v26, %v5425_v23  ;;  %v5422_v36 = vpop.xlane.xlu0 %5421 }
0x20ab   :  { %v5428_v41 = vsub.f32 %v5412_v27, %v5422_v36 }
0x20ac   :  { %v5436_v42 = vmul.f32 1.442695, %v5429_v35 }
0x20ad   :  { %v5434_v44 = vmul.f32 1.442695, %v5428_v41  ;;  %v5543_v51 = vpop.permute.xlu1 %5542 }
0x20ae   :  { %8880 = vpow2.f32 %v5436_v42  ;;  %8242 = vmatprep.subr.mxu0 %v5543_v51 }
0x20af   :  { %8243 = vmatpush3.msra.mxu0 %v5543_v51  ;;  %8882 = vpow2.f32 %v5434_v44 }
0x20b1   :  { %v5821_v48 = vpop.permute.xlu1 %5820 }
0x20b5   :  { %v5823_v49 = vpop.permute.xlu1 %5822 }
0x20b8   :  { %v8881_v12 = vpop.eup %8880 }
0x20b9   :  { %v5447_v24 = vsel %vm517_vm2, %v8881_v12, 0.0  ;;  %v8883_v39 = vpop.eup %8882  ;;  %v5908_v52 = vpop.permute.xlu1 %5907 }
0x20ba   :  { %5448 = vadd.xlane.f32.xlu0 %v5447_v24  ;;  %v5444_v38 = vsel %vm517_vm2, %v8883_v39, 0.0 }
0x20be   :  { %5445 = vadd.xlane.f32.xlu0 %v5444_v38 }
0x20d4   :  { %5824 = vrot.lane.b32.xlu0 %v10235_v13, %s9366_s18 }
0x20d8   :  { %5911 = vrot.lane.b32.xlu0 %v10233_v43, %s9366_s18 }
0x20dc   :  { %5909 = vrot.lane.b32.xlu0 %v10243_v45, %s9366_s18 }
0x20ea   :  { %v5022_v53 = vpop.xlane.xlu1 %5021 }
0x20eb   :  { %v5032_v54 = vsub.f32 %v5016_v16, %v5022_v53 }
0x20ed   :  { %v5036_v55 = vmul.f32 1.442695, %v5032_v54 }
0x20ef   :  { %8884 = vpow2.f32 %v5036_v55 }
0x20f9   :  { %v8885_v47 = vpop.eup %8884 }
0x20fa   :  { %v5044_v56 = vsel %vm517_vm2, %v8885_v47, 0.0 }
0x20fb   :  { %5024 = vmax.xlane.f32.xlu0 %v5023_v1 }
0x20ff   :  { %5045 = vadd.xlane.f32.xlu0 %v5044_v56 }
0x2115   :  { %5064 = vrot.lane.b32.xlu0 %v10235_v13, %s9360_s20  ;;  %s10567_s20 = sld [smem:[#allocation36_spill]] }
0x2119   :  { %5234 = vrot.lane.b32.xlu0 %v10247_v4, %s9362_s4 }
0x2147   :  { %v5449_v58 = vpop.xlane.xlu0 %5448 }
0x2148   :  { %8886 = vrcp.f32 %v5449_v58 }
0x214b   :  { %v5446_v5 = vpop.xlane.xlu0 %5445 }
0x214c   :  { %8888 = vrcp.f32 %v5446_v5 }
0x214f   :  { %v5825_v37 = vpop.permute.xlu0 %5824 }
0x2150   :  { %8263 = vmatprep.subr.msk.mxu0 %vm517_vm2, %v5825_v37 }
0x2152   :  { %v8887_v7 = vpop.eup %8886 }
0x2153   :  { %v5457_v59 = vmul.f32 %v8887_v7, %v8881_v12  ;;  %v5912_v0 = vpop.permute.xlu0 %5911 }
0x2156   :  { %v8889_v60 = vpop.eup %8888 }
0x2157   :  { %v5456_v61 = vmul.f32 %v8889_v60, %v8883_v39  ;;  %v5910_v6 = vpop.permute.xlu0 %5909 }
0x2159   :  { %8244 = vmatprep.mubr.msk.f32.mxu0 %vm517_vm2, %v5456_v61 }
0x215a   :  { %8245 = vmatmul.mubr.msk.f32.vlgmr.msra.gmra.mrb[44].mxu0 %vm517_vm2, %v5457_v59 }
0x215b   :  { %8264 = vmatpush3.xpose.msk.msra.mxu0 %vm517_vm2, %v5825_v37  ;;  %8265 = vmatprep.mubr.msk.f32.mxu0 %vm517_vm2, %v5821_v48 }
0x215c   :  { %8268 = vmatprep.subr.msk.mxu0 %vm517_vm2, %v5912_v0 }
0x215e   :  { %8266 = vmatmul.mubr.msk.f32.vlgmr.msra.gmra.mrb[46].mxu0 %vm517_vm2, %v5823_v49 }
0x215f   :  { %8269 = vmatpush3.xpose.msk.msra.mxu0 %vm517_vm2, %v5912_v0  ;;  %8270 = vmatprep.mubr.msk.f32.mxu0 %vm517_vm2, %v5908_v52 }
0x2162   :  { %8271 = vmatmul.mubr.msk.f32.vlgmr.msra.gmra.mrb[48].mxu0 %vm517_vm2, %v5910_v6 }
0x2188   :  { %v5025_v2 = vpop.xlane.xlu0 %5024 }
0x2189   :  { %v5033_v3 = vsub.f32 %v5017_v50, %v5025_v2 }
0x218b   :  { %v5038_v14 = vmul.f32 1.442695, %v5033_v3 }
0x218c   :  { %v5046_v15 = vpop.xlane.xlu0 %5045 }
0x218d   :  { %8890 = vpow2.f32 %v5038_v14 }
0x218e   :  { %8892 = vrcp.f32 %v5046_v15 }
0x2190   :  { %v5065_v11 = vpop.permute.xlu0 %5064 }
0x2191   :  { %8217 = vmatprep.subr.mxu1 %v5065_v11 }
0x2192   :  { %8218 = vmatpush3.msra.mxu1 %v5065_v11 }
0x2194   :  { %v5235_v38 = vpop.permute.xlu0 %5234 }
0x2197   :  { %v8891_v19 = vpop.eup %8890 }
0x2198   :  { %v8893_v20 = vpop.eup %8892  ;;  %v5047_v21 = vsel %vm517_vm2, %v8891_v19, 0.0 }
0x2199   :  { %5048 = vadd.xlane.f32.xlu1 %v5047_v21  ;;  %v5060_v22 = vmul.f32 %v8893_v20, %v8885_v47 }
0x219b   :  { %8219 = vmatprep.mubr.msk.f32.mxu1 %vm517_vm2, %v5060_v22 }
0x21aa   :  { %5236 = vrot.lane.b32.xlu1 %v10235_v13, %s9362_s4 }
0x21ae   :  { %5232 = vrot.lane.b32.xlu1 %v10224_v34, %s9362_s4  ;;  %s10569_s4 = sld [smem:[#allocation46_spill]] }
0x2226   :  { %v5049_v26 = vpop.xlane.xlu1 %5048 }
0x2227   :  { %8894 = vrcp.f32 %v5049_v26 }
0x222a   :  { %v5237_v27 = vpop.permute.xlu1 %5236 }
0x222b   :  { %8227 = vmatprep.subr.msk.mxu1 %vm517_vm2, %v5237_v27 }
0x222d   :  { %v10332_v28 = vpop.f32.mrb[44].mxu0 }
0x222e   :  { %v10334_v29 = vpop.f32.mrb[45].mxu0  ;;  %v5233_v41 = vpop.permute.xlu1 %5232 }
0x2231   :  { %v8895_v18 = vpop.eup %8894  ;;  %v8267_v16 = vpop.f32.mrb[46].mxu0 }
0x2232   :  { %v5061_v33 = vmul.f32 %v8895_v18, %v8891_v19  ;;  %v5995_v23 = vmul.f32 0.35355338, %v8267_v16  ;;  %v5898_v35 = vpop.f32.mrb[47].mxu0 }
0x2233   :  { %v5994_v36 = vmul.f32 0.35355338, %v5898_v35 }
0x2234   :  { %v5999_v42 = vadd.f32 %v10295_v32, %v5995_v23  ;;  %8220 = vmatmul.mubr.msk.f32.vlgmr.msra.gmra.mrb[50].mxu1 %vm517_vm2, %v5061_v33 }
0x2235   :  { %v5998_v44 = vadd.f32 %v10295_v32, %v5994_v36  ;;  %8228 = vmatpush3.xpose.msk.msra.mxu1 %vm517_vm2, %v5237_v27  ;;  %8229 = vmatprep.mubr.msk.f32.mxu1 %vm517_vm2, %v5233_v41  ;;  %v8272_v51 = vpop.f32.mrb[48].mxu0 }
0x2236   :  { %v5997_v12 = vmul.f32 0.35355338, %v8272_v51  ;;  %v5985_v24 = vpop.f32.mrb[49].mxu0  ;;  %v6005_v39 = vsel %vm517_vm2, %v5999_v42, -inf }
0x2237   :  { %v5996_v48 = vmul.f32 0.35355338, %v5985_v24  ;;  %6006 = vmax.xlane.f32.xlu0 %v6005_v39  ;;  %v6002_v49 = vsel %vm517_vm2, %v5998_v44, -inf }
0x2238   :  { %v6001_v52 = vadd.f32 %v10256_v25, %v5997_v12  ;;  %6003 = vmax.xlane.f32.xlu1 %v6002_v49  ;;  %8230 = vmatmul.mubr.msk.f32.vlgmr.msra.gmra.mrb[52].mxu1 %vm517_vm2, %v5235_v38 }
0x2239   :  { %v6000_v53 = vadd.f32 %v10256_v25, %v5996_v48 }
0x223a   :  { %v6011_v54 = vsel %vm517_vm2, %v6001_v52, -inf }
0x223b   :  { %v6008_v55 = vsel %vm517_vm2, %v6000_v53, -inf }
0x223c   :  { %6012 = vmax.xlane.f32.xlu1 %v6011_v54  ;;  %6009 = vmax.xlane.f32.xlu0 %v6008_v55 }
0x224d   :  { %6130 = vrot.lane.b32.xlu1 %v10233_v43, %s9364_s2 }
0x2251   :  { %6319 = vrot.lane.b32.xlu1 %v10235_v13, %s9369_s5 }
0x2252   :  { %6046 = vrot.lane.b32.xlu0 %v10235_v13, %s9364_s2  ;;  %s9372_s2 = smov [#allocation23]  }
0x2253   :  { %s7320_s7 = sshll.u32 %s9372_s2, 4  ;;  %s7321_s7 = int_to_ptr.vmem [resolvable:$true] %s7320_s7 }
0x2254   :  { %s9221_s18 = scalar_lea.vmem %s7321_s7, 32  ;;  %p9226_p13 = scmp.lt.s32.totalorder %s7321_s7, %s7321_s7 }
0x2255   :  { %p9222_p12 = scmp.ne.s32.totalorder %s7321_s7, %s9221_s18  ;;  %p9227_p0 = scmp.lt.s32.totalorder %s9221_s18, %s9221_s18 }
0x2257   :  { %p9228_p1 = por %p9227_p0, %p9226_p13 }
0x2259   :  { %p9229_p2 = pnand %p9228_p1, %p9222_p12 }
0x22c4   :  { %v6007_v63 = vpop.xlane.xlu0 %6006 }
0x22c5   :  { %v6015_v50 = vsub.f32 %v5999_v42, %v6007_v63  ;;  %v6004_v1 = vpop.xlane.xlu1 %6003 }
0x22c6   :  { %v6014_v47 = vsub.f32 %v5998_v44, %v6004_v1 }
0x22c7   :  { %v6020_v56 = vmul.f32 1.442695, %v6015_v50 }
0x22c8   :  { %v6018_v58 = vmul.f32 1.442695, %v6014_v47 }
0x22c9   :  { %8896 = vpow2.f32 %v6020_v56  ;;  %v6010_v5 = vpop.xlane.xlu0 %6009  ;;  %v6013_v37 = vpop.xlane.xlu1 %6012 }
0x22ca   :  { %8898 = vpow2.f32 %v6018_v58  ;;  %v6016_v7 = vsub.f32 %v6000_v53, %v6010_v5  ;;  %v6017_v60 = vsub.f32 %v6001_v52, %v6013_v37 }
0x22cc   :  { %v6022_v61 = vmul.f32 1.442695, %v6016_v7  ;;  %v6024_v59 = vmul.f32 1.442695, %v6017_v60 }
0x22cd   :  { %v6047_v0 = vpop.permute.xlu0 %6046  ;;  %v6131_v6 = vpop.permute.xlu1 %6130 }
0x22ce   :  { %8900 = vpow2.f32 %v6022_v61  ;;  %8273 = vmatprep.subr.mxu0 %v6047_v0 }
0x22cf   :  { %8902 = vpow2.f32 %v6024_v59  ;;  %8274 = vmatpush3.msra.mxu0 %v6047_v0 }
0x22d0   :  { %8278 = vmatprep.subr.mxu0 %v6131_v6 }
0x22d1   :  { %v6320_v35 = vpop.permute.xlu1 %6319 }
0x22d3   :  { %v8897_v2 = vpop.eup %8896 }
0x22d4   :  { %v8899_v3 = vpop.eup %8898  ;;  %v6029_v14 = vsel %vm517_vm2, %v8897_v2, 0.0 }
0x22d5   :  { %6030 = vadd.xlane.f32.xlu1 %v6029_v14  ;;  %v6026_v15 = vsel %vm517_vm2, %v8899_v3, 0.0 }
0x22d6   :  { %6027 = vadd.xlane.f32.xlu0 %v6026_v15 }
0x22d8   :  { %v8901_v11 = vpop.eup %8900 }
0x22d9   :  { %v8903_v19 = vpop.eup %8902  ;;  %v6032_v20 = vsel %vm517_vm2, %v8901_v11, 0.0 }
0x22da   :  { %6033 = vadd.xlane.f32.xlu0 %v6032_v20  ;;  %v6035_v21 = vsel %vm517_vm2, %v8903_v19, 0.0 }
0x22db   :  { %6036 = vadd.xlane.f32.xlu1 %v6035_v21 }
0x22ec   :  { %6317 = vrot.lane.b32.xlu1 %v10247_v4, %s9369_s5 }
0x22f0   :  { %6402 = vrot.lane.b32.xlu1 %v10228_v40, %s9369_s5  ;;  %6315 = vrot.lane.b32.xlu0 %v10224_v34, %s9369_s5 }
0x22f4   :  { %6406 = vrot.lane.b32.xlu0 %v10233_v43, %s9369_s5 }
0x22f8   :  { %6404 = vrot.lane.b32.xlu0 %v10243_v45, %s9369_s5 }
0x2307   :  { %v10368_v22 = vpop.f32.mrb[50].mxu1 }
0x2308   :  { %v10370_v26 = vpop.f32.mrb[51].mxu1 }
0x230b   :  { %v8231_v27 = vpop.f32.mrb[52].mxu1 }
0x230c   :  { %v5310_v18 = vpop.f32.mrb[53].mxu1  ;;  %v5407_v4 = vmul.f32 0.35355338, %v8231_v27 }
0x230d   :  { %v5406_v16 = vmul.f32 0.35355338, %v5310_v18 }
0x230e   :  { %v5411_v34 = vadd.f32 %v10295_v32, %v5407_v4 }
0x230f   :  { %v5410_v33 = vadd.f32 %v10295_v32, %v5406_v16 }
0x2310   :  { %v5417_v23 = vsel %vm517_vm2, %v5411_v34, -inf }
0x2311   :  { %v5414_v40 = vsel %vm517_vm2, %v5410_v33, -inf }
0x2314   :  { %5415 = vmax.xlane.f32.xlu1 %v5414_v40 }
0x2317   :  { %5418 = vmax.xlane.f32.xlu0 %v5417_v23 }
0x2362   :  { %v6031_v45 = vpop.xlane.xlu1 %6030 }
0x2363   :  { %8904 = vrcp.f32 %v6031_v45  ;;  %v6028_v36 = vpop.xlane.xlu0 %6027 }
0x2364   :  { %8906 = vrcp.f32 %v6028_v36 }
0x2367   :  { %v6034_v41 = vpop.xlane.xlu0 %6033 }
0x2368   :  { %8908 = vrcp.f32 %v6034_v41  ;;  %v6037_v42 = vpop.xlane.xlu1 %6036 }
0x2369   :  { %8910 = vrcp.f32 %v6037_v42 }
0x236b   :  { %v6316_v52 = vpop.permute.xlu0 %6315 }
0x236c   :  { %v6318_v53 = vpop.permute.xlu1 %6317 }
0x236d   :  { %v8905_v44 = vpop.eup %8904 }
0x236e   :  { %v8907_v51 = vpop.eup %8906  ;;  %v6043_v24 = vmul.f32 %v8905_v44, %v8897_v2 }
0x236f   :  { %v6042_v12 = vmul.f32 %v8907_v51, %v8899_v3  ;;  %v6407_v54 = vpop.permute.xlu0 %6406 }
0x2370   :  { %v6403_v55 = vpop.permute.xlu1 %6402 }
0x2371   :  { %8275 = vmatprep.mubr.msk.f32.mxu0 %vm517_vm2, %v6042_v12 }
0x2372   :  { %v8909_v39 = vpop.eup %8908  ;;  %8276 = vmatmul.mubr.msk.f32.vlgmr.msra.gmra.mrb[50].mxu0 %vm517_vm2, %v6043_v24  ;;  %v358_v24 = vld [vmem:[#allocation13] sm:$0xff] }
0x2373   :  { %v8911_v38 = vpop.eup %8910  ;;  %8279 = vmatpush3.msra.mxu0 %v6131_v6  ;;  %v6044_v48 = vmul.f32 %v8909_v39, %v8901_v11  ;;  %v6405_v63 = vpop.permute.xlu0 %6404 }
0x2374   :  { %v6045_v49 = vmul.f32 %v8911_v38, %v8903_v19  ;;  %8291 = vmatprep.subr.msk.mxu0 %vm517_vm2, %v6320_v35 }
0x2375   :  { %8280 = vmatprep.mubr.msk.f32.mxu0 %vm517_vm2, %v6044_v48 }
0x2376   :  { %8281 = vmatmul.mubr.msk.f32.vlgmr.msra.gmra.mrb[52].mxu0 %vm517_vm2, %v6045_v49 }
0x2377   :  { %8293 = vmatprep.mubr.msk.f32.mxu0 %vm517_vm2, %v6316_v52 }
0x237a   :  { %8292 = vmatpush3.xpose.msk.msra.mxu0 %vm517_vm2, %v6320_v35 }
0x237b   :  { %8296 = vmatprep.subr.msk.mxu0 %vm517_vm2, %v6407_v54 }
0x237d   :  { %8294 = vmatmul.mubr.msk.f32.vlgmr.msra.gmra.mrb[54].mxu0 %vm517_vm2, %v6318_v53 }
0x237e   :  { %8297 = vmatpush3.xpose.msk.msra.mxu0 %vm517_vm2, %v6407_v54  ;;  %8298 = vmatprep.mubr.msk.f32.mxu0 %vm517_vm2, %v6403_v55 }
0x2381   :  { %8299 = vmatmul.mubr.msk.f32.vlgmr.msra.gmra.mrb[56].mxu0 %vm517_vm2, %v6405_v63 }
0x23a1   :  { %v5416_v50 = vpop.xlane.xlu1 %5415 }
0x23a2   :  { %v5426_v1 = vsub.f32 %v5410_v33, %v5416_v50 }
0x23a4   :  { %v5430_v47 = vmul.f32 1.442695, %v5426_v1  ;;  %v5419_v56 = vpop.xlane.xlu0 %5418 }
0x23a5   :  { %v5427_v58 = vsub.f32 %v5411_v34, %v5419_v56 }
0x23a6   :  { %8912 = vpow2.f32 %v5430_v47 }
0x23a7   :  { %v5432_v5 = vmul.f32 1.442695, %v5427_v58 }
0x23a9   :  { %8914 = vpow2.f32 %v5432_v5 }
0x23b0   :  { %v8913_v37 = vpop.eup %8912 }
0x23b1   :  { %v5438_v7 = vsel %vm517_vm2, %v8913_v37, 0.0 }
0x23b2   :  { %5439 = vadd.xlane.f32.xlu0 %v5438_v7 }
0x23b3   :  { %v8915_v60 = vpop.eup %8914 }
0x23b4   :  { %v5441_v61 = vsel %vm517_vm2, %v8915_v60, 0.0 }
0x23b5   :  { %5442 = vadd.xlane.f32.xlu1 %v5441_v61 }
0x23c8   :  { %5458 = vrot.lane.b32.xlu0 %v10235_v13, %s9363_s14  ;;  %s10570_s14 = sld [smem:[#allocation45_spill]] }
0x243f   :  { %v5440_v59 = vpop.xlane.xlu0 %5439 }
0x2440   :  { %8916 = vrcp.f32 %v5440_v59 }
0x2442   :  { %v5443_v0 = vpop.xlane.xlu1 %5442 }
0x2443   :  { %v5459_v6 = vpop.permute.xlu0 %5458  ;;  %8918 = vrcp.f32 %v5443_v0  ;;  %v360_v0 = vld [vmem:[#allocation13 + $0x10] sm:$0xff] }
0x2444   :  { %8237 = vmatprep.subr.mxu1 %v5459_v6 }
0x2445   :  { %8238 = vmatpush3.msra.mxu1 %v5459_v6  ;;  %v10392_v2 = vpop.f32.mrb[50].mxu0 }
0x2446   :  { %v10394_v3 = vpop.f32.mrb[51].mxu0 }
0x2449   :  { %v10396_v14 = vpop.f32.mrb[52].mxu0 }
0x244a   :  { %v8917_v15 = vpop.eup %8916  ;;  %v10398_v11 = vpop.f32.mrb[53].mxu0 }
0x244b   :  { %v5454_v19 = vmul.f32 %v8917_v15, %v8913_v37 }
0x244d   :  { %v8919_v20 = vpop.eup %8918  ;;  %8239 = vmatprep.mubr.msk.f32.mxu1 %vm517_vm2, %v5454_v19 }
0x244e   :  { %v5455_v21 = vmul.f32 %v8919_v20, %v8915_v60  ;;  %v361_v20 = vld [vmem:[#allocation13 + $0x18] sm:$0xff] }
0x2450   :  { %v8295_v27 = vpop.f32.mrb[54].mxu0  ;;  %8240 = vmatmul.mubr.msk.f32.vlgmr.msra.gmra.mrb[54].mxu1 %vm517_vm2, %v5455_v21 }
0x2451   :  { %v6490_v18 = vmul.f32 0.35355338, %v8295_v27  ;;  %v6393_v16 = vpop.f32.mrb[55].mxu0 }
0x2452   :  { %v6489_v4 = vmul.f32 0.35355338, %v6393_v16 }
0x2453   :  { %v6494_v33 = vadd.f32 %v10295_v32, %v6490_v18 }
0x2454   :  { %v8300_v40 = vpop.f32.mrb[56].mxu0  ;;  %v6493_v34 = vadd.f32 %v10295_v32, %v6489_v4  ;;  %v359_v32 = vld [vmem:[#allocation13 + $0x8] sm:$0xff]  ;;  %v7573_v4 = vld [vmem:[%s10564_s13] ss:$0 sm:$0xff] }
0x2455   :  { %v6480_v23 = vpop.f32.mrb[57].mxu0  ;;  %v6500_v35 = vsel %vm517_vm2, %v6494_v33, -inf  ;;  %v6492_v36 = vmul.f32 0.35355338, %v8300_v40  ;;  %8247 = vmatprep.subr.mxu1 %v359_v32 }
0x2456   :  { %v6491_v45 = vmul.f32 0.35355338, %v6480_v23  ;;  %6501 = vmax.xlane.f32.xlu1 %v6500_v35  ;;  %v6497_v42 = vsel %vm517_vm2, %v6493_v34, -inf  ;;  %8248 = vmatpush3.msra.mxu1 %v359_v32 }
0x2457   :  { %v6496_v44 = vadd.f32 %v10256_v25, %v6492_v36  ;;  %8255 = vmatprep.subr.mxu1 %v358_v24 }
0x2458   :  { %v6495_v41 = vadd.f32 %v10256_v25, %v6491_v45 }
0x2459   :  { %v6506_v12 = vsel %vm517_vm2, %v6496_v44, -inf }
0x245a   :  { %6498 = vmax.xlane.f32.xlu1 %v6497_v42  ;;  %v6503_v51 = vsel %vm517_vm2, %v6495_v41, -inf }
0x245e   :  { %6504 = vmax.xlane.f32.xlu1 %v6503_v51 }
0x2462   :  { %6507 = vmax.xlane.f32.xlu1 %v6506_v12 }
0x2473   :  { %6541 = vrot.lane.b32.xlu1 %v10235_v13, %s9368_s23 }
0x24e3   :  { %v6502_v39 = vpop.xlane.xlu1 %6501 }
0x24e4   :  { %v6510_v38 = vsub.f32 %v6494_v33, %v6502_v39 }
0x24e6   :  { %v6515_v48 = vmul.f32 1.442695, %v6510_v38 }
0x24e7   :  { %v6499_v49 = vpop.xlane.xlu1 %6498 }
0x24e8   :  { %8920 = vpow2.f32 %v6515_v48  ;;  %v6509_v25 = vsub.f32 %v6493_v34, %v6499_v49 }
0x24ea   :  { %v6513_v52 = vmul.f32 1.442695, %v6509_v25 }
0x24eb   :  { %v6505_v53 = vpop.xlane.xlu1 %6504 }
0x24ec   :  { %8922 = vpow2.f32 %v6513_v52  ;;  %v6511_v54 = vsub.f32 %v6495_v41, %v6505_v53 }
0x24ee   :  { %v6517_v1 = vmul.f32 1.442695, %v6511_v54 }
0x24ef   :  { %v6508_v55 = vpop.xlane.xlu1 %6507 }
0x24f0   :  { %v6512_v63 = vsub.f32 %v6496_v44, %v6508_v55 }
0x24f2   :  { %v8921_v50 = vpop.eup %8920  ;;  %v6519_v13 = vmul.f32 1.442695, %v6512_v63 }
0x24f3   :  { %v6524_v47 = vsel %vm517_vm2, %v8921_v50, 0.0 }
0x24f4   :  { %8924 = vpow2.f32 %v6519_v13  ;;  %6525 = vadd.xlane.f32.xlu0 %v6524_v47 }
0x24f5   :  { %8926 = vpow2.f32 %v6517_v1 }
0x24f6   :  { %v8923_v56 = vpop.eup %8922 }
0x24f7   :  { %v6521_v58 = vsel %vm517_vm2, %v8923_v56, 0.0 }
0x24f8   :  { %6522 = vadd.xlane.f32.xlu1 %v6521_v58 }
0x24fe   :  { %v8925_v5 = vpop.eup %8924 }
0x24ff   :  { %v6530_v37 = vsel %vm517_vm2, %v8925_v5, 0.0  ;;  %v8927_v7 = vpop.eup %8926 }
0x2500   :  { %6531 = vadd.xlane.f32.xlu1 %v6530_v37  ;;  %v6527_v60 = vsel %vm517_vm2, %v8927_v7, 0.0 }
0x2504   :  { %6528 = vadd.xlane.f32.xlu1 %v6527_v60  ;;  %v332_v60 = vld [vmem:[#allocation8 + $0x8] sm:$0xff] }
0x2515   :  { %6625 = vrot.lane.b32.xlu1 %v10233_v43, %s9368_s23  ;;  %v6542_v43 = vpop.permute.xlu1 %6541 }
0x2523   :  { %v8241_v61 = vpop.f32.mrb[54].mxu1 }
0x2524   :  { %v5533_v59 = vpop.f32.mrb[55].mxu1 }
0x2525   :  { %8249 = vmatprep.mubr.msk.f32.mxu1 %vm517_vm2, %v5533_v59  ;;  %v333_v59 = vld [vmem:[#allocation8 + $0x10] sm:$0xff] }
0x2526   :  { %8250 = vmatmul.mubr.msk.f32.vlgmr.msra.gmra.mrb[56].mxu1 %vm517_vm2, %v8241_v61 }
0x2527   :  { %8252 = vmatprep.mubr.msk.f32.mxu1 %vm517_vm2, %v10334_v29  ;;  %8256 = vmatpush3.msra.mxu1 %v358_v24 }
0x2528   :  { %8283 = vmatprep.subr.mxu1 %v360_v0 }
0x252a   :  { %8253 = vmatmul.mubr.msk.f32.gmra.mrb[58].mxu1 %vm517_vm2, %v10332_v28 }
0x252b   :  { %8257 = vmatprep.mubr.msk.f32.mxu1 %vm517_vm2, %v10370_v26 }
0x252e   :  { %8258 = vmatmul.mubr.msk.f32.vlgmr.msra.gmra.mrb[56].mxu1 %vm517_vm2, %v10368_v22 }
0x252f   :  { %8284 = vmatpush3.msra.mxu1 %v360_v0  ;;  %8260 = vmatprep.mubr.msk.f32.mxu1 %vm517_vm2, %v10280_v17  ;;  %v334_v0 = vld [vmem:[#allocation8 + $0x18] sm:$0xff] }
0x2530   :  { %8301 = vmatprep.subr.mxu1 %v6542_v43 }
0x2532   :  { %8261 = vmatmul.mubr.msk.f32.gmra.mrb[58].mxu1 %vm517_vm2, %v10278_v10 }
0x2533   :  { %8285 = vmatprep.mubr.msk.f32.mxu1 %vm517_vm2, %v10394_v3 }
0x2536   :  { %8286 = vmatmul.mubr.msk.f32.vlgmr.msra.gmra.mrb[56].mxu1 %vm517_vm2, %v10392_v2 }
0x2537   :  { %8302 = vmatpush3.msra.mxu1 %v6542_v43  ;;  %8288 = vmatprep.mubr.msk.f32.mxu1 %vm517_vm2, %v10398_v11  ;;  %v8538_v43 = vpack.c.bf16 %v334_v0, %v333_v59 }
0x2538   :  { %8311 = vmatprep.subr.mxu1 %v361_v20 }
0x253a   :  { %8289 = vmatmul.mubr.msk.f32.gmra.mrb[58].mxu1 %vm517_vm2, %v10396_v14 }
0x2581   :  { %v6526_v28 = vpop.xlane.xlu0 %6525 }
0x2582   :  { %8928 = vrcp.f32 %v6526_v28  ;;  %v335_v28 = vld [vmem:[#allocation10] sm:$0xff] }
0x2585   :  { %v6523_v17 = vpop.xlane.xlu1 %6522 }
0x2586   :  { %8930 = vrcp.f32 %v6523_v17  ;;  %v336_v17 = vld [vmem:[#allocation10 + $0x8] sm:$0xff] }
0x258c   :  { %v8929_v22 = vpop.eup %8928 }
0x258d   :  { %v6532_v29 = vpop.xlane.xlu1 %6531  ;;  %v6538_v3 = vmul.f32 %v8929_v22, %v8921_v50  ;;  %v8542_v22 = vpack.c.bf16 %v336_v17, %v335_v28 }
0x258e   :  { %8932 = vrcp.f32 %v6532_v29  ;;  %v337_v29 = vld [vmem:[#allocation10 + $0x10] sm:$0xff] }
0x2590   :  { %v8931_v10 = vpop.eup %8930 }
0x2591   :  { %v6529_v26 = vpop.xlane.xlu1 %6528  ;;  %v6537_v6 = vmul.f32 %v8931_v10, %v8923_v56  ;;  %v338_v10 = vld [vmem:[#allocation10 + $0x18] sm:$0xff] }
0x2592   :  { %8934 = vrcp.f32 %v6529_v26  ;;  %v8546_v26 = vpack.c.bf16 %v338_v10, %v337_v29 }
0x2593   :  { %8303 = vmatprep.mubr.msk.f32.mxu1 %vm517_vm2, %v6537_v6  ;;  %v339_v6 = vld [vmem:[#allocation10 + $0x20] sm:$0xff] }
0x2594   :  { %8304 = vmatmul.mubr.msk.f32.vlgmr.msra.gmra.mrb[60].mxu1 %vm517_vm2, %v6538_v3  ;;  %v340_v3 = vld [vmem:[#allocation10 + $0x28] sm:$0xff] }
0x2595   :  { %v6626_v2 = vpop.permute.xlu1 %6625  ;;  %8312 = vmatpush3.msra.mxu1 %v361_v20  ;;  %v344_v20 = vld [vmem:[#allocation10 + $0x48] sm:$0xff] }
0x2596   :  { %8306 = vmatprep.subr.mxu0 %v6626_v2  ;;  %8543 = vmatprep.subr.bf16.mxu1 %v8542_v22 }
0x2597   :  { %8307 = vmatpush3.msra.mxu0 %v6626_v2  ;;  %v8550_v2 = vpack.c.bf16 %v340_v3, %v339_v6 }
0x2598   :  { %v8933_v14 = vpop.eup %8932 }
0x2599   :  { %v6540_v19 = vmul.f32 %v8933_v14, %v8925_v5  ;;  %v341_v14 = vld [vmem:[#allocation10 + $0x30] sm:$0xff] }
0x259c   :  { %v8935_v15 = vpop.eup %8934 }
0x259d   :  { %v6539_v11 = vmul.f32 %v8935_v15, %v8927_v7  ;;  %v331_v7 = vld [vmem:[#allocation8] sm:$0xff]  ;;  %v342_v15 = vld [vmem:[#allocation10 + $0x38] sm:$0xff] }
0x259e   :  { %v8534_v61 = vpack.c.bf16 %v332_v60, %v331_v7 }
0x259f   :  { %8308 = vmatprep.mubr.msk.f32.mxu0 %vm517_vm2, %v6539_v11  ;;  %v8554_v11 = vpack.c.bf16 %v342_v15, %v341_v14 }
0x25a0   :  { %8309 = vmatmul.mubr.msk.f32.vlgmr.msra.gmra.mrb[58].mxu0 %vm517_vm2, %v6540_v19  ;;  %8535 = vmatprep.subr.bf16.mxu0 %v8534_v61  ;;  %v343_v19 = vld [vmem:[#allocation10 + $0x40] sm:$0xff] }
0x25a1   :  { %8537 = vmatpush3.bf16.msra.mxu0 %v8534_v61 }
0x25a2   :  { %8539 = vmatprep.subr.bf16.mxu0 %v8538_v43 }
0x25a5   :  { %8541 = vmatpush3.bf16.msra.mxu0 %v8538_v43 }
0x2667   :  { %v8305_v21 = vpop.f32.mrb[60].mxu1 }
0x2668   :  { %v6616_v27 = vpop.f32.mrb[61].mxu1 }
0x2669   :  { %8313 = vmatprep.mubr.msk.f32.mxu1 %vm517_vm2, %v6616_v27  ;;  %v345_v27 = vld [vmem:[#allocation10 + $0x50] sm:$0xff] }
0x266a   :  { %8314 = vmatmul.mubr.msk.f32.vlgmr.msra.gmra.mrb[56].mxu1 %vm517_vm2, %v8305_v21  ;;  %v8558_v21 = vpack.c.bf16 %v344_v20, %v343_v19 }
0x266b   :  { %8545 = vmatpush3.bf16.msra.mxu1 %v8542_v22 }
0x266c   :  { %8547 = vmatprep.subr.bf16.mxu1 %v8546_v26 }
0x266f   :  { %8549 = vmatpush3.bf16.msra.mxu1 %v8546_v26  ;;  %v7581_v26 = vld [vmem:[%s10568_s27] ss:$0 sm:$0xff] }
0x2670   :  { %8551 = vmatprep.subr.bf16.mxu1 %v8550_v2 }
0x2673   :  { %v8310_v18 = vpop.f32.mrb[58].mxu0  ;;  %8553 = vmatpush3.bf16.msra.mxu1 %v8550_v2 }
0x2674   :  { %v6700_v16 = vpop.f32.mrb[59].mxu0  ;;  %8555 = vmatprep.subr.bf16.mxu1 %v8554_v11 }
0x2675   :  { %8316 = vmatprep.mubr.msk.f32.mxu1 %vm517_vm2, %v6700_v16 }
0x2676   :  { %8317 = vmatmul.mubr.msk.f32.gmra.mrb[58].mxu1 %vm517_vm2, %v8310_v18  ;;  %v346_v18 = vld [vmem:[#allocation10 + $0x58] sm:$0xff] }
0x2677   :  { %8557 = vmatpush3.bf16.msra.mxu1 %v8554_v11  ;;  %v8562_v16 = vpack.c.bf16 %v346_v18, %v345_v27 }
0x2678   :  { %8559 = vmatprep.subr.bf16.mxu1 %v8558_v21 }
0x267b   :  { %8561 = vmatpush3.bf16.msra.mxu1 %v8558_v21 }
0x267c   :  { %8563 = vmatprep.subr.bf16.mxu1 %v8562_v16 }
0x267f   :  { %8565 = vmatpush3.bf16.msra.mxu1 %v8562_v16 }
0x273d   :  { %v8315_v33 = vpop.f32.mrb[56].mxu1 }
0x273e   :  { %v6817_v40 = vadd.f32 %v8315_v33, %v7573_v4  ;;  %v6787_v34 = vpop.f32.mrb[57].mxu1  ;;  %v348_v33 = vld [vmem:[#allocation10 + $0x68] sm:$0xff] }
0x273f   :  { %v6816_v23 = vadd.f32 %v7573_v4, %v6787_v34 }
0x2740   :  { %v6821_v35 = vadd.f32 %v6817_v40, %v10192_v9 }
0x2741   :  { %v6820_v45 = vadd.f32 %v6816_v23, %v10189_v46 }
0x2742   :  { %v6827_v36 = vsel %vm432_vm0, %v6821_v35, 0.0 }
0x2743   :  { %6828 = vadd.xlane.f32.xlu0 %v6827_v36  ;;  %v6824_v41 = vsel %vm432_vm0, %v6820_v45, 0.0 }
0x2744   :  { %6825 = vadd.xlane.f32.xlu1 %v6824_v41 }
0x2749   :  { %v8318_v42 = vpop.f32.mrb[58].mxu1 }
0x274a   :  { %v6797_v44 = vpop.f32.mrb[59].mxu1  ;;  %v6819_v51 = vadd.f32 %v8318_v42, %v7573_v4 }
0x274b   :  { %v6818_v12 = vadd.f32 %v7573_v4, %v6797_v44  ;;  %v347_v4 = vld [vmem:[#allocation10 + $0x60] sm:$0xff] }
0x274c   :  { %v6823_v24 = vadd.f32 %v6819_v51, %v10205_v62  ;;  %v8566_v40 = vpack.c.bf16 %v348_v33, %v347_v4 }
0x274d   :  { %v6822_v32 = vadd.f32 %v6818_v12, %v10201_v57 }
0x274e   :  { %v6833_v9 = vsel %vm432_vm0, %v6823_v24, 0.0  ;;  %8567 = vmatprep.subr.bf16.mxu1 %v8566_v40 }
0x274f   :  { %v6830_v39 = vsel %vm432_vm0, %v6822_v32, 0.0  ;;  %8569 = vmatpush3.bf16.msra.mxu1 %v8566_v40 }
0x2750   :  { %6831 = vadd.xlane.f32.xlu0 %v6830_v39 }
0x2754   :  { %6834 = vadd.xlane.f32.xlu0 %v6833_v9  ;;  %v7574_v9 = vld [vmem:[%s10565_s29] ss:$0 sm:$0xff] }
0x27d0   :  { %v6829_v46 = vpop.xlane.xlu0 %6828 }
0x27d1   :  { %v6837_v38 = vmul.f32 0.03125, %v6829_v46  ;;  %v6826_v48 = vpop.xlane.xlu1 %6825 }
0x27d2   :  { %v6836_v49 = vmul.f32 0.03125, %v6826_v48 }
0x27d3   :  { %v10457_v25 = vsub.f32 %v6821_v35, %v6837_v38 }
0x27d4   :  { %v10459_v52 = vsub.f32 %v6820_v45, %v6836_v49 }
0x27d5   :  { %v6845_v53 = vmul.f32 %v10457_v25, %v10457_v25 }
0x27d6   :  { %v6844_v62 = vmul.f32 %v10459_v52, %v10459_v52 }
0x27d7   :  { %v6851_v57 = vsel %vm432_vm0, %v6845_v53, 0.0  ;;  %v7575_v53 = vld [vmem:[%s10566_s16] ss:$0 sm:$0xff] }
0x27d8   :  { %6852 = vadd.xlane.f32.xlu0 %v6851_v57  ;;  %v6848_v54 = vsel %vm432_vm0, %v6844_v62, 0.0 }
0x27dc   :  { %6849 = vadd.xlane.f32.xlu0 %v6848_v54 }
0x27dd   :  { %v6832_v55 = vpop.xlane.xlu0 %6831 }
0x27de   :  { %v6838_v63 = vmul.f32 0.03125, %v6832_v55 }
0x27e0   :  { %v10467_v50 = vsub.f32 %v6822_v32, %v6838_v63 }
0x27e1   :  { %v6835_v1 = vpop.xlane.xlu0 %6834 }
0x27e2   :  { %v6839_v13 = vmul.f32 0.03125, %v6835_v1  ;;  %v6846_v47 = vmul.f32 %v10467_v50, %v10467_v50 }
0x27e4   :  { %v10471_v56 = vsub.f32 %v6823_v24, %v6839_v13  ;;  %v6854_v58 = vsel %vm432_vm0, %v6846_v47, 0.0 }
0x27e5   :  { %6855 = vadd.xlane.f32.xlu0 %v6854_v58 }
0x27e6   :  { %v6847_v5 = vmul.f32 %v10471_v56, %v10471_v56 }
0x27e8   :  { %v6857_v37 = vsel %vm432_vm0, %v6847_v5, 0.0  ;;  %v349_v5 = vld [vmem:[#allocation10 + $0x70] sm:$0xff] }
0x27e9   :  { %6858 = vadd.xlane.f32.xlu0 %v6857_v37  ;;  %v350_v37 = vld [vmem:[#allocation10 + $0x78] sm:$0xff] }
0x27ea   :  { %v8570_v7 = vpack.c.bf16 %v350_v37, %v349_v5 }
0x27ec   :  { %8571 = vmatprep.subr.bf16.mxu1 %v8570_v7 }
0x27ed   :  { %8573 = vmatpush3.bf16.msra.mxu1 %v8570_v7 }
0x2865   :  { %v6853_v34 = vpop.xlane.xlu0 %6852 }
0x2866   :  { %v6861_v23 = vmul.f32 0.03125, %v6853_v34 }
0x2868   :  { %v6865_v35 = vadd.f32 1e-06, %v6861_v23 }
0x2869   :  { %v6850_v45 = vpop.xlane.xlu0 %6849 }
0x286a   :  { %8936 = vrsqrt.f32 %v6865_v35  ;;  %v6860_v36 = vmul.f32 0.03125, %v6850_v45 }
0x286c   :  { %v6864_v41 = vadd.f32 1e-06, %v6860_v36 }
0x286e   :  { %8938 = vrsqrt.f32 %v6864_v41 }
0x2872   :  { %v6856_v42 = vpop.xlane.xlu0 %6855 }
0x2873   :  { %v6862_v44 = vmul.f32 0.03125, %v6856_v42 }
0x2874   :  { %v8937_v51 = vpop.eup %8936 }
0x2875   :  { %v6866_v12 = vadd.f32 1e-06, %v6862_v44  ;;  %v6873_v32 = vmul.f32 %v8937_v51, %v10457_v25 }
0x2876   :  { %v6859_v24 = vpop.xlane.xlu0 %6858 }
0x2877   :  { %8940 = vrsqrt.f32 %v6866_v12  ;;  %v6863_v39 = vmul.f32 0.03125, %v6859_v24  ;;  %v6883_v49 = vmul.f32 %v7574_v9, %v6873_v32 }
0x2878   :  { %v8939_v46 = vpop.eup %8938 }
0x2879   :  { %v6867_v38 = vadd.f32 1e-06, %v6863_v39  ;;  %v6872_v48 = vmul.f32 %v8939_v46, %v10459_v52  ;;  %v6893_v54 = vadd.f32 %v7575_v53, %v6883_v49 }
0x287b   :  { %8942 = vrsqrt.f32 %v6867_v38  ;;  %v6882_v57 = vmul.f32 %v7574_v9, %v6872_v48 }
0x287d   :  { %v6892_v62 = vadd.f32 %v7575_v53, %v6882_v57 }
0x287f   :  { %8327 = vmatprep.mubr.msk.f32.mxu0 %vm432_vm0, %v6892_v62 }
0x2880   :  { %8328 = vmatmul.mubr.msk.f32.vlgmr.msra.gmra.mrb[60].mxu0 %vm432_vm0, %v6893_v54 }
0x2881   :  { %v8941_v55 = vpop.eup %8940 }
0x2882   :  { %v6874_v25 = vmul.f32 %v8941_v55, %v10467_v50  ;;  %v7576_v50 = vld [vmem:[%s10567_s20] ss:$0 sm:$0xff]  ;;  %v326_v55 = vld [vmem:[#allocation7 + $0x8] sm:$0xff] }
0x2884   :  { %v6884_v63 = vmul.f32 %v7574_v9, %v6874_v25  ;;  %v327_v25 = vld [vmem:[#allocation7 + $0x10] sm:$0xff] }
0x2885   :  { %v8943_v1 = vpop.eup %8942 }
0x2886   :  { %v6894_v13 = vadd.f32 %v7575_v53, %v6884_v63  ;;  %v6875_v47 = vmul.f32 %v8943_v1, %v10471_v56  ;;  %v9371_v63 = vmov 0.0|0.0  }
0x2887   :  { %8574 = vmatprep.subr.bf16.mxu0 %v9371_v63 }
0x2888   :  { %8330 = vmatprep.mubr.msk.f32.mxu0 %vm432_vm0, %v6894_v13  ;;  %v6885_v52 = vmul.f32 %v7574_v9, %v6875_v47 }
0x288a   :  { %v6895_v58 = vadd.f32 %v7575_v53, %v6885_v52 }
0x288c   :  { %8331 = vmatmul.mubr.msk.f32.gmra.mrb[62].mxu0 %vm432_vm0, %v6895_v58 }
0x288d   :  { %8379 = vmatprep.mubr.msk.f32.mxu0 %vm9359_vm1, %v9358_v8 }
0x2953   :  { %v8329_v60 = vpop.f32.mrb[60].mxu0 }
0x2954   :  { %v6986_v61 = vadd.f32 %v8329_v60, %v7576_v50  ;;  %v6980_v59 = vpop.f32.mrb[61].mxu0 }
0x2955   :  { %v6981_v56 = vadd.f32 %v7576_v50, %v6980_v59 }
0x2956   :  { %v7000_v43 = vmax.f32 %v6986_v61, 0.0 }
0x2957   :  { %v6999_v0 = vmax.f32 %v6981_v56, 0.0 }
0x2959   :  { %8365 = vmatprep.mubr.f32.mxu1 %v6999_v0 }
0x295a   :  { %8366 = vmatmul.mubr.f32.vlgmr.msra.gmra.mrb[62].mxu1 %v7000_v43  ;;  %v7582_v43 = vld [vmem:[%s10569_s4] ss:$0 sm:$0xff] }
0x295f   :  { %v8332_v28 = vpop.f32.mrb[62].mxu0 }
0x2960   :  { %v6996_v17 = vadd.f32 %v8332_v28, %v7576_v50  ;;  %v6990_v29 = vpop.f32.mrb[63].mxu0 }
0x2961   :  { %v6991_v22 = vadd.f32 %v7576_v50, %v6990_v29 }
0x2962   :  { %v7002_v10 = vmax.f32 %v6996_v17, 0.0 }
0x2963   :  { %v7001_v8 = vmax.f32 %v6991_v22, 0.0 }
0x2965   :  { %8368 = vmatprep.mubr.f32.mxu1 %v7001_v8 }
0x2966   :  { %8369 = vmatmul.mubr.f32.gmra.mrb[64].mxu1 %v7002_v10  ;;  %v7583_v10 = vld [vmem:[%s10570_s14] ss:$0 sm:$0xff] }
0x2a2d   :  { %v8367_v6 = vpop.f32.mrb[62].mxu1 }
0x2a2e   :  { %v7081_v3 = vadd.f32 %v8367_v6, %v7581_v26  ;;  %v7075_v2 = vpop.f32.mrb[63].mxu1 }
0x2a2f   :  { %v7076_v14 = vadd.f32 %v7581_v26, %v7075_v2 }
0x2a30   :  { %v7095_v15 = vadd.f32 %v7081_v3, %v6893_v54  ;;  %v325_v54 = vld [vmem:[#allocation7] sm:$0xff] }
0x2a31   :  { %v7094_v11 = vadd.f32 %v7076_v14, %v6892_v62  ;;  %v8575_v1 = vpack.c.bf16 %v326_v55, %v325_v54 }
0x2a32   :  { %v7101_v19 = vsel %vm432_vm0, %v7095_v15, 0.0 }
0x2a33   :  { %7102 = vadd.xlane.f32.xlu0 %v7101_v19  ;;  %v7098_v20 = vsel %vm432_vm0, %v7094_v11, 0.0  ;;  %8576 = vmatpush3.bf16.msra.mxu0 %v8575_v1 }
0x2a34   :  { %8577 = vmatprep.subr.bf16.mxu0 %v9371_v63 }
0x2a37   :  { %7099 = vadd.xlane.f32.xlu0 %v7098_v20 }
0x2a39   :  { %v8370_v21 = vpop.f32.mrb[64].mxu1 }
0x2a3a   :  { %v7091_v27 = vadd.f32 %v8370_v21, %v7581_v26  ;;  %v7085_v18 = vpop.f32.mrb[65].mxu1 }
0x2a3b   :  { %v7086_v16 = vadd.f32 %v7581_v26, %v7085_v18 }
0x2a3c   :  { %v7097_v4 = vadd.f32 %v7091_v27, %v6895_v58 }
0x2a3d   :  { %v7096_v33 = vadd.f32 %v7086_v16, %v6894_v13  ;;  %v328_v13 = vld [vmem:[#allocation7 + $0x18] sm:$0xff] }
0x2a3e   :  { %v7107_v40 = vsel %vm432_vm0, %v7097_v4, 0.0  ;;  %v8578_v47 = vpack.c.bf16 %v328_v13, %v327_v25 }
0x2a3f   :  { %7108 = vadd.xlane.f32.xlu0 %v7107_v40  ;;  %v7104_v34 = vsel %vm432_vm0, %v7096_v33, 0.0 }
0x2a40   :  { %7105 = vadd.xlane.f32.xlu1 %v7104_v34  ;;  %8579 = vmatpush3.bf16.msra.mxu0 %v8578_v47 }
0x2ac0   :  { %v7103_v23 = vpop.xlane.xlu0 %7102 }
0x2ac1   :  { %v7111_v35 = vmul.f32 0.03125, %v7103_v23 }
0x2ac3   :  { %v7115_v45 = vsub.f32 %v7095_v15, %v7111_v35 }
0x2ac4   :  { %v7100_v36 = vpop.xlane.xlu0 %7099 }
0x2ac5   :  { %v7110_v41 = vmul.f32 0.03125, %v7100_v36  ;;  %v7119_v42 = vmul.f32 %v7115_v45, %v7115_v45 }
0x2ac7   :  { %v7114_v44 = vsub.f32 %v7094_v11, %v7110_v41  ;;  %v7125_v51 = vsel %vm432_vm0, %v7119_v42, 0.0 }
0x2ac8   :  { %7126 = vadd.xlane.f32.xlu0 %v7125_v51 }
0x2ac9   :  { %v7118_v12 = vmul.f32 %v7114_v44, %v7114_v44 }
0x2acb   :  { %v7122_v32 = vsel %vm432_vm0, %v7118_v12, 0.0 }
0x2acc   :  { %7123 = vadd.xlane.f32.xlu1 %v7122_v32  ;;  %v7109_v24 = vpop.xlane.xlu0 %7108 }
0x2acd   :  { %v7113_v39 = vmul.f32 0.03125, %v7109_v24  ;;  %v7106_v9 = vpop.xlane.xlu1 %7105 }
0x2ace   :  { %v7112_v46 = vmul.f32 0.03125, %v7106_v9 }
0x2acf   :  { %v7117_v38 = vsub.f32 %v7097_v4, %v7113_v39 }
0x2ad0   :  { %v7116_v48 = vsub.f32 %v7096_v33, %v7112_v46 }
0x2ad1   :  { %v7121_v49 = vmul.f32 %v7117_v38, %v7117_v38 }
0x2ad2   :  { %v7120_v53 = vmul.f32 %v7116_v48, %v7116_v48 }
0x2ad3   :  { %v7131_v57 = vsel %vm432_vm0, %v7121_v49, 0.0 }
0x2ad4   :  { %7132 = vadd.xlane.f32.xlu0 %v7131_v57  ;;  %v7128_v62 = vsel %vm432_vm0, %v7120_v53, 0.0 }
0x2ad5   :  { %7129 = vadd.xlane.f32.xlu1 %v7128_v62 }
0x2b55   :  { %v7127_v52 = vpop.xlane.xlu0 %7126 }
0x2b56   :  { %v7135_v58 = vmul.f32 0.03125, %v7127_v52 }
0x2b58   :  { %v7139_v5 = vadd.f32 1e-06, %v7135_v58 }
0x2b59   :  { %v7124_v37 = vpop.xlane.xlu1 %7123 }
0x2b5a   :  { %8944 = vrsqrt.f32 %v7139_v5  ;;  %v7134_v7 = vmul.f32 0.03125, %v7124_v37 }
0x2b5c   :  { %v7138_v50 = vadd.f32 1e-06, %v7134_v7 }
0x2b5e   :  { %8946 = vrsqrt.f32 %v7138_v50 }
0x2b61   :  { %v7133_v60 = vpop.xlane.xlu0 %7132 }
0x2b62   :  { %v7137_v61 = vmul.f32 0.03125, %v7133_v60  ;;  %v7130_v59 = vpop.xlane.xlu1 %7129 }
0x2b63   :  { %v7136_v56 = vmul.f32 0.03125, %v7130_v59 }
0x2b64   :  { %v8945_v0 = vpop.eup %8944  ;;  %v7141_v28 = vadd.f32 1e-06, %v7137_v61 }
0x2b65   :  { %v7147_v17 = vmul.f32 %v8945_v0, %v7115_v45  ;;  %v7140_v29 = vadd.f32 1e-06, %v7136_v56 }
0x2b66   :  { %8948 = vrsqrt.f32 %v7141_v28 }
0x2b67   :  { %v7157_v22 = vmul.f32 %v7582_v43, %v7147_v17  ;;  %8950 = vrsqrt.f32 %v7140_v29 }
0x2b68   :  { %v8947_v8 = vpop.eup %8946 }
0x2b69   :  { %v7146_v26 = vmul.f32 %v8947_v8, %v7114_v44  ;;  %v7167_v6 = vadd.f32 %v7583_v10, %v7157_v22 }
0x2b6b   :  { %v7156_v3 = vmul.f32 %v7582_v43, %v7146_v26  ;;  %v7188_v14 = vsel %vm432_vm0, %v7167_v6, 0.0 }
0x2b6d   :  { %v7166_v2 = vadd.f32 %v7583_v10, %v7156_v3 }
0x2b6f   :  { %v7187_v15 = vsel %vm432_vm0, %v7166_v2, 0.0 }
0x2b70   :  { %v8949_v11 = vpop.eup %8948  ;;  %v7189_v19 = vadd.f32 %v7188_v14, %v7187_v15 }
0x2b71   :  { %v8951_v20 = vpop.eup %8950  ;;  %v7149_v21 = vmul.f32 %v8949_v11, %v7117_v38 }
0x2b72   :  { %v7148_v27 = vmul.f32 %v8951_v20, %v7116_v48  ;;  %v7190_v18 = vrot.slane %v7189_v19, 4 }
0x2b73   :  { %v7159_v16 = vmul.f32 %v7582_v43, %v7149_v21 }
0x2b74   :  { %v7158_v4 = vmul.f32 %v7582_v43, %v7148_v27  ;;  %v7191_v33 = vadd.f32 %v7190_v18, %v7189_v19 }
0x2b75   :  { %v7169_v40 = vadd.f32 %v7583_v10, %v7159_v16 }
0x2b76   :  { %v7168_v34 = vadd.f32 %v7583_v10, %v7158_v4  ;;  %v7192_v23 = vrot.slane %v7191_v33, 2 }
0x2b77   :  { %v7197_v35 = vsel %vm432_vm0, %v7169_v40, 0.0 }
0x2b78   :  { %v7196_v45 = vsel %vm432_vm0, %v7168_v34, 0.0  ;;  %v7193_v41 = vadd.f32 %v7192_v23, %v7191_v33 }
0x2b79   :  { %v7198_v36 = vadd.f32 %v7197_v35, %v7196_v45 }
0x2b7a   :  { %v7194_v44 = vrot.slane %v7193_v41, 1 }
0x2b7b   :  { %v7199_v42 = vrot.slane %v7198_v36, 4 }
0x2b7c   :  { %v7195_v32 = vadd.f32 %v7194_v44, %v7193_v41 }
0x2b7d   :  { %v7200_v51 = vadd.f32 %v7199_v42, %v7198_v36 }
0x2b7e   :  { %v7206_v46 = vmul.f32 0.0625, %v7195_v32 }
0x2b7f   :  { %v7201_v12 = vrot.slane %v7200_v51, 2 }
0x2b80   :  { %v7208_v48 = vadd.f32 %v7206_v46, %v10217_v31 }
0x2b81   :  { %v7202_v24 = vadd.f32 %v7201_v12, %v7200_v51 }
0x2b83   :  { %v7203_v39 = vrot.slane %v7202_v24, 1 }
0x2b85   :  { %v7204_v9 = vadd.f32 %v7203_v39, %v7202_v24 }
0x2b87   :  { %v7207_v38 = vmul.f32 0.0625, %v7204_v9 }
0x2b89   :  { %v7209_v49 = vadd.f32 %v7207_v38, %v10215_v30  ;;  %v7301_v53 = vsel %vm7218_vm5, %v7207_v38, %v7206_v46 }
0x2b8a   :  { %7303 = vst.msk [vmem:[#allocation25] sm:$0x3] %vm7297_vm6, %v7301_v53 }
0x2b8b   :  { %v7219_v57 = vsel %vm7218_vm5, %v7209_v49, %v7208_v48 }
0x2b8c   :  { %8380 = vmatmul.mubr.msk.f32.vlgmr.msra.gmra.mrb[64].mxu0 %vm432_vm0, %v7219_v57 }
0x2b8d   :  { %9232 = shalt.err (!%p9229_p2)
}
0x2b8e   :  { %s9233_s22 = scalar_lea.hbm %s9573_s19, 32 }
0x2b8f   :  { %p9234_p3 = scmp.ne.s32.totalorder %s9573_s19, %s9233_s22  ;;  %p9237_p4 = scmp.lt.u32.totalorder %s9233_s22, %s9573_s19 }
0x2b91   :  { %p9239_p5 = pnand %p9237_p4, %p9234_p3 }
0x2b93   :  { %9242 = shalt.err (!%p9239_p5)
}
0x2b94   :  { %7323 = dma.vmem_to_hbm [thread:$0]  %s7321_s7, 32, %s9573_s19, [#allocation24]  }
0x2b95   :  { %s9373_s23 = smov [#allocation25]  }
0x2b96   :  { %s7330_s5 = sshll.u32 %s9373_s23, 4  ;;  %s7331_s5 = int_to_ptr.vmem [resolvable:$true] %s7330_s5 }
0x2b97   :  { %s9243_s3 = scalar_lea.vmem %s7331_s5, 32  ;;  %p9248_p7 = scmp.lt.s32.totalorder %s7331_s5, %s7331_s5 }
0x2b98   :  { %p9244_p6 = scmp.ne.s32.totalorder %s7331_s5, %s9243_s3  ;;  %p9249_p8 = scmp.lt.s32.totalorder %s9243_s3, %s9243_s3 }
0x2b9a   :  { %p9250_p9 = por %p9249_p8, %p9248_p7 }
0x2b9c   :  { %p9251_p10 = pnand %p9250_p9, %p9244_p6 }
0x2b9e   :  { %9254 = shalt.err (!%p9251_p10)
}
0x2b9f   :  { %s9255_s21 = scalar_lea.hbm %s9578_s17, 32 }
0x2ba0   :  { %p9256_p11 = scmp.ne.s32.totalorder %s9578_s17, %s9255_s21  ;;  %p9259_p12 = scmp.lt.u32.totalorder %s9255_s21, %s9578_s17 }
0x2ba2   :  { %p9261_p13 = pnand %p9259_p12, %p9256_p11 }
0x2ba4   :  { %9264 = shalt.err (!%p9261_p13)
}
0x2ba5   :  { %s10571_s19 = sld [smem:[#allocation35_spill]]  ;;  %s9374_s26 = smov [#allocation22]  }
0x2ba6   :  { %7333 = dma.vmem_to_hbm [thread:$0]  %s7331_s5, 32, %s9578_s17, [#allocation24]  }
0x2ba7   :  { %s7310_s30 = sshll.u32 %s9374_s26, 4  ;;  %s7311_s30 = int_to_ptr.vmem [resolvable:$true] %s7310_s30 }
0x2ba8   :  { %s9265_s28 = scalar_lea.vmem %s7311_s30, 32  ;;  %p9270_p1 = scmp.lt.s32.totalorder %s7311_s30, %s7311_s30 }
0x2ba9   :  { %p9266_p0 = scmp.ne.s32.totalorder %s7311_s30, %s9265_s28  ;;  %p9271_p2 = scmp.lt.s32.totalorder %s9265_s28, %s9265_s28 }
0x2bab   :  { %v7584_v30 = vld [vmem:[%s10571_s19] ss:$0 sm:$0xff]  ;;  %p9272_p3 = por %p9271_p2, %p9270_p1 }
0x2bad   :  { %p9273_p4 = pnand %p9272_p3, %p9266_p0 }
0x2c5f   :  { %v7288_v31 = vpop.f32.mrb[64].mxu0 }
0x2c60   :  { %v7289_v62 = vadd.f32 %v7584_v30, %v7288_v31  ;;  %v8381_v54 = vpop.f32.mrb[65].mxu0 }
0x2c62   :  { %7292 = vst [vmem:[#allocation22] sm:$0x3] %v7289_v62 }
0x2c63   :  { %9276 = shalt.err (!%p9273_p4)
}
0x2c64   :  { %s9277_s0 = scalar_lea.hbm %s9568_s24, 32 }
0x2c65   :  { %p9278_p5 = scmp.ne.s32.totalorder %s9568_s24, %s9277_s0  ;;  %p9281_p6 = scmp.lt.u32.totalorder %s9277_s0, %s9568_s24 }
0x2c67   :  { %p9283_p7 = pnand %p9281_p6, %p9278_p5 }
0x2c69   :  { %9286 = shalt.err (!%p9283_p7)
}
0x2c6a   :  { %7313 = dma.vmem_to_hbm [thread:$0]  %s7311_s30, 32, %s9568_s24, [#allocation4]  }
0x2c6b   :  { %9301 = dma.done.wait [#allocation4], 32  }
0x2c6c   :  { %9302 = vsyncadd [#allocation4], 4294967264 }
0x2c6d   :  { %9303 = dma.done.wait [#allocation24], 64  }
0x2c6e   :  { %9304 = vsyncadd [#allocation24], 4294967232 }
0x2c6f   :  { %7343 = vsyncpa [#allocation3], 1 }
0x2c70   :  { %7344 = vsyncpa [#allocation6], 1 }
0x2c71   :  { %7345 = vsyncpa [#allocation9], 1 }
0x2c72   :  { %7346 = vsyncpa [#allocation12], 1 }
0x2c73   :  { %7347 = vsyncpa [#allocation15], 1 }
0x2c74   :  { %7348 = vsyncpa [#allocation18], 1 }
0x2c75   :  { %7349 = vsyncpa [#allocation21], 1 }
0x2c76   :  { %7350 = vsyncpa [#allocation4], 1 }
0x2c77   :  { %7351 = vsyncpa [#allocation24], 1 }

</bundles_post_ra>
